<compile_context>
chip_gen: v6e
topology: v6e:2x2x1
jax: 0.10.0
libtpu: 0.0.40
codegen_flags: <defaults>
</compile_context>

<pallas_src>
import jax
import jax.numpy as jnp
from jax.experimental import pallas as pl
from jax.experimental.pallas import tpu as pltpu

EPS = 1e-5                      # PyTorch BatchNorm2d default eps
KSIZE = 4
STRIDES = (1, 2, 2, 2, 2)
PADS = (0, 1, 1, 1, 1)


def _round_up(x, m):
    return (x + m - 1) // m * m


def _vmem_limit_bytes():
    """Generation-aware scoped-VMEM limit: ~3/4 of per-core VMEM, capped at
    96 MiB (v5e/v6e: 128 MiB physical -> 96 MiB; v7x: 64 MiB -> 48 MiB)."""
    try:
        cap = int(pltpu.get_tpu_info().vmem_capacity_bytes)
    except Exception:
        cap = 64 * 1024 * 1024
    return int(max(16 * 1024 * 1024, min(96 * 1024 * 1024, cap * 3 // 4)))


# ---------------------------------------------------------------------------
# Pallas kernels
# ---------------------------------------------------------------------------

def _gemm_bn_stats_kernel(a_ref, b_ref, o_ref, sum_ref, sq_ref):
    """(tm, Kp) x (Kp, tn) MXU GEMM.  Per-column sum / sum-of-squares partials
    are taken from the f32 accumulator (before the bf16 cast) via a
    reshape+sum tree onto 8 sublanes; the tiny cross-sublane / cross-block
    reduce is finished in plain JAX."""
    y = jnp.dot(a_ref[...], b_ref[...], preferred_element_type=jnp.float32)
    o_ref[...] = y.astype(o_ref.dtype)                 # bf16 writeback
    tm, tn = y.shape
    yr = y.reshape(tm // 8, 8, tn)
    sum_ref[...] = jnp.sum(yr, axis=0)
    sq_ref[...] = jnp.sum(yr * yr, axis=0)


def _gemm_tanh_kernel(a_ref, b_ref, o_ref):
    """Last layer: GEMM with tanh fused into the epilogue (EUP slot), bf16 out."""
    y = jnp.dot(a_ref[...], b_ref[...], preferred_element_type=jnp.float32)
    o_ref[...] = jnp.tanh(y).astype(o_ref.dtype)


def _bn_relu_kernel(x_ref, scale_ref, shift_ref, o_ref):
    y = x_ref[...].astype(jnp.float32) * scale_ref[...] + shift_ref[...]
    o_ref[...] = jnp.maximum(y, 0.0).astype(o_ref.dtype)


# ---------------------------------------------------------------------------
# Pallas call wrappers
# ---------------------------------------------------------------------------

def _pick_tm(Mp, Kp, tn, budget):
    """Largest M tile dividing Mp that keeps >=2 M blocks (v7x megacore) and
    fits a conservative double-buffered VMEM budget."""
    tm = Mp
    for cand in (512, 256, 128, 64, 32, 16, 8):
        if cand < Mp and Mp % cand == 0:
            tm = cand
            break

    def footprint(t):
        return 2 * (t * Kp * 2 + Kp * tn * 2 + t * tn * 2 + 2 * 8 * tn * 4)

    while tm > 8 and footprint(tm) > budget:
        tm //= 2
    return tm


def pallas_convt_gemm(a, b, vmem_limit, fuse_tanh=False):
    """a: (M, K) bf16 patches, b: (K, N) bf16 weights.  K fully resident per
    block; B fully VMEM-resident (single DMA) whenever it fits.

    Returns (bf16):
      fuse_tanh=False: (y_pad (Mp, Np), sum_parts (gm*8, Np) f32,
                        sq_parts (gm*8, Np) f32)
      fuse_tanh=True : tanh(y) padded, shape (Mp, Np)
    """
    a = a.astype(jnp.bfloat16)
    b = b.astype(jnp.bfloat16)
    M, K = a.shape
    K2, N = b.shape
    assert K == K2
    Mp, Kp, Np = _round_up(M, 128), _round_up(K, 128), _round_up(N, 128)

    # Keep B fully resident (its block index never changes -> DMA'd once).
    b_resident = Kp * Np * 2 <= 8 * 1024 * 1024
    tn = Np if b_resident else 128
    budget = (vmem_limit * 2) // 3
    tm = _pick_tm(Mp, Kp, tn, budget)

    if (Mp, Kp) != (M, K):
        a = jnp.pad(a, ((0, Mp - M), (0, Kp - K)))
    if (Kp, Np) != (K, N):
        b = jnp.pad(b, ((0, Kp - K), (0, Np - N)))

    gm, gn = Mp // tm, Np // tn
    if b_resident:
        b_spec = pl.BlockSpec((Kp, tn), lambda i, j: (0, j))
    else:
        # B streamed per column tile: deepen its pipeline to hide the DMA.
        b_spec = pl.BlockSpec((Kp, tn), lambda i, j: (0, j),
                              pipeline_mode=pl.Buffered(3))
    in_specs = [pl.BlockSpec((tm, Kp), lambda i, j: (i, 0)), b_spec]
    cparams = pltpu.CompilerParams(
        dimension_semantics=("parallel", "parallel"),
        vmem_limit_bytes=vmem_limit)

    if fuse_tanh:
        return pl.pallas_call(
            _gemm_tanh_kernel,
            out_shape=jax.ShapeDtypeStruct((Mp, Np), jnp.bfloat16),
            grid=(gm, gn),
            in_specs=in_specs,
            out_specs=pl.BlockSpec((tm, tn), lambda i, j: (i, j)),
            compiler_params=cparams,
        )(a, b)

    return pl.pallas_call(
        _gemm_bn_stats_kernel,
        out_shape=(jax.ShapeDtypeStruct((Mp, Np), jnp.bfloat16),
                   jax.ShapeDtypeStruct((gm * 8, Np), jnp.float32),
                   jax.ShapeDtypeStruct((gm * 8, Np), jnp.float32)),
        grid=(gm, gn),
        in_specs=in_specs,
        out_specs=(pl.BlockSpec((tm, tn), lambda i, j: (i, j)),
                   pl.BlockSpec((8, tn), lambda i, j: (i, j)),
                   pl.BlockSpec((8, tn), lambda i, j: (i, j))),
        compiler_params=cparams,
    )(a, b)


def _pick_rb(R, L, budget):
    """Largest row block dividing R that fits the (L-aware, double-buffered)
    VMEM budget, preferring >=2 blocks so v7x can split across both cores."""
    best = None
    for cand in (2048, 1024, 512, 256, 128, 64, 32, 16, 8):
        if cand > R or R % cand:
            continue
        if 2 * (2 * cand * L * 2 + 2 * L * 4) > budget:
            continue
        if best is None:
            best = cand
        if R // cand >= 2:
            return cand
    return best if best is not None else 8


def pallas_bn_relu(x2d, scale_row, shift_row, vmem_limit,
                   out_dtype=jnp.bfloat16):
    """x2d: (R, L) bf16, lane-dense (L a multiple of 128).
    scale_row / shift_row: (1, L) f32 (per-channel affine, phase-tiled and
    zero-padded into the padded lanes)."""
    R, L = x2d.shape
    rb = _pick_rb(R, L, (vmem_limit * 2) // 3)
    return pl.pallas_call(
        _bn_relu_kernel,
        out_shape=jax.ShapeDtypeStruct((R, L), out_dtype),
        grid=(R // rb,),
        in_specs=[pl.BlockSpec((rb, L), lambda i: (i, 0)),
                  pl.BlockSpec((1, L), lambda i: (0, 0)),
                  pl.BlockSpec((1, L), lambda i: (0, 0))],
        out_specs=pl.BlockSpec((rb, L), lambda i: (i, 0)),
        compiler_params=pltpu.CompilerParams(
            dimension_semantics=("parallel",),
            vmem_limit_bytes=vmem_limit),
    )(x2d, scale_row, shift_row)


# ---------------------------------------------------------------------------
# ConvTranspose2d lowering (plain-JAX glue around the Pallas GEMM)
# ---------------------------------------------------------------------------

def _convT_patches(x_nhwc, k, stride, padding):
    """General path (used only for the tiny stride-1 first layer):
    ConvTranspose == zero-dilate by stride, pad by (k-1-padding), then a
    cross-correlation with the spatially flipped kernel."""
    N, H, W, C = x_nhwc.shape
    if stride > 1:
        Hd = (H - 1) * stride + 1
        Wd = (W - 1) * stride + 1
        xd = jnp.zeros((N, Hd, Wd, C), x_nhwc.dtype)
        xd = xd.at[:, ::stride, ::stride, :].set(x_nhwc)
    else:
        xd = x_nhwc
    p = k - 1 - padding
    xp = jnp.pad(xd, ((0, 0), (p, p), (p, p), (0, 0)))
    OH = xp.shape[1] - k + 1
    OW = xp.shape[2] - k + 1
    cols = [xp[:, kh:kh + OH, kw:kw + OW, :] for kh in range(k) for kw in range(k)]
    patches = jnp.concatenate(cols, axis=-1)   # (N, OH, OW, k*k*C)
    return patches, OH, OW


def _convT_weight_matrix(w_ct):
    """PyTorch ConvTranspose2d weight (Cin, Cout, kH, kW) ->
    GEMM weight (k*k*Cin, Cout), row order (kh, kw, ci), flipped taps."""
    cin, cout, kh, kw = w_ct.shape
    wf = jnp.flip(w_ct, axis=(2, 3))
    return jnp.transpose(wf, (2, 3, 0, 1)).reshape(kh * kw * cin, cout)


def _convT_s2_union_weight(w_ct):
    """Stride-2 / pad-1 / k=4 sub-pixel decomposition weight:
    (Cin, Cout, 4, 4) -> (9*Cin, 4*Cout).

      row index = (dh*3 + dw)*Cin + ci   tap (dh, dw) of the 3x3 window over
                                         the pad-1 UN-dilated input
      col index = (ph*2 + pw)*Cout + co  output phase (oh%2, ow%2)
      entry     = W[ci, co, kh, kw] with kh = ph - 2*dh + 3, kw = pw - 2*dw + 3
                  when valid, else 0 (the structural zeros sit in this small,
                  VMEM-resident B instead of the streamed A)."""
    cin, cout = w_ct.shape[0], w_ct.shape[1]
    bm = jnp.zeros((9 * cin, 4 * cout), w_ct.dtype)
    for dh in range(3):
        for dw in range(3):
            for ph in range(2):
                for pw in range(2):
                    kh = ph - 2 * dh + 3
                    kw = pw - 2 * dw + 3
                    if 0 <= kh < KSIZE and 0 <= kw < KSIZE:
                        t = dh * 3 + dw
                        p = ph * 2 + pw
                        bm = bm.at[t * cin:(t + 1) * cin,
                                   p * cout:(p + 1) * cout].set(w_ct[:, :, kh, kw])
    return bm


# ---------------------------------------------------------------------------
# Generator forward
# ---------------------------------------------------------------------------

def init_generator_params(key, latent_size, hidden_size):
    chans = [latent_size, hidden_size * 8, hidden_size * 4,
             hidden_size * 2, hidden_size, 3]
    ws, gammas, betas = [], [], []
    for i in range(5):
        key, k1, k2, k3 = jax.random.split(key, 4)
        cin, cout = chans[i], chans[i + 1]
        ws.append(0.02 * jax.random.normal(k1, (cin, cout, KSIZE, KSIZE), jnp.float32))
        if i < 4:  # no BatchNorm after the last conv-transpose
            gammas.append(1.0 + 0.1 * jax.random.normal(k2, (cout,), jnp.float32))
            betas.append(0.1 * jax.random.normal(k3, (cout,), jnp.float32))
    return {"w": ws, "gamma": gammas, "beta": betas}


def _forward_pallas(x_nchw, params):
    vmem_limit = _vmem_limit_bytes()
    x = jnp.transpose(x_nchw, (0, 2, 3, 1)).astype(jnp.bfloat16)  # NHWC bf16
    n_layers = len(params["w"])
    for li in range(n_layers):
        w = params["w"][li]
        cout = w.shape[1]
        stride, padding = STRIDES[li], PADS[li]
        last = li == n_layers - 1
        N, H, W = x.shape[0], x.shape[1], x.shape[2]

        if stride == 2 and padding == 1 and KSIZE == 4:
            # Sub-pixel (output-phase) decomposition: all 4 phases come from
            # the un-dilated input via a shared 3x3 window; the 4 phase GEMMs
            # are fused into one by stacking phases along the lane-dense
            # output dimension.
            # TODO(synk): fuse this window gather into the GEMM via in-kernel
            # shifted-window DMA so the 9x patch tensor never hits HBM.
            xp = jnp.pad(x, ((0, 0), (1, 1), (1, 1), (0, 0)))
            cols = [xp[:, dh:dh + H, dw:dw + W, :]
                    for dh in range(3) for dw in range(3)]
            A = jnp.concatenate(cols, axis=-1).reshape(N * H * W, -1)
            Bm = _convT_s2_union_weight(w).astype(jnp.bfloat16)
            n_phase, OH, OW, M = 4, 2 * H, 2 * W, N * H * W
        else:
            patches, OH, OW = _convT_patches(x, KSIZE, stride, padding)
            A = patches.reshape(N * OH * OW, -1)
            Bm = _convT_weight_matrix(w).astype(jnp.bfloat16)
            n_phase, M = 1, N * OH * OW

        n_cols = n_phase * cout

        if last:
            y_pad = pallas_convt_gemm(A, Bm, vmem_limit, fuse_tanh=True)
        else:
            y_pad, s_parts, q_parts = pallas_convt_gemm(A, Bm, vmem_limit)
            cnt = n_phase * M        # per-channel element count (N*OH*OW)
            ch_sum = jnp.sum(s_parts, axis=0)[:n_cols].reshape(n_phase, cout).sum(0)
            ch_sq = jnp.sum(q_parts, axis=0)[:n_cols].reshape(n_phase, cout).sum(0)
            mean = ch_sum / cnt
            # Activations are BN-normalized (O(1)), so f32 E[x^2]-mean^2 with
            # a clamp is adequate here; a mean-shifted two-pass would be the
            # fallback if activations grow large.
            var = jnp.maximum(ch_sq / cnt - mean * mean, 0.0)
            scale = params["gamma"][li] / jnp.sqrt(var + EPS)
            shift = params["beta"][li] - mean * scale

            Np = y_pad.shape[1]
            sc_row = jnp.pad(jnp.tile(scale, n_phase),
                             (0, Np - n_cols)).reshape(1, Np).astype(jnp.float32)
            sh_row = jnp.pad(jnp.tile(shift, n_phase),
                             (0, Np - n_cols)).reshape(1, Np).astype(jnp.float32)
            # BN+ReLU runs directly on the padded bf16 GEMM output; the crop
            # happens below in bf16, folded into the phase-interleave copy.
            y_pad = pallas_bn_relu(y_pad, sc_row, sh_row, vmem_limit)

        y = y_pad[:M, :n_cols]
        if n_phase == 4:
            y = y.reshape(N, OH // 2, OW // 2, 2, 2, cout)
            y = jnp.transpose(y, (0, 1, 3, 2, 4, 5)).reshape(N, OH, OW, cout)
        else:
            y = y.reshape(N, OH, OW, cout)
        x = y.astype(jnp.float32) if last else y    # bf16 between layers

    return jnp.transpose(x, (0, 3, 1, 2))           # NHWC -> NCHW


def _forward_ref(x_nchw, params):
    """Plain-JAX reference (lax.conv_general_dilated) with the same precision
    policy as the Pallas path: bf16 conv inputs/weights (MXU dtype), f32
    accumulation and f32 batch stats, bf16 activation storage between layers."""
    x = jnp.transpose(x_nchw, (0, 2, 3, 1)).astype(jnp.bfloat16)
    n_layers = len(params["w"])
    for li in range(n_layers):
        w = params["w"][li].astype(jnp.bfloat16)
        k, s, p = KSIZE, STRIDES[li], PADS[li]
        w_hwio = jnp.flip(jnp.transpose(w, (2, 3, 0, 1)), axis=(0, 1))
        pp = k - 1 - p
        y = jax.lax.conv_general_dilated(
            x, w_hwio, window_strides=(1, 1),
            padding=[(pp, pp), (pp, pp)], lhs_dilation=(s, s),
            dimension_numbers=("NHWC", "HWIO", "NHWC"),
            preferred_element_type=jnp.float32)
        if li < n_layers - 1:
            cnt = y.shape[0] * y.shape[1] * y.shape[2]
            ch_sum = jnp.sum(y, axis=(0, 1, 2))
            ch_sq = jnp.sum(y * y, axis=(0, 1, 2))
            mean = ch_sum / cnt
            var = jnp.maximum(ch_sq / cnt - mean * mean, 0.0)
            scale = params["gamma"][li] / jnp.sqrt(var + EPS)
            shift = params["beta"][li] - mean * scale
            y = y.astype(jnp.bfloat16)              # mirror bf16 storage
            x = jnp.maximum(y * scale + shift, 0.0).astype(jnp.bfloat16)
        else:
            x = jnp.tanh(y).astype(jnp.float32)
    return jnp.transpose(x, (0, 3, 1, 2))


def generator_forward(x_nchw, params, use_pallas=True):
    if use_pallas:
        return _forward_pallas(x_nchw, params)
    return _forward_ref(x_nchw, params)


# ---------------------------------------------------------------------------

if __name__ == "__main__":
    # small shapes: batch=2, latent=16, hidden=8 -> output (2, 3, 64, 64)
    batch, latent, hidden, image_size = 2, 16, 8, 64

    root = jax.random.PRNGKey(0)
    kp, kx = jax.random.split(root)
    params = init_generator_params(kp, latent, hidden)
    x = jax.random.normal(kx, (batch, latent, 1, 1), jnp.float32)

    fwd = jax.jit(lambda p, xx: generator_forward(xx, p, use_pallas=True))
    ref_fwd = jax.jit(lambda p, xx: generator_forward(xx, p, use_pallas=False))

    out = jax.block_until_ready(fwd(params, x))
    assert out.shape == (batch, 3, image_size, image_size), out.shape

    ref = jax.block_until_ready(ref_fwd(params, x))
    assert bool(jnp.all(jnp.isfinite(out)))
    max_err = float(jnp.max(jnp.abs(out - ref)))
    assert max_err < 5e-3, max_err

    print("KERNEL_OK")
</pallas_src>

<mosaic_0001>
module attributes {stable_mosaic.version = 11 : i64} {
  func.func @_gemm_bn_stats_kernel(%arg0: i32, %arg1: i32, %arg2: memref<64x256xbf16, #tpu.memory_space<vmem>>, %arg3: memref<256x128xbf16, #tpu.memory_space<vmem>>, %arg4: memref<64x128xbf16, #tpu.memory_space<vmem>>, %arg5: memref<8x128xf32, #tpu.memory_space<vmem>>, %arg6: memref<8x128xf32, #tpu.memory_space<vmem>>) attributes {dimension_semantics = [#tpu.dimension_semantics<parallel>, #tpu.dimension_semantics<parallel>], iteration_bounds = array<i64: 2, 1>, scalar_prefetch = 0 : i64, scratch_operands = 0 : i64, tpu.core_type = #tpu.core_type<tc>, window_params = [{transform_indices = @transform_0, window_bounds = array<i64: 64, 256>}, {transform_indices = @transform_1, window_bounds = array<i64: 256, 128>}, {transform_indices = @transform_2, window_bounds = array<i64: 64, 128>}, {transform_indices = @transform_3, window_bounds = array<i64: 8, 128>}, {transform_indices = @transform_4, window_bounds = array<i64: 8, 128>}]} {
    %c0 = arith.constant 0 : index
    %c0_0 = arith.constant 0 : index
    %0 = vector.load %arg2[%c0, %c0_0] : memref<64x256xbf16, #tpu.memory_space<vmem>>, vector<64x256xbf16>
    %c0_1 = arith.constant 0 : index
    %c0_2 = arith.constant 0 : index
    %1 = vector.load %arg3[%c0_1, %c0_2] : memref<256x128xbf16, #tpu.memory_space<vmem>>, vector<256x128xbf16>
    %cst = arith.constant dense<0.000000e+00> : vector<64x128xf32>
    %2 = tpu.matmul %0, %1, %cst {dimension_numbers = #tpu.dot_dimension_numbers<[1], [0], [0], [1], [0, 0, 1, 1], [], []>} : vector<64x256xbf16>, vector<256x128xbf16>, vector<64x128xf32> -> vector<64x128xf32>
    %3 = arith.truncf %2 : vector<64x128xf32> to vector<64x128xbf16>
    %c0_3 = arith.constant 0 : index
    %c0_4 = arith.constant 0 : index
    %4 = vector.load %arg4[%c0_3, %c0_4] : memref<64x128xbf16, #tpu.memory_space<vmem>>, vector<64x128xbf16>
    tpu.vector_store %arg4[%c0_3, %c0_4], %3 {strides = array<i32>} : memref<64x128xbf16, #tpu.memory_space<vmem>>, vector<64x128xbf16>,
    %5 = vector.shape_cast %2 : vector<64x128xf32> to vector<8x8x128xf32>
    %cst_5 = arith.constant dense<0.000000e+00> : vector<8x128xf32>
    %6 = vector.multi_reduction <add>, %5, %cst_5 [0] : vector<8x8x128xf32> to vector<8x128xf32>
    %c0_6 = arith.constant 0 : index
    %c0_7 = arith.constant 0 : index
    %7 = vector.load %arg5[%c0_6, %c0_7] : memref<8x128xf32, #tpu.memory_space<vmem>>, vector<8x128xf32>
    tpu.vector_store %arg5[%c0_6, %c0_7], %6 {strides = array<i32>} : memref<8x128xf32, #tpu.memory_space<vmem>>, vector<8x128xf32>,
    %8 = arith.mulf %5, %5 : vector<8x8x128xf32>
    %cst_8 = arith.constant dense<0.000000e+00> : vector<8x128xf32>
    %9 = vector.multi_reduction <add>, %8, %cst_8 [0] : vector<8x8x128xf32> to vector<8x128xf32>
    %c0_9 = arith.constant 0 : index
    %c0_10 = arith.constant 0 : index
    %10 = vector.load %arg6[%c0_9, %c0_10] : memref<8x128xf32, #tpu.memory_space<vmem>>, vector<8x128xf32>
    tpu.vector_store %arg6[%c0_9, %c0_10], %9 {strides = array<i32>} : memref<8x128xf32, #tpu.memory_space<vmem>>, vector<8x128xf32>,
    return
  }
  func.func @transform_0(%arg0: i32, %arg1: i32) -> (i32, i32) {
    %c0_i32 = arith.constant 0 : i32
    %c0_i32_0 = arith.constant 0 : i32
    return %arg0, %c0_i32 : i32, i32
  }
  func.func @transform_1(%arg0: i32, %arg1: i32) -> (i32, i32) {
    %c0_i32 = arith.constant 0 : i32
    %c0_i32_0 = arith.constant 0 : i32
    return %c0_i32, %arg1 : i32, i32
  }
  func.func @transform_2(%arg0: i32, %arg1: i32) -> (i32, i32) {
    %c0_i32 = arith.constant 0 : i32
    return %arg0, %arg1 : i32, i32
  }
  func.func @transform_3(%arg0: i32, %arg1: i32) -> (i32, i32) {
    %c0_i32 = arith.constant 0 : i32
    return %arg0, %arg1 : i32, i32
  }
  func.func @transform_4(%arg0: i32, %arg1: i32) -> (i32, i32) {
    %c0_i32 = arith.constant 0 : i32
    return %arg0, %arg1 : i32, i32
  }
}

module attributes {stable_mosaic.version = 11 : i64} {
  func.func @_bn_relu_kernel(%arg0: i32, %arg1: memref<64x128xbf16, #tpu.memory_space<vmem>>, %arg2: memref<1x128xf32, #tpu.memory_space<vmem>>, %arg3: memref<1x128xf32, #tpu.memory_space<vmem>>, %arg4: memref<64x128xbf16, #tpu.memory_space<vmem>>) attributes {dimension_semantics = [#tpu.dimension_semantics<parallel>], iteration_bounds = array<i64: 2>, scalar_prefetch = 0 : i64, scratch_operands = 0 : i64, tpu.core_type = #tpu.core_type<tc>, window_params = [{transform_indices = @transform_0, window_bounds = array<i64: 64, 128>}, {pipeline_mode = #tpu.pipeline_mode<synchronous>, transform_indices = @transform_1, window_bounds = array<i64: 1, 128>}, {pipeline_mode = #tpu.pipeline_mode<synchronous>, transform_indices = @transform_2, window_bounds = array<i64: 1, 128>}, {transform_indices = @transform_3, window_bounds = array<i64: 64, 128>}]} {
    %c0 = arith.constant 0 : index
    %c0_0 = arith.constant 0 : index
    %0 = vector.load %arg1[%c0, %c0_0] : memref<64x128xbf16, #tpu.memory_space<vmem>>, vector<64x128xbf16>
    %1 = arith.extf %0 : vector<64x128xbf16> to vector<64x128xf32>
    %c0_1 = arith.constant 0 : index
    %c0_2 = arith.constant 0 : index
    %2 = vector.load %arg2[%c0_1, %c0_2] : memref<1x128xf32, #tpu.memory_space<vmem>>, vector<1x128xf32>
    %3 = vector.broadcast %2 : vector<1x128xf32> to vector<64x128xf32>
    %4 = arith.mulf %1, %3 : vector<64x128xf32>
    %c0_3 = arith.constant 0 : index
    %c0_4 = arith.constant 0 : index
    %5 = vector.load %arg3[%c0_3, %c0_4] : memref<1x128xf32, #tpu.memory_space<vmem>>, vector<1x128xf32>
    %6 = vector.broadcast %5 : vector<1x128xf32> to vector<64x128xf32>
    %7 = arith.addf %4, %6 : vector<64x128xf32>
    %cst = arith.constant 0.000000e+00 : f32
    %8 = vector.broadcast %cst : f32 to vector<64x128xf32>
    %9 = arith.maximumf %7, %8 : vector<64x128xf32>
    %10 = arith.truncf %9 : vector<64x128xf32> to vector<64x128xbf16>
    %c0_5 = arith.constant 0 : index
    %c0_6 = arith.constant 0 : index
    %11 = vector.load %arg4[%c0_5, %c0_6] : memref<64x128xbf16, #tpu.memory_space<vmem>>, vector<64x128xbf16>
    tpu.vector_store %arg4[%c0_5, %c0_6], %10 {strides = array<i32>} : memref<64x128xbf16, #tpu.memory_space<vmem>>, vector<64x128xbf16>,
    return
  }
  func.func @transform_0(%arg0: i32) -> (i32, i32) {
    %c0_i32 = arith.constant 0 : i32
    %c0_i32_0 = arith.constant 0 : i32
    return %arg0, %c0_i32 : i32, i32
  }
  func.func @transform_1(%arg0: i32) -> (i32, i32) {
    %c0_i32 = arith.constant 0 : i32
    %c0_i32_0 = arith.constant 0 : i32
    %c0_i32_1 = arith.constant 0 : i32
    return %c0_i32, %c0_i32_0 : i32, i32
  }
  func.func @transform_2(%arg0: i32) -> (i32, i32) {
    %c0_i32 = arith.constant 0 : i32
    %c0_i32_0 = arith.constant 0 : i32
    %c0_i32_1 = arith.constant 0 : i32
    return %c0_i32, %c0_i32_0 : i32, i32
  }
  func.func @transform_3(%arg0: i32) -> (i32, i32) {
    %c0_i32 = arith.constant 0 : i32
    %c0_i32_0 = arith.constant 0 : i32
    return %arg0, %c0_i32 : i32, i32
  }
}

module attributes {stable_mosaic.version = 11 : i64} {
  func.func @_gemm_bn_stats_kernel(%arg0: i32, %arg1: i32, %arg2: memref<64x640xbf16, #tpu.memory_space<vmem>>, %arg3: memref<640x128xbf16, #tpu.memory_space<vmem>>, %arg4: memref<64x128xbf16, #tpu.memory_space<vmem>>, %arg5: memref<8x128xf32, #tpu.memory_space<vmem>>, %arg6: memref<8x128xf32, #tpu.memory_space<vmem>>) attributes {dimension_semantics = [#tpu.dimension_semantics<parallel>, #tpu.dimension_semantics<parallel>], iteration_bounds = array<i64: 2, 1>, scalar_prefetch = 0 : i64, scratch_operands = 0 : i64, tpu.core_type = #tpu.core_type<tc>, window_params = [{transform_indices = @transform_0, window_bounds = array<i64: 64, 640>}, {transform_indices = @transform_1, window_bounds = array<i64: 640, 128>}, {transform_indices = @transform_2, window_bounds = array<i64: 64, 128>}, {transform_indices = @transform_3, window_bounds = array<i64: 8, 128>}, {transform_indices = @transform_4, window_bounds = array<i64: 8, 128>}]} {
    %c0 = arith.constant 0 : index
    %c0_0 = arith.constant 0 : index
    %0 = vector.load %arg2[%c0, %c0_0] : memref<64x640xbf16, #tpu.memory_space<vmem>>, vector<64x640xbf16>
    %c0_1 = arith.constant 0 : index
    %c0_2 = arith.constant 0 : index
    %1 = vector.load %arg3[%c0_1, %c0_2] : memref<640x128xbf16, #tpu.memory_space<vmem>>, vector<640x128xbf16>
    %cst = arith.constant dense<0.000000e+00> : vector<64x128xf32>
    %2 = tpu.matmul %0, %1, %cst {dimension_numbers = #tpu.dot_dimension_numbers<[1], [0], [0], [1], [0, 0, 1, 1], [], []>} : vector<64x640xbf16>, vector<640x128xbf16>, vector<64x128xf32> -> vector<64x128xf32>
    %3 = arith.truncf %2 : vector<64x128xf32> to vector<64x128xbf16>
    %c0_3 = arith.constant 0 : index
    %c0_4 = arith.constant 0 : index
    %4 = vector.load %arg4[%c0_3, %c0_4] : memref<64x128xbf16, #tpu.memory_space<vmem>>, vector<64x128xbf16>
    tpu.vector_store %arg4[%c0_3, %c0_4], %3 {strides = array<i32>} : memref<64x128xbf16, #tpu.memory_space<vmem>>, vector<64x128xbf16>,
    %5 = vector.shape_cast %2 : vector<64x128xf32> to vector<8x8x128xf32>
    %cst_5 = arith.constant dense<0.000000e+00> : vector<8x128xf32>
    %6 = vector.multi_reduction <add>, %5, %cst_5 [0] : vector<8x8x128xf32> to vector<8x128xf32>
    %c0_6 = arith.constant 0 : index
    %c0_7 = arith.constant 0 : index
    %7 = vector.load %arg5[%c0_6, %c0_7] : memref<8x128xf32, #tpu.memory_space<vmem>>, vector<8x128xf32>
    tpu.vector_store %arg5[%c0_6, %c0_7], %6 {strides = array<i32>} : memref<8x128xf32, #tpu.memory_space<vmem>>, vector<8x128xf32>,
    %8 = arith.mulf %5, %5 : vector<8x8x128xf32>
    %cst_8 = arith.constant dense<0.000000e+00> : vector<8x128xf32>
    %9 = vector.multi_reduction <add>, %8, %cst_8 [0] : vector<8x8x128xf32> to vector<8x128xf32>
    %c0_9 = arith.constant 0 : index
    %c0_10 = arith.constant 0 : index
    %10 = vector.load %arg6[%c0_9, %c0_10] : memref<8x128xf32, #tpu.memory_space<vmem>>, vector<8x128xf32>
    tpu.vector_store %arg6[%c0_9, %c0_10], %9 {strides = array<i32>} : memref<8x128xf32, #tpu.memory_space<vmem>>, vector<8x128xf32>,
    return
  }
  func.func @transform_0(%arg0: i32, %arg1: i32) -> (i32, i32) {
    %c0_i32 = arith.constant 0 : i32
    %c0_i32_0 = arith.constant 0 : i32
    return %arg0, %c0_i32 : i32, i32
  }
  func.func @transform_1(%arg0: i32, %arg1: i32) -> (i32, i32) {
    %c0_i32 = arith.constant 0 : i32
    %c0_i32_0 = arith.constant 0 : i32
    return %c0_i32, %arg1 : i32, i32
  }
  func.func @transform_2(%arg0: i32, %arg1: i32) -> (i32, i32) {
    %c0_i32 = arith.constant 0 : i32
    return %arg0, %arg1 : i32, i32
  }
  func.func @transform_3(%arg0: i32, %arg1: i32) -> (i32, i32) {
    %c0_i32 = arith.constant 0 : i32
    return %arg0, %arg1 : i32, i32
  }
  func.func @transform_4(%arg0: i32, %arg1: i32) -> (i32, i32) {
    %c0_i32 = arith.constant 0 : i32
    return %arg0, %arg1 : i32, i32
  }
}

module attributes {stable_mosaic.version = 11 : i64} {
  func.func @_gemm_bn_stats_kernel(%arg0: i32, %arg1: i32, %arg2: memref<64x384xbf16, #tpu.memory_space<vmem>>, %arg3: memref<384x128xbf16, #tpu.memory_space<vmem>>, %arg4: memref<64x128xbf16, #tpu.memory_space<vmem>>, %arg5: memref<8x128xf32, #tpu.memory_space<vmem>>, %arg6: memref<8x128xf32, #tpu.memory_space<vmem>>) attributes {dimension_semantics = [#tpu.dimension_semantics<parallel>, #tpu.dimension_semantics<parallel>], iteration_bounds = array<i64: 2, 1>, scalar_prefetch = 0 : i64, scratch_operands = 0 : i64, tpu.core_type = #tpu.core_type<tc>, window_params = [{transform_indices = @transform_0, window_bounds = array<i64: 64, 384>}, {transform_indices = @transform_1, window_bounds = array<i64: 384, 128>}, {transform_indices = @transform_2, window_bounds = array<i64: 64, 128>}, {transform_indices = @transform_3, window_bounds = array<i64: 8, 128>}, {transform_indices = @transform_4, window_bounds = array<i64: 8, 128>}]} {
    %c0 = arith.constant 0 : index
    %c0_0 = arith.constant 0 : index
    %0 = vector.load %arg2[%c0, %c0_0] : memref<64x384xbf16, #tpu.memory_space<vmem>>, vector<64x384xbf16>
    %c0_1 = arith.constant 0 : index
    %c0_2 = arith.constant 0 : index
    %1 = vector.load %arg3[%c0_1, %c0_2] : memref<384x128xbf16, #tpu.memory_space<vmem>>, vector<384x128xbf16>
    %cst = arith.constant dense<0.000000e+00> : vector<64x128xf32>
    %2 = tpu.matmul %0, %1, %cst {dimension_numbers = #tpu.dot_dimension_numbers<[1], [0], [0], [1], [0, 0, 1, 1], [], []>} : vector<64x384xbf16>, vector<384x128xbf16>, vector<64x128xf32> -> vector<64x128xf32>
    %3 = arith.truncf %2 : vector<64x128xf32> to vector<64x128xbf16>
    %c0_3 = arith.constant 0 : index
    %c0_4 = arith.constant 0 : index
    %4 = vector.load %arg4[%c0_3, %c0_4] : memref<64x128xbf16, #tpu.memory_space<vmem>>, vector<64x128xbf16>
    tpu.vector_store %arg4[%c0_3, %c0_4], %3 {strides = array<i32>} : memref<64x128xbf16, #tpu.memory_space<vmem>>, vector<64x128xbf16>,
    %5 = vector.shape_cast %2 : vector<64x128xf32> to vector<8x8x128xf32>
    %cst_5 = arith.constant dense<0.000000e+00> : vector<8x128xf32>
    %6 = vector.multi_reduction <add>, %5, %cst_5 [0] : vector<8x8x128xf32> to vector<8x128xf32>
    %c0_6 = arith.constant 0 : index
    %c0_7 = arith.constant 0 : index
    %7 = vector.load %arg5[%c0_6, %c0_7] : memref<8x128xf32, #tpu.memory_space<vmem>>, vector<8x128xf32>
    tpu.vector_store %arg5[%c0_6, %c0_7], %6 {strides = array<i32>} : memref<8x128xf32, #tpu.memory_space<vmem>>, vector<8x128xf32>,
    %8 = arith.mulf %5, %5 : vector<8x8x128xf32>
    %cst_8 = arith.constant dense<0.000000e+00> : vector<8x128xf32>
    %9 = vector.multi_reduction <add>, %8, %cst_8 [0] : vector<8x8x128xf32> to vector<8x128xf32>
    %c0_9 = arith.constant 0 : index
    %c0_10 = arith.constant 0 : index
    %10 = vector.load %arg6[%c0_9, %c0_10] : memref<8x128xf32, #tpu.memory_space<vmem>>, vector<8x128xf32>
    tpu.vector_store %arg6[%c0_9, %c0_10], %9 {strides = array<i32>} : memref<8x128xf32, #tpu.memory_space<vmem>>, vector<8x128xf32>,
    return
  }
  func.func @transform_0(%arg0: i32, %arg1: i32) -> (i32, i32) {
    %c0_i32 = arith.constant 0 : i32
    %c0_i32_0 = arith.constant 0 : i32
    return %arg0, %c0_i32 : i32, i32
  }
  func.func @transform_1(%arg0: i32, %arg1: i32) -> (i32, i32) {
    %c0_i32 = arith.constant 0 : i32
    %c0_i32_0 = arith.constant 0 : i32
    return %c0_i32, %arg1 : i32, i32
  }
  func.func @transform_2(%arg0: i32, %arg1: i32) -> (i32, i32) {
    %c0_i32 = arith.constant 0 : i32
    return %arg0, %arg1 : i32, i32
  }
  func.func @transform_3(%arg0: i32, %arg1: i32) -> (i32, i32) {
    %c0_i32 = arith.constant 0 : i32
    return %arg0, %arg1 : i32, i32
  }
  func.func @transform_4(%arg0: i32, %arg1: i32) -> (i32, i32) {
    %c0_i32 = arith.constant 0 : i32
    return %arg0, %arg1 : i32, i32
  }
}

module attributes {stable_mosaic.version = 11 : i64} {
  func.func @_gemm_bn_stats_kernel(%arg0: i32, %arg1: i32, %arg2: memref<256x256xbf16, #tpu.memory_space<vmem>>, %arg3: memref<256x128xbf16, #tpu.memory_space<vmem>>, %arg4: memref<256x128xbf16, #tpu.memory_space<vmem>>, %arg5: memref<8x128xf32, #tpu.memory_space<vmem>>, %arg6: memref<8x128xf32, #tpu.memory_space<vmem>>) attributes {dimension_semantics = [#tpu.dimension_semantics<parallel>, #tpu.dimension_semantics<parallel>], iteration_bounds = array<i64: 2, 1>, scalar_prefetch = 0 : i64, scratch_operands = 0 : i64, tpu.core_type = #tpu.core_type<tc>, window_params = [{transform_indices = @transform_0, window_bounds = array<i64: 256, 256>}, {transform_indices = @transform_1, window_bounds = array<i64: 256, 128>}, {transform_indices = @transform_2, window_bounds = array<i64: 256, 128>}, {transform_indices = @transform_3, window_bounds = array<i64: 8, 128>}, {transform_indices = @transform_4, window_bounds = array<i64: 8, 128>}]} {
    %c0 = arith.constant 0 : index
    %c0_0 = arith.constant 0 : index
    %0 = vector.load %arg2[%c0, %c0_0] : memref<256x256xbf16, #tpu.memory_space<vmem>>, vector<256x256xbf16>
    %c0_1 = arith.constant 0 : index
    %c0_2 = arith.constant 0 : index
    %1 = vector.load %arg3[%c0_1, %c0_2] : memref<256x128xbf16, #tpu.memory_space<vmem>>, vector<256x128xbf16>
    %cst = arith.constant dense<0.000000e+00> : vector<256x128xf32>
    %2 = tpu.matmul %0, %1, %cst {dimension_numbers = #tpu.dot_dimension_numbers<[1], [0], [0], [1], [0, 0, 1, 1], [], []>} : vector<256x256xbf16>, vector<256x128xbf16>, vector<256x128xf32> -> vector<256x128xf32>
    %3 = arith.truncf %2 : vector<256x128xf32> to vector<256x128xbf16>
    %c0_3 = arith.constant 0 : index
    %c0_4 = arith.constant 0 : index
    %4 = vector.load %arg4[%c0_3, %c0_4] : memref<256x128xbf16, #tpu.memory_space<vmem>>, vector<256x128xbf16>
    tpu.vector_store %arg4[%c0_3, %c0_4], %3 {strides = array<i32>} : memref<256x128xbf16, #tpu.memory_space<vmem>>, vector<256x128xbf16>,
    %5 = vector.shape_cast %2 : vector<256x128xf32> to vector<32x8x128xf32>
    %cst_5 = arith.constant dense<0.000000e+00> : vector<8x128xf32>
    %6 = vector.multi_reduction <add>, %5, %cst_5 [0] : vector<32x8x128xf32> to vector<8x128xf32>
    %c0_6 = arith.constant 0 : index
    %c0_7 = arith.constant 0 : index
    %7 = vector.load %arg5[%c0_6, %c0_7] : memref<8x128xf32, #tpu.memory_space<vmem>>, vector<8x128xf32>
    tpu.vector_store %arg5[%c0_6, %c0_7], %6 {strides = array<i32>} : memref<8x128xf32, #tpu.memory_space<vmem>>, vector<8x128xf32>,
    %8 = arith.mulf %5, %5 : vector<32x8x128xf32>
    %cst_8 = arith.constant dense<0.000000e+00> : vector<8x128xf32>
    %9 = vector.multi_reduction <add>, %8, %cst_8 [0] : vector<32x8x128xf32> to vector<8x128xf32>
    %c0_9 = arith.constant 0 : index
    %c0_10 = arith.constant 0 : index
    %10 = vector.load %arg6[%c0_9, %c0_10] : memref<8x128xf32, #tpu.memory_space<vmem>>, vector<8x128xf32>
    tpu.vector_store %arg6[%c0_9, %c0_10], %9 {strides = array<i32>} : memref<8x128xf32, #tpu.memory_space<vmem>>, vector<8x128xf32>,
    return
  }
  func.func @transform_0(%arg0: i32, %arg1: i32) -> (i32, i32) {
    %c0_i32 = arith.constant 0 : i32
    %c0_i32_0 = arith.constant 0 : i32
    return %arg0, %c0_i32 : i32, i32
  }
  func.func @transform_1(%arg0: i32, %arg1: i32) -> (i32, i32) {
    %c0_i32 = arith.constant 0 : i32
    %c0_i32_0 = arith.constant 0 : i32
    return %c0_i32, %arg1 : i32, i32
  }
  func.func @transform_2(%arg0: i32, %arg1: i32) -> (i32, i32) {
    %c0_i32 = arith.constant 0 : i32
    return %arg0, %arg1 : i32, i32
  }
  func.func @transform_3(%arg0: i32, %arg1: i32) -> (i32, i32) {
    %c0_i32 = arith.constant 0 : i32
    return %arg0, %arg1 : i32, i32
  }
  func.func @transform_4(%arg0: i32, %arg1: i32) -> (i32, i32) {
    %c0_i32 = arith.constant 0 : i32
    return %arg0, %arg1 : i32, i32
  }
}

module attributes {stable_mosaic.version = 11 : i64} {
  func.func @_bn_relu_kernel(%arg0: i32, %arg1: memref<256x128xbf16, #tpu.memory_space<vmem>>, %arg2: memref<1x128xf32, #tpu.memory_space<vmem>>, %arg3: memref<1x128xf32, #tpu.memory_space<vmem>>, %arg4: memref<256x128xbf16, #tpu.memory_space<vmem>>) attributes {dimension_semantics = [#tpu.dimension_semantics<parallel>], iteration_bounds = array<i64: 2>, scalar_prefetch = 0 : i64, scratch_operands = 0 : i64, tpu.core_type = #tpu.core_type<tc>, window_params = [{transform_indices = @transform_0, window_bounds = array<i64: 256, 128>}, {pipeline_mode = #tpu.pipeline_mode<synchronous>, transform_indices = @transform_1, window_bounds = array<i64: 1, 128>}, {pipeline_mode = #tpu.pipeline_mode<synchronous>, transform_indices = @transform_2, window_bounds = array<i64: 1, 128>}, {transform_indices = @transform_3, window_bounds = array<i64: 256, 128>}]} {
    %c0 = arith.constant 0 : index
    %c0_0 = arith.constant 0 : index
    %0 = vector.load %arg1[%c0, %c0_0] : memref<256x128xbf16, #tpu.memory_space<vmem>>, vector<256x128xbf16>
    %1 = arith.extf %0 : vector<256x128xbf16> to vector<256x128xf32>
    %c0_1 = arith.constant 0 : index
    %c0_2 = arith.constant 0 : index
    %2 = vector.load %arg2[%c0_1, %c0_2] : memref<1x128xf32, #tpu.memory_space<vmem>>, vector<1x128xf32>
    %3 = vector.broadcast %2 : vector<1x128xf32> to vector<256x128xf32>
    %4 = arith.mulf %1, %3 : vector<256x128xf32>
    %c0_3 = arith.constant 0 : index
    %c0_4 = arith.constant 0 : index
    %5 = vector.load %arg3[%c0_3, %c0_4] : memref<1x128xf32, #tpu.memory_space<vmem>>, vector<1x128xf32>
    %6 = vector.broadcast %5 : vector<1x128xf32> to vector<256x128xf32>
    %7 = arith.addf %4, %6 : vector<256x128xf32>
    %cst = arith.constant 0.000000e+00 : f32
    %8 = vector.broadcast %cst : f32 to vector<256x128xf32>
    %9 = arith.maximumf %7, %8 : vector<256x128xf32>
    %10 = arith.truncf %9 : vector<256x128xf32> to vector<256x128xbf16>
    %c0_5 = arith.constant 0 : index
    %c0_6 = arith.constant 0 : index
    %11 = vector.load %arg4[%c0_5, %c0_6] : memref<256x128xbf16, #tpu.memory_space<vmem>>, vector<256x128xbf16>
    tpu.vector_store %arg4[%c0_5, %c0_6], %10 {strides = array<i32>} : memref<256x128xbf16, #tpu.memory_space<vmem>>, vector<256x128xbf16>,
    return
  }
  func.func @transform_0(%arg0: i32) -> (i32, i32) {
    %c0_i32 = arith.constant 0 : i32
    %c0_i32_0 = arith.constant 0 : i32
    return %arg0, %c0_i32 : i32, i32
  }
  func.func @transform_1(%arg0: i32) -> (i32, i32) {
    %c0_i32 = arith.constant 0 : i32
    %c0_i32_0 = arith.constant 0 : i32
    %c0_i32_1 = arith.constant 0 : i32
    return %c0_i32, %c0_i32_0 : i32, i32
  }
  func.func @transform_2(%arg0: i32) -> (i32, i32) {
    %c0_i32 = arith.constant 0 : i32
    %c0_i32_0 = arith.constant 0 : i32
    %c0_i32_1 = arith.constant 0 : i32
    return %c0_i32, %c0_i32_0 : i32, i32
  }
  func.func @transform_3(%arg0: i32) -> (i32, i32) {
    %c0_i32 = arith.constant 0 : i32
    %c0_i32_0 = arith.constant 0 : i32
    return %arg0, %c0_i32 : i32, i32
  }
}

module attributes {stable_mosaic.version = 11 : i64} {
  func.func @_gemm_tanh_kernel(%arg0: i32, %arg1: i32, %arg2: memref<512x128xbf16, #tpu.memory_space<vmem>>, %arg3: memref<128x128xbf16, #tpu.memory_space<vmem>>, %arg4: memref<512x128xbf16, #tpu.memory_space<vmem>>) attributes {dimension_semantics = [#tpu.dimension_semantics<parallel>, #tpu.dimension_semantics<parallel>], iteration_bounds = array<i64: 4, 1>, scalar_prefetch = 0 : i64, scratch_operands = 0 : i64, tpu.core_type = #tpu.core_type<tc>, window_params = [{transform_indices = @transform_0, window_bounds = array<i64: 512, 128>}, {transform_indices = @transform_1, window_bounds = array<i64: 128, 128>}, {transform_indices = @transform_2, window_bounds = array<i64: 512, 128>}]} {
    %c0 = arith.constant 0 : index
    %c0_0 = arith.constant 0 : index
    %0 = vector.load %arg2[%c0, %c0_0] : memref<512x128xbf16, #tpu.memory_space<vmem>>, vector<512x128xbf16>
    %c0_1 = arith.constant 0 : index
    %c0_2 = arith.constant 0 : index
    %1 = vector.load %arg3[%c0_1, %c0_2] : memref<128x128xbf16, #tpu.memory_space<vmem>>, vector<128x128xbf16>
    %cst = arith.constant dense<0.000000e+00> : vector<512x128xf32>
    %2 = tpu.matmul %0, %1, %cst {dimension_numbers = #tpu.dot_dimension_numbers<[1], [0], [0], [1], [0, 0, 1, 1], [], []>} : vector<512x128xbf16>, vector<128x128xbf16>, vector<512x128xf32> -> vector<512x128xf32>
    %3 = math.tanh %2 : vector<512x128xf32>
    %4 = arith.truncf %3 : vector<512x128xf32> to vector<512x128xbf16>
    %c0_3 = arith.constant 0 : index
    %c0_4 = arith.constant 0 : index
    %5 = vector.load %arg4[%c0_3, %c0_4] : memref<512x128xbf16, #tpu.memory_space<vmem>>, vector<512x128xbf16>
    tpu.vector_store %arg4[%c0_3, %c0_4], %4 {strides = array<i32>} : memref<512x128xbf16, #tpu.memory_space<vmem>>, vector<512x128xbf16>,
    return
  }
  func.func @transform_0(%arg0: i32, %arg1: i32) -> (i32, i32) {
    %c0_i32 = arith.constant 0 : i32
    %c0_i32_0 = arith.constant 0 : i32
    return %arg0, %c0_i32 : i32, i32
  }
  func.func @transform_1(%arg0: i32, %arg1: i32) -> (i32, i32) {
    %c0_i32 = arith.constant 0 : i32
    %c0_i32_0 = arith.constant 0 : i32
    return %c0_i32, %arg1 : i32, i32
  }
  func.func @transform_2(%arg0: i32, %arg1: i32) -> (i32, i32) {
    %c0_i32 = arith.constant 0 : i32
    return %arg0, %arg1 : i32, i32
  }
}

</mosaic_0001>

<bundles_post_ra>
// kernel: _lambda_.10
= control target key start
LH: loop header
LB: loop body
LE: loop exit
PB: predicated region body
PF: predicated region fallthrough
CT: control target
= control target key end

     0   :  { %s431_s12 = smov 0   ;;  %s461_s0 = inlined_call_operand.vmem [shape: bf16[128,128], index: 0, kind: input, shape index: {}]   ;;  %s462_s1 = inlined_call_operand.vmem [shape: f32[1,128], index: 1, kind: input, shape index: {}]   ;;  %s463_s2 = inlined_call_operand.vmem [shape: f32[1,128], index: 2, kind: input, shape index: {}]   ;;  %s464_s3 = inlined_call_operand.vmem [shape: bf16[128,128], index: 3, kind: output, shape index: {}]  }
   0x1 LB: > { %s324_s13 = sadd.s32 4294967295, %s409_s12   ;;  %p328_p0 = scmp.ge.s32.totalorder %s409_s12, 1  ;;  %s409_s12 = sphi %s431_s12, %s13_s12  }
   0x2   : > { %p138_p1 = scmp.lt.s32.totalorder %s409_s12, 3 }
   0x4   : > { %p139_p2 = pnand %p328_p0, %p138_p1 }
   0x5   : > { %s329_s14 = sshll.u32 (!%p139_p2), %s324_s13, 3 }
   0x6   : > { %142 = sbr.rel (%p139_p2) target bundleno = 27 (0x1b), region = 32  ;;  %p163_p3 = scmp.lt.s32.totalorder (!%p139_p2), %s329_s14, 15 }
   0xb   : > { %s466_s14 = smov (!%p163_p3, %s329_s14), 15  ;;  %v333_v0 = vld [vmem:[%s462_s1] ss:$0 sm:$0xff] }
   0xc   : > { %s330_s15 = sshll.u32 %s466_s14, 2  ;;  %v334_v9 = vld [vmem:[%s463_s2] ss:$0 sm:$0xff] }
   0xd   : > { %s166_s18 = scalar_lea.vmem %s461_s0, %s330_s15  ;;  %s172_s25 = scalar_lea.vmem %s464_s3, %s330_s15 }
   0xe   : > { %v354_v1 = vld [vmem:[%s166_s18] sm:$0xff]   ;;  %v389_v2 = vld [vmem:[%s166_s18 + $0x8] sm:$0xff]   ;;  %v390_v3 = vld [vmem:[%s166_s18 + $0x10] sm:$0xff]  }
   0xf   : > { %v355_v4 = vunpack.c.l.bf16 %v354_v1  ;;  %v356_v5 = vunpack.c.h.bf16 %v354_v1  ;;  %v359_v6 = vunpack.c.l.bf16 %v389_v2  ;;  %v360_v7 = vunpack.c.h.bf16 %v389_v2  ;;  %v391_v8 = vld [vmem:[%s166_s18 + $0x18] sm:$0xff]  }
  0x10   : > { %v363_v10 = vunpack.c.l.bf16 %v390_v3  ;;  %v364_v11 = vunpack.c.h.bf16 %v390_v3  ;;  %v367_v12 = vunpack.c.l.bf16 %v391_v8  ;;  %v368_v13 = vunpack.c.h.bf16 %v391_v8 }
  0x11   : > { %v197_v14 = vmul.f32 %v355_v4, %v333_v0  ;;  %v198_v15 = vmul.f32 %v356_v5, %v333_v0  ;;  %v199_v16 = vmul.f32 %v359_v6, %v333_v0  ;;  %v200_v17 = vmul.f32 %v360_v7, %v333_v0 }
  0x12   : > { %v201_v18 = vmul.f32 %v363_v10, %v333_v0  ;;  %v202_v19 = vmul.f32 %v364_v11, %v333_v0  ;;  %v203_v20 = vmul.f32 %v367_v12, %v333_v0  ;;  %v204_v21 = vmul.f32 %v368_v13, %v333_v0 }
  0x13   : > { %v212_v22 = vadd.f32 %v334_v9, %v197_v14  ;;  %v213_v23 = vadd.f32 %v334_v9, %v198_v15  ;;  %v214_v24 = vadd.f32 %v334_v9, %v199_v16  ;;  %v215_v25 = vadd.f32 %v334_v9, %v200_v17 }
  0x14   : > { %v216_v26 = vadd.f32 %v334_v9, %v201_v18  ;;  %v217_v27 = vadd.f32 %v334_v9, %v202_v19  ;;  %v218_v28 = vadd.f32 %v334_v9, %v203_v20  ;;  %v219_v29 = vadd.f32 %v334_v9, %v204_v21 }
  0x15   : > { %v220_v30 = vmax.f32 %v212_v22, 0.0  ;;  %v221_v31 = vmax.f32 %v213_v23, 0.0  ;;  %v222_v32 = vmax.f32 %v214_v24, 0.0  ;;  %v223_v33 = vmax.f32 %v215_v25, 0.0 }
  0x16   : > { %v224_v34 = vmax.f32 %v216_v26, 0.0  ;;  %v225_v35 = vmax.f32 %v217_v27, 0.0  ;;  %v226_v36 = vmax.f32 %v218_v28, 0.0  ;;  %v227_v37 = vmax.f32 %v219_v29, 0.0 }
  0x17   : > { %v372_v38 = vpack.c.bf16 %v221_v31, %v220_v30  ;;  %v377_v39 = vpack.c.bf16 %v223_v33, %v222_v32 }
  0x18   : > { %v382_v40 = vpack.c.bf16 %v225_v35, %v224_v34  ;;  %v387_v41 = vpack.c.bf16 %v227_v37, %v226_v36 }
  0x19   : > { %373 = vst [vmem:[%s172_s25] sm:$0xff] %v372_v38   ;;  %392 = vst [vmem:[%s172_s25 + $0x8] sm:$0xff] %v377_v39  }
  0x1a   : > { %393 = vst [vmem:[%s172_s25 + $0x10] sm:$0xff] %v382_v40   ;;  %394 = vst [vmem:[%s172_s25 + $0x18] sm:$0xff] %v387_v41  }
  0x1b PF: > { %s13_s12 = sadd.s32 1, %s409_s12  }
  0x1c   : > { %p10_p4 = scmp.ge.s32.totalorder %s13_s12, 4  }
  0x1e   :  { %12 = sbr.rel (!%p10_p4) target bundleno = 1 (0x1), region = 62 }

// kernel: _lambda_.9
= control target key start
LH: loop header
LB: loop body
LE: loop exit
PB: predicated region body
PF: predicated region fallthrough
CT: control target
= control target key end

     0   :  { %s992_s15 = smov 0   ;;  %s994_s16 = smov 0   ;;  %s1104_s0 = inlined_call_operand.vmem [shape: bf16[128,256], index: 0, kind: input, shape index: {}]   ;;  %s1105_s1 = inlined_call_operand.vmem [shape: bf16[256,128], index: 1, kind: input, shape index: {}]   ;;  %s1106_s2 = inlined_call_operand.vmem [shape: bf16[128,128], index: 2, kind: output, shape index: {0}]   ;;  %s1107_s3 = inlined_call_operand.vmem [shape: f32[16,128], index: 3, kind: output, shape index: {1}]   ;;  %s1108_s4 = inlined_call_operand.vmem [shape: f32[16,128], index: 4, kind: output, shape index: {2}]  }
   0x1   :  { %s996_s17 = smov 0  }
   0x2 LB: > { %s27_s18 = sadd.s32 1, %s961_s16  ;;  %p761_p0 = scmp.ge.s32.totalorder %s965_s17, 1  ;;  %s965_s17 = sphi %s996_s17, %s15_s17   ;;  %s961_s16 = sphi %s994_s16, %s1110_s16   ;;  %s957_s15 = sphi %s992_s15, %s1109_s15  }
   0x3   : > { %p29_p1 = scmp.ge.s32.totalorder %s27_s18, 2  ;;  %p196_p2 = scmp.lt.s32.totalorder %s965_s17, 3 }
   0x5   : > { %s1112_s18 = smov (%p29_p1, %s27_s18), 0  ;;  %p197_p3 = pnand %p761_p0, %p196_p2 }
   0x6   : > { %s762_s21 = sshll.u32 (!%p197_p3), %s957_s15, 3  ;;  %p264_p5 = scmp.lt.s32.totalorder (!%p197_p3), %s957_s15, 1 }
   0x7   : > { %200 = sbr.rel (%p197_p3) target bundleno = 267 (0x10b), region = 28  ;;  %p245_p4 = scmp.lt.s32.totalorder (!%p197_p3), %s762_s21, 15 }
   0xc   : > { %v915_v0 = vld [vmem:[%s1105_s1 + $0x78] sm:$0xff]   ;;  %v917_v2 = vld [vmem:[%s1105_s1 + $0x70] sm:$0xff]   ;;  %v919_v4 = vld [vmem:[%s1105_s1 + $0x68] sm:$0xff]   ;;  %s1114_s21 = smov (!%p245_p4, %s762_s21), 15  ;;  %s1116_s15 = smov (!%p264_p5, %s957_s15), 1 }
   0xd   : > { %v916_v1 = vld [vmem:[%s1105_s1 + $0x38] sm:$0xff]   ;;  %835 = vmatprep.subr.bf16.mxu0 %v915_v0  ;;  %875 = vmatprep.subr.bf16.mxu1 %v915_v0  ;;  %v918_v3 = vld [vmem:[%s1105_s1 + $0x30] sm:$0xff]   ;;  %v920_v5 = vld [vmem:[%s1105_s1 + $0x28] sm:$0xff]   ;;  %s803_s10 = sshll.u32 %s1114_s21, 3  ;;  %s766_s9 = sshll.u32 %s1114_s21, 2 }
   0xe   : > { %836 = vmatpush3.bf16.msra.mxu0 %v916_v1  ;;  %883 = vmatpush3.bf16.msra.mxu1 %v916_v1  ;;  %v921_v6 = vld [vmem:[%s1105_s1 + $0x60] sm:$0xff]   ;;  %v923_v8 = vld [vmem:[%s1105_s1 + $0x58] sm:$0xff]   ;;  %s1046_s19 = scalar_lea.vmem %s1104_s0, %s803_s10  ;;  %v925_v10 = vld [vmem:[%s1105_s1 + $0x50] sm:$0xff]   ;;  %s1081_s12 = scalar_lea.vmem %s1106_s2, %s766_s9 }
   0xf   : > { %837 = vmatprep.subr.bf16.mxu0 %v917_v2  ;;  %876 = vmatprep.subr.bf16.mxu1 %v917_v2  ;;  %v922_v7 = vld [vmem:[%s1105_s1 + $0x20] sm:$0xff]   ;;  %v924_v9 = vld [vmem:[%s1105_s1 + $0x18] sm:$0xff]   ;;  %v926_v13 = vld [vmem:[%s1105_s1 + $0x10] sm:$0xff]   ;;  %s767_s21 = sshll.u32 %s1116_s15, 3 }
  0x10   : > { %v933_v11 = vld [vmem:[%s1046_s19 + $0x4] ss:$8 sps:$4 sm:$0xff]   ;;  %v931_v18 = vld [vmem:[%s1046_s19] ss:$8 sps:$4 sm:$0xff]   ;;  %v937_v20 = vld [vmem:[%s1046_s19 + $0x14] ss:$8 sps:$4 sm:$0xff]   ;;  %s277_s23 = scalar_lea.vmem %s1108_s4, %s767_s21 }
  0x11   : > { %v936_v12 = vld [vmem:[%s1046_s19 + $0x24] ss:$8 sps:$4 sm:$0xff]   ;;  %487 = vmatprep.mubr.bf16.mxu0 %v933_v11  ;;  %v934_v19 = vld [vmem:[%s1046_s19 + $0x20] ss:$8 sps:$4 sm:$0xff]   ;;  %v940_v21 = vld [vmem:[%s1046_s19 + $0x34] ss:$8 sps:$4 sm:$0xff]  }
  0x12   : > { %838 = vmatpush3.bf16.msra.mxu0 %v918_v3  ;;  %884 = vmatpush3.bf16.msra.mxu1 %v918_v3  ;;  %v927_v14 = vld [vmem:[%s1105_s1 + $0x48] sm:$0xff]   ;;  %v929_v16 = vld [vmem:[%s1105_s1 + $0x40] sm:$0xff]   ;;  %v939_v22 = vld [vmem:[%s1046_s19 + $0x10] ss:$8 sps:$4 sm:$0xff]  }
  0x13   : > { %839 = vmatprep.subr.bf16.mxu0 %v919_v4  ;;  %877 = vmatprep.subr.bf16.mxu1 %v919_v4  ;;  %v928_v15 = vld [vmem:[%s1105_s1 + $0x8] sm:$0xff]   ;;  %v930_v17 = vld [vmem:[%s1105_s1] sm:$0xff]   ;;  %v942_v23 = vld [vmem:[%s1046_s19 + $0x30] ss:$8 sps:$4 sm:$0xff]   ;;  %s270_s19 = scalar_lea.vmem %s1107_s3, %s767_s21 }
  0x14   : > { %503 = vmatprep.mubr.bf16.mxu1 %v936_v12 }
  0x16   : > { %840 = vmatpush3.bf16.msra.mxu0 %v920_v5  ;;  %885 = vmatpush3.bf16.msra.mxu1 %v920_v5 }
  0x17   : > { %841 = vmatprep.subr.bf16.mxu0 %v921_v6  ;;  %878 = vmatprep.subr.bf16.mxu1 %v921_v6 }
  0x1a   : > { %842 = vmatpush3.bf16.msra.mxu0 %v922_v7  ;;  %886 = vmatpush3.bf16.msra.mxu1 %v922_v7 }
  0x1b   : > { %843 = vmatprep.subr.bf16.mxu0 %v923_v8  ;;  %879 = vmatprep.subr.bf16.mxu1 %v923_v8 }
  0x1e   : > { %844 = vmatpush3.bf16.msra.mxu0 %v924_v9  ;;  %887 = vmatpush3.bf16.msra.mxu1 %v924_v9 }
  0x1f   : > { %845 = vmatprep.subr.bf16.mxu0 %v925_v10  ;;  %880 = vmatprep.subr.bf16.mxu1 %v925_v10 }
  0x22   : > { %846 = vmatpush3.bf16.msra.mxu0 %v926_v13  ;;  %888 = vmatpush3.bf16.msra.mxu1 %v926_v13 }
  0x23   : > { %847 = vmatprep.subr.bf16.mxu0 %v927_v14  ;;  %881 = vmatprep.subr.bf16.mxu1 %v927_v14 }
  0x26   : > { %848 = vmatpush3.bf16.msra.mxu0 %v928_v15  ;;  %889 = vmatpush3.bf16.msra.mxu1 %v928_v15 }
  0x27   : > { %849 = vmatprep.subr.bf16.mxu0 %v929_v16  ;;  %882 = vmatprep.subr.bf16.mxu1 %v929_v16 }
  0x2a   : > { %850 = vmatpush3.bf16.msra.mxu0 %v930_v17  ;;  %890 = vmatpush3.bf16.msra.mxu1 %v930_v17 }
  0x2d   : > { %488 = vmatmul.mubr.bf16.vlgmr.msra.gmra.mxu0 %v931_v18  ;;  %504 = vmatmul.mubr.bf16.vlgmr.msra.gmra.mxu1 %v934_v19 }
  0x2e   : > { %495 = vmatprep.mubr.bf16.mxu0 %v937_v20  ;;  %511 = vmatprep.mubr.bf16.mxu1 %v940_v21 }
  0x35   : > { %496 = vmatmul.mubr.bf16.gmra.mxu0 %v939_v22  ;;  %512 = vmatmul.mubr.bf16.gmra.mxu1 %v942_v23 }
  0xed   : > { %v851_v24 = vpop.f32.mrf.mxu0  ;;  %v863_v25 = vpop.f32.mrf.mxu1 }
  0xef   : > { %v852_v26 = vpop.f32.mrf.mxu0  ;;  %v864_v27 = vpop.f32.mrf.mxu1 }
  0xf0   : > { %v865_v30 = vadd.f32 %v864_v27, %v863_v25  ;;  %v853_v33 = vadd.f32 %v852_v26, %v851_v24 }
  0xf1   : > { %v854_v28 = vpop.f32.mrf.mxu0  ;;  %v866_v29 = vpop.f32.mrf.mxu1 }
  0xf2   : > { %v568_v44 = vmul.f32 %v853_v33, %v853_v33  ;;  %v572_v61 = vmul.f32 %v865_v30, %v865_v30 }
  0xf3   : > { %v855_v31 = vpop.f32.mrf.mxu0  ;;  %v867_v32 = vpop.f32.mrf.mxu1 }
  0xf4   : > { %v856_v34 = vadd.f32 %v855_v31, %v854_v28  ;;  %v868_v35 = vadd.f32 %v867_v32, %v866_v29 }
  0xf5   : > { %v857_v36 = vpop.f32.mrf.mxu0  ;;  %v869_v37 = vpop.f32.mrf.mxu1 }
  0xf6   : > { %v815_v38 = vpack.c.bf16 %v856_v34, %v853_v33  ;;  %v825_v39 = vpack.c.bf16 %v868_v35, %v865_v30  ;;  %v569_v40 = vmul.f32 %v856_v34, %v856_v34  ;;  %v560_v47 = vadd.f32 %v856_v34, %v853_v33 }
  0xf7   : > { %v858_v41 = vpop.f32.mrf.mxu0  ;;  %v870_v42 = vpop.f32.mrf.mxu1  ;;  %v573_v0 = vmul.f32 %v868_v35, %v868_v35 }
  0xf8   : > { %816 = vst [vmem:[%s1081_s12] sm:$0xff] %v815_v38   ;;  %833 = vst [vmem:[%s1081_s12 + $0x10] sm:$0xff] %v825_v39   ;;  %v859_v43 = vadd.f32 %v858_v41, %v857_v36  ;;  %v871_v49 = vadd.f32 %v870_v42, %v869_v37  ;;  %v576_v50 = vadd.f32 %v569_v40, %v568_v44 }
  0xf9   : > { %v860_v45 = vpop.f32.mrf.mxu0  ;;  %v872_v46 = vpop.f32.mrf.mxu1 }
  0xfa   : > { %v570_v48 = vmul.f32 %v859_v43, %v859_v43  ;;  %v561_v53 = vadd.f32 %v859_v43, %v560_v47  ;;  %v574_v3 = vmul.f32 %v871_v49, %v871_v49 }
  0xfb   : > { %v861_v51 = vpop.f32.mrf.mxu0  ;;  %v873_v52 = vpop.f32.mrf.mxu1 }
  0xfc   : > { %v862_v54 = vadd.f32 %v861_v51, %v860_v45  ;;  %v874_v55 = vadd.f32 %v873_v52, %v872_v46  ;;  %v577_v56 = vadd.f32 %v576_v50, %v570_v48 }
  0xfe   : > { %v820_v57 = vpack.c.bf16 %v862_v54, %v859_v43  ;;  %v562_v58 = vadd.f32 %v862_v54, %v561_v53  ;;  %v571_v59 = vmul.f32 %v862_v54, %v862_v54  ;;  %v830_v60 = vpack.c.bf16 %v874_v55, %v871_v49 }
  0xff   : > { %v575_v7 = vmul.f32 %v874_v55, %v874_v55 }
 0x100   : > { %832 = vst [vmem:[%s1081_s12 + $0x8] sm:$0xff] %v820_v57   ;;  %v563_v62 = vadd.f32 %v865_v30, %v562_v58  ;;  %v578_v63 = vadd.f32 %v577_v56, %v571_v59  ;;  %834 = vst [vmem:[%s1081_s12 + $0x18] sm:$0xff] %v830_v60  }
 0x102   : > { %v579_v1 = vadd.f32 %v578_v63, %v572_v61  ;;  %v564_v2 = vadd.f32 %v868_v35, %v563_v62 }
 0x104   : > { %v565_v4 = vadd.f32 %v871_v49, %v564_v2  ;;  %v580_v5 = vadd.f32 %v579_v1, %v573_v0 }
 0x106   : > { %v566_v6 = vadd.f32 %v874_v55, %v565_v4  ;;  %v581_v8 = vadd.f32 %v580_v5, %v574_v3 }
 0x108   : > { %567 = vst [vmem:[%s270_s19] sm:$0xff] %v566_v6  ;;  %v582_v9 = vadd.f32 %v581_v8, %v575_v7 }
 0x10a   : > { %583 = vst [vmem:[%s277_s23] sm:$0xff] %v582_v9 }
 0x10b PF: > { %s15_s17 = sadd.s32 1, %s965_s17   ;;  %s1109_s15 = smov %s961_s16 }
 0x10c   : > { %p12_p6 = scmp.ge.s32.totalorder %s15_s17, 4   ;;  %s1110_s16 = smov %s1112_s18 }
 0x10e   :  { %14 = sbr.rel (!%p12_p6) target bundleno = 2 (0x2), region = 85 }

// kernel: tile.38
= control target key start
LH: loop header
LB: loop body
LE: loop exit
PB: predicated region body
PF: predicated region fallthrough
CT: control target
= control target key end

     0   :  { %s22_s0 = inlined_call_operand.vmem [shape: f32[32], index: 0, kind: input, shape index: {}]   ;;  %s23_s1 = inlined_call_operand.vmem [shape: f32[4,32], index: 1, kind: output, shape index: {}]  }
   0x1   :  { %v4_v0 = vld [vmem:[%s22_s0] ss:$0 sm:$0xff] }
   0x2   :  { %5 = vst [vmem:[%s23_s1] sm:$0xf] %v4_v0 }

// kernel: _lambda_.11
= control target key start
LH: loop header
LB: loop body
LE: loop exit
PB: predicated region body
PF: predicated region fallthrough
CT: control target
= control target key end

     0   :  { %s1545_s15 = smov 0   ;;  %s1547_s16 = smov 0   ;;  %s1735_s0 = inlined_call_operand.vmem [shape: bf16[128,640], index: 0, kind: input, shape index: {}]   ;;  %s1736_s1 = inlined_call_operand.vmem [shape: bf16[640,128], index: 1, kind: input, shape index: {}]   ;;  %s1737_s2 = inlined_call_operand.vmem [shape: bf16[128,128], index: 2, kind: output, shape index: {0}]   ;;  %s1738_s3 = inlined_call_operand.vmem [shape: f32[16,128], index: 3, kind: output, shape index: {1}]   ;;  %s1739_s4 = inlined_call_operand.vmem [shape: f32[16,128], index: 4, kind: output, shape index: {2}]  }
   0x1   :  { %s1549_s17 = smov 0  }
   0x2 LB: > { %s27_s18 = sadd.s32 1, %s1514_s16  ;;  %p1163_p0 = scmp.ge.s32.totalorder %s1518_s17, 1  ;;  %s1518_s17 = sphi %s1549_s17, %s15_s17   ;;  %s1514_s16 = sphi %s1547_s16, %s1741_s16   ;;  %s1510_s15 = sphi %s1545_s15, %s1740_s15  }
   0x3   : > { %p29_p1 = scmp.ge.s32.totalorder %s27_s18, 2  ;;  %p196_p2 = scmp.lt.s32.totalorder %s1518_s17, 3 }
   0x5   : > { %s1743_s18 = smov (%p29_p1, %s27_s18), 0  ;;  %p197_p3 = pnand %p1163_p0, %p196_p2 }
   0x6   : > { %s1164_s27 = sshll.u32 (!%p197_p3), %s1510_s15, 3  ;;  %p264_p5 = scmp.lt.s32.totalorder (!%p197_p3), %s1510_s15, 1 }
   0x7   : > { %200 = sbr.rel (%p197_p3) target bundleno = 297 (0x129), region = 28  ;;  %p245_p4 = scmp.lt.s32.totalorder (!%p197_p3), %s1164_s27, 15 }
   0xc   : > { %v1428_v0 = vld [vmem:[%s1736_s1 + $0x78] sm:$0xff]   ;;  %v1432_v4 = vld [vmem:[%s1736_s1 + $0x70] sm:$0xff]   ;;  %v1436_v8 = vld [vmem:[%s1736_s1 + $0x68] sm:$0xff]   ;;  %s1745_s27 = smov (!%p245_p4, %s1164_s27), 15  ;;  %s1747_s15 = smov (!%p264_p5, %s1510_s15), 1 }
   0xd   : > { %v1429_v1 = vld [vmem:[%s1736_s1 + $0xf8] sm:$0xff]   ;;  %1271 = vmatprep.subr.bf16.mxu0 %v1428_v0  ;;  %v1433_v5 = vld [vmem:[%s1736_s1 + $0xf0] sm:$0xff]   ;;  %v1437_v9 = vld [vmem:[%s1736_s1 + $0xe8] sm:$0xff]   ;;  %s1403_s29 = smul.u32 20, %s1745_s27 }
   0xe   : > { %v1430_v2 = vld [vmem:[%s1736_s1 + $0x38] sm:$0xff]   ;;  %1311 = vmatprep.subr.bf16.mxu1 %v1429_v1  ;;  %v1434_v6 = vld [vmem:[%s1736_s1 + $0x30] sm:$0xff]   ;;  %v1438_v10 = vld [vmem:[%s1736_s1 + $0x28] sm:$0xff]  }
   0xf   : > { %v1431_v3 = vld [vmem:[%s1736_s1 + $0xb8] sm:$0xff]   ;;  %1272 = vmatpush3.bf16.msra.mxu0 %v1430_v2  ;;  %v1435_v7 = vld [vmem:[%s1736_s1 + $0xb0] sm:$0xff]   ;;  %v1439_v11 = vld [vmem:[%s1736_s1 + $0xa8] sm:$0xff]   ;;  %s1662_s14 = scalar_lea.vmem %s1735_s0, %s1403_s29 }
  0x10   : > { %1312 = vmatpush3.bf16.msra.mxu1 %v1431_v3  ;;  %1273 = vmatprep.subr.bf16.mxu0 %v1432_v4  ;;  %v1440_v12 = vld [vmem:[%s1736_s1 + $0x60] sm:$0xff]   ;;  %v1444_v16 = vld [vmem:[%s1736_s1 + $0x58] sm:$0xff]   ;;  %v1448_v20 = vld [vmem:[%s1736_s1 + $0x50] sm:$0xff]  }
  0x11   : > { %1313 = vmatprep.subr.bf16.mxu1 %v1433_v5  ;;  %v1441_v13 = vld [vmem:[%s1736_s1 + $0xe0] sm:$0xff]   ;;  %v1445_v17 = vld [vmem:[%s1736_s1 + $0xd8] sm:$0xff]   ;;  %v1449_v21 = vld [vmem:[%s1736_s1 + $0xd0] sm:$0xff]  }
  0x12   : > { %v1442_v14 = vld [vmem:[%s1736_s1 + $0x20] sm:$0xff]   ;;  %v1446_v18 = vld [vmem:[%s1736_s1 + $0x18] sm:$0xff]   ;;  %v1450_v22 = vld [vmem:[%s1736_s1 + $0x10] sm:$0xff]  }
  0x13   : > { %1274 = vmatpush3.bf16.msra.mxu0 %v1434_v6  ;;  %v1443_v15 = vld [vmem:[%s1736_s1 + $0xa0] sm:$0xff]   ;;  %v1447_v19 = vld [vmem:[%s1736_s1 + $0x98] sm:$0xff]   ;;  %v1451_v23 = vld [vmem:[%s1736_s1 + $0x90] sm:$0xff]  }
  0x14   : > { %1314 = vmatpush3.bf16.msra.mxu1 %v1435_v7  ;;  %1275 = vmatprep.subr.bf16.mxu0 %v1436_v8  ;;  %v1452_v24 = vld [vmem:[%s1736_s1 + $0x48] sm:$0xff]   ;;  %v1456_v28 = vld [vmem:[%s1736_s1 + $0x40] sm:$0xff]   ;;  %v1466_v36 = vld [vmem:[%s1736_s1 + $0x138] sm:$0xff]  }
  0x15   : > { %1315 = vmatprep.subr.bf16.mxu1 %v1437_v9  ;;  %v1453_v25 = vld [vmem:[%s1736_s1 + $0xc8] sm:$0xff]   ;;  %v1457_v29 = vld [vmem:[%s1736_s1 + $0xc0] sm:$0xff]   ;;  %v1467_v37 = vld [vmem:[%s1736_s1 + $0x130] sm:$0xff]  }
  0x16   : > { %v1454_v26 = vld [vmem:[%s1736_s1 + $0x8] sm:$0xff]   ;;  %v1458_v30 = vld [vmem:[%s1736_s1] sm:$0xff]   ;;  %v1478_v45 = vld [vmem:[%s1662_s14 + $0x5c] ss:$20 sps:$4 sm:$0xff]  }
  0x17   : > { %1276 = vmatpush3.bf16.msra.mxu0 %v1438_v10  ;;  %v1455_v27 = vld [vmem:[%s1736_s1 + $0x88] sm:$0xff]   ;;  %v1459_v31 = vld [vmem:[%s1736_s1 + $0x80] sm:$0xff]   ;;  %v1482_v46 = vld [vmem:[%s1736_s1 + $0x118] sm:$0xff]  }
  0x18   : > { %1316 = vmatpush3.bf16.msra.mxu1 %v1439_v11  ;;  %1277 = vmatprep.subr.bf16.mxu0 %v1440_v12  ;;  %v1460_v32 = vld [vmem:[%s1662_s14] ss:$20 sps:$4 sm:$0xff]   ;;  %v1462_v33 = vld [vmem:[%s1662_s14 + $0x4] ss:$20 sps:$4 sm:$0xff]   ;;  %v1463_v34 = vld [vmem:[%s1662_s14 + $0x8] ss:$20 sps:$4 sm:$0xff]  }
  0x19   : > { %1317 = vmatprep.subr.bf16.mxu1 %v1441_v13  ;;  %v1465_v35 = vld [vmem:[%s1662_s14 + $0xc] ss:$20 sps:$4 sm:$0xff]   ;;  %759 = vmatprep.mubr.bf16.mxu0 %v1462_v33  ;;  %v1470_v39 = vld [vmem:[%s1662_s14 + $0x34] ss:$20 sps:$4 sm:$0xff]   ;;  %v1473_v42 = vld [vmem:[%s1662_s14 + $0x30] ss:$20 sps:$4 sm:$0xff]  }
  0x1a   : > { %824 = vmatprep.mubr.bf16.mxu1 %v1465_v35  ;;  %v1468_v38 = vld [vmem:[%s1662_s14 + $0x2c] ss:$20 sps:$4 sm:$0xff]   ;;  %v1472_v40 = vld [vmem:[%s1662_s14 + $0x28] ss:$20 sps:$4 sm:$0xff]   ;;  %v1480_v47 = vld [vmem:[%s1662_s14 + $0x50] ss:$20 sps:$4 sm:$0xff]  }
  0x1b   : > { %1278 = vmatpush3.bf16.msra.mxu0 %v1442_v14  ;;  %v1474_v41 = vld [vmem:[%s1736_s1 + $0x128] sm:$0xff]   ;;  %v1475_v44 = vld [vmem:[%s1736_s1 + $0x120] sm:$0xff]   ;;  %v1484_v49 = vld [vmem:[%s1662_s14 + $0x7c] ss:$20 sps:$4 sm:$0xff]  }
  0x1c   : > { %1318 = vmatpush3.bf16.msra.mxu1 %v1443_v15  ;;  %1279 = vmatprep.subr.bf16.mxu0 %v1444_v16  ;;  %v1476_v43 = vld [vmem:[%s1662_s14 + $0x54] ss:$20 sps:$4 sm:$0xff]   ;;  %v1481_v48 = vld [vmem:[%s1662_s14 + $0x58] ss:$20 sps:$4 sm:$0xff]   ;;  %v1492_v55 = vld [vmem:[%s1662_s14 + $0x10] ss:$20 sps:$4 sm:$0xff]  }
  0x1d   : > { %1319 = vmatprep.subr.bf16.mxu1 %v1445_v17  ;;  %v1486_v50 = vld [vmem:[%s1662_s14 + $0x84] ss:$20 sps:$4 sm:$0xff]   ;;  %v1483_v51 = vld [vmem:[%s1736_s1 + $0x110] sm:$0xff]   ;;  %v1490_v52 = vld [vmem:[%s1736_s1 + $0x108] sm:$0xff]  }
  0x1e   : > { %v1488_v53 = vld [vmem:[%s1662_s14 + $0x78] ss:$20 sps:$4 sm:$0xff]   ;;  %v1489_v54 = vld [vmem:[%s1662_s14 + $0x80] ss:$20 sps:$4 sm:$0xff]   ;;  %v1495_v59 = vld [vmem:[%s1662_s14 + $0x88] ss:$20 sps:$4 sm:$0xff]  }
  0x1f   : > { %1280 = vmatpush3.bf16.msra.mxu0 %v1446_v18  ;;  %v1493_v56 = vld [vmem:[%s1662_s14 + $0x60] ss:$20 sps:$4 sm:$0xff]   ;;  %v1494_v58 = vld [vmem:[%s1662_s14 + $0x38] ss:$20 sps:$4 sm:$0xff]   ;;  %s1167_s14 = sshll.u32 %s1745_s27, 2  ;;  %s1168_s27 = sshll.u32 %s1747_s15, 3 }
  0x20   : > { %1320 = vmatpush3.bf16.msra.mxu1 %v1447_v19  ;;  %1281 = vmatprep.subr.bf16.mxu0 %v1448_v20  ;;  %v1491_v57 = vld [vmem:[%s1736_s1 + $0x100] sm:$0xff]   ;;  %s262_s21 = scalar_lea.vmem %s1737_s2, %s1167_s14  ;;  %s270_s24 = scalar_lea.vmem %s1738_s3, %s1168_s27 }
  0x21   : > { %1321 = vmatprep.subr.bf16.mxu1 %v1449_v21  ;;  %s277_s28 = scalar_lea.vmem %s1739_s4, %s1168_s27 }
  0x23   : > { %1282 = vmatpush3.bf16.msra.mxu0 %v1450_v22 }
  0x24   : > { %1322 = vmatpush3.bf16.msra.mxu1 %v1451_v23  ;;  %1283 = vmatprep.subr.bf16.mxu0 %v1452_v24 }
  0x25   : > { %1323 = vmatprep.subr.bf16.mxu1 %v1453_v25 }
  0x27   : > { %1284 = vmatpush3.bf16.msra.mxu0 %v1454_v26 }
  0x28   : > { %1324 = vmatpush3.bf16.msra.mxu1 %v1455_v27  ;;  %1285 = vmatprep.subr.bf16.mxu0 %v1456_v28 }
  0x29   : > { %1325 = vmatprep.subr.bf16.mxu1 %v1457_v29 }
  0x2b   : > { %1286 = vmatpush3.bf16.msra.mxu0 %v1458_v30 }
  0x2c   : > { %1326 = vmatpush3.bf16.msra.mxu1 %v1459_v31  ;;  %1363 = vmatprep.subr.bf16.mxu0 %v1466_v36 }
  0x2d   : > { %1387 = vmatprep.subr.bf16.mxu1 %v1466_v36 }
  0x2e   : > { %760 = vmatmul.mubr.bf16.vlgmr.msra.gmra.mxu0 %v1460_v32 }
  0x2f   : > { %825 = vmatmul.mubr.bf16.vlgmr.msra.gmra.mxu1 %v1463_v34  ;;  %1364 = vmatpush3.bf16.msra.mxu0 %v1466_v36 }
  0x30   : > { %1395 = vmatpush3.bf16.msra.mxu1 %v1466_v36  ;;  %1365 = vmatprep.subr.bf16.mxu0 %v1467_v37 }
  0x31   : > { %1388 = vmatprep.subr.bf16.mxu1 %v1467_v37  ;;  %767 = vmatprep.mubr.bf16.mxu0 %v1468_v38 }
  0x32   : > { %832 = vmatprep.mubr.bf16.mxu1 %v1470_v39 }
  0x33   : > { %1366 = vmatpush3.bf16.msra.mxu0 %v1467_v37 }
  0x34   : > { %1396 = vmatpush3.bf16.msra.mxu1 %v1467_v37  ;;  %1367 = vmatprep.subr.bf16.mxu0 %v1474_v41 }
  0x35   : > { %1389 = vmatprep.subr.bf16.mxu1 %v1474_v41 }
  0x36   : > { %768 = vmatmul.mubr.bf16.gmra.mxu0 %v1472_v40 }
  0x37   : > { %833 = vmatmul.mubr.bf16.gmra.mxu1 %v1473_v42  ;;  %775 = vmatprep.mubr.bf16.mxu0 %v1476_v43 }
  0x38   : > { %1368 = vmatpush3.bf16.msra.mxu0 %v1474_v41  ;;  %840 = vmatprep.mubr.bf16.mxu1 %v1478_v45 }
  0x39   : > { %1397 = vmatpush3.bf16.msra.mxu1 %v1474_v41  ;;  %1369 = vmatprep.subr.bf16.mxu0 %v1475_v44 }
  0x3a   : > { %1390 = vmatprep.subr.bf16.mxu1 %v1475_v44 }
  0x3c   : > { %1370 = vmatpush3.bf16.msra.mxu0 %v1475_v44 }
  0x3d   : > { %1398 = vmatpush3.bf16.msra.mxu1 %v1475_v44  ;;  %1371 = vmatprep.subr.bf16.mxu0 %v1482_v46 }
  0x3e   : > { %776 = vmatmul.mubr.bf16.gmra.mxu0 %v1480_v47  ;;  %1391 = vmatprep.subr.bf16.mxu1 %v1482_v46 }
  0x3f   : > { %841 = vmatmul.mubr.bf16.gmra.mxu1 %v1481_v48  ;;  %783 = vmatprep.mubr.bf16.mxu0 %v1484_v49 }
  0x40   : > { %1372 = vmatpush3.bf16.msra.mxu0 %v1482_v46  ;;  %848 = vmatprep.mubr.bf16.mxu1 %v1486_v50 }
  0x41   : > { %1399 = vmatpush3.bf16.msra.mxu1 %v1482_v46  ;;  %1373 = vmatprep.subr.bf16.mxu0 %v1483_v51 }
  0x42   : > { %1392 = vmatprep.subr.bf16.mxu1 %v1483_v51 }
  0x44   : > { %1374 = vmatpush3.bf16.msra.mxu0 %v1483_v51 }
  0x45   : > { %1400 = vmatpush3.bf16.msra.mxu1 %v1483_v51  ;;  %1375 = vmatprep.subr.bf16.mxu0 %v1490_v52 }
  0x46   : > { %784 = vmatmul.mubr.bf16.gmra.mxu0 %v1488_v53  ;;  %1393 = vmatprep.subr.bf16.mxu1 %v1490_v52 }
  0x47   : > { %849 = vmatmul.mubr.bf16.gmra.mxu1 %v1489_v54  ;;  %1379 = vmatprep.mubr.bf16.mxu0 %v1492_v55 }
  0x48   : > { %1376 = vmatpush3.bf16.msra.mxu0 %v1490_v52  ;;  %1383 = vmatprep.mubr.bf16.mxu1 %v1493_v56 }
  0x49   : > { %1401 = vmatpush3.bf16.msra.mxu1 %v1490_v52  ;;  %1377 = vmatprep.subr.bf16.mxu0 %v1491_v57 }
  0x4a   : > { %1394 = vmatprep.subr.bf16.mxu1 %v1491_v57 }
  0x4c   : > { %1378 = vmatpush3.bf16.msra.mxu0 %v1491_v57 }
  0x4d   : > { %1402 = vmatpush3.bf16.msra.mxu1 %v1491_v57 }
  0x4f   : > { %1380 = vmatmul.mubr.bf16.vlgmr.msra.gmra.mxu0 %v1494_v58 }
  0x50   : > { %1384 = vmatmul.mubr.bf16.vlgmr.msra.gmra.mxu1 %v1495_v59 }
  0xee   : > { %v1287_v60 = vpop.f32.mrf.mxu0 }
  0xef   : > { %v1327_v61 = vpop.f32.mrf.mxu1 }
  0xf0   : > { %v1288_v62 = vpop.f32.mrf.mxu0 }
  0xf1   : > { %v1328_v63 = vpop.f32.mrf.mxu1  ;;  %v1289_v27 = vadd.f32 %v1288_v62, %v1287_v60 }
  0xf2   : > { %v1290_v0 = vpop.f32.mrf.mxu0  ;;  %v1329_v28 = vadd.f32 %v1328_v63, %v1327_v61 }
  0xf3   : > { %v1330_v1 = vpop.f32.mrf.mxu1 }
  0xf4   : > { %v1291_v2 = vpop.f32.mrf.mxu0  ;;  %v827_v48 = vadd.f32 %v1329_v28, %v1289_v27 }
  0xf5   : > { %v1331_v3 = vpop.f32.mrf.mxu1  ;;  %v1292_v39 = vadd.f32 %v1291_v2, %v1290_v0 }
  0xf6   : > { %v1293_v4 = vpop.f32.mrf.mxu0  ;;  %v1332_v40 = vadd.f32 %v1331_v3, %v1330_v1 }
  0xf7   : > { %v1333_v5 = vpop.f32.mrf.mxu1 }
  0xf8   : > { %v1294_v6 = vpop.f32.mrf.mxu0  ;;  %v830_v58 = vadd.f32 %v1332_v40, %v1292_v39 }
  0xf9   : > { %v1334_v7 = vpop.f32.mrf.mxu1  ;;  %v1295_v30 = vadd.f32 %v1294_v6, %v1293_v4 }
  0xfa   : > { %v1296_v8 = vpop.f32.mrf.mxu0  ;;  %v1335_v31 = vadd.f32 %v1334_v7, %v1333_v5 }
  0xfb   : > { %v1336_v9 = vpop.f32.mrf.mxu1 }
  0xfc   : > { %v1297_v10 = vpop.f32.mrf.mxu0  ;;  %v835_v47 = vadd.f32 %v1335_v31, %v1295_v30 }
  0xfd   : > { %v1337_v11 = vpop.f32.mrf.mxu1  ;;  %v1298_v32 = vadd.f32 %v1297_v10, %v1296_v8 }
  0xfe   : > { %v1299_v12 = vpop.f32.mrf.mxu0  ;;  %v1338_v33 = vadd.f32 %v1337_v11, %v1336_v9 }
  0xff   : > { %v1339_v13 = vpop.f32.mrf.mxu1 }
 0x100   : > { %v1300_v14 = vpop.f32.mrf.mxu0  ;;  %v838_v50 = vadd.f32 %v1338_v33, %v1298_v32 }
 0x101   : > { %v1340_v15 = vpop.f32.mrf.mxu1  ;;  %v1301_v42 = vadd.f32 %v1300_v14, %v1299_v12 }
 0x102   : > { %v1302_v16 = vpop.f32.mrf.mxu0  ;;  %v1341_v43 = vadd.f32 %v1340_v15, %v1339_v13 }
 0x103   : > { %v1342_v17 = vpop.f32.mrf.mxu1 }
 0x104   : > { %v1303_v18 = vpop.f32.mrf.mxu0  ;;  %v843_v60 = vadd.f32 %v1341_v43, %v1301_v42 }
 0x105   : > { %v1343_v19 = vpop.f32.mrf.mxu1  ;;  %v1304_v44 = vadd.f32 %v1303_v18, %v1302_v16 }
 0x106   : > { %v1305_v20 = vpop.f32.mrf.mxu0  ;;  %v1344_v45 = vadd.f32 %v1343_v19, %v1342_v17 }
 0x107   : > { %v1345_v21 = vpop.f32.mrf.mxu1 }
 0x108   : > { %v1306_v22 = vpop.f32.mrf.mxu0  ;;  %v846_v63 = vadd.f32 %v1344_v45, %v1304_v44 }
 0x109   : > { %v1346_v23 = vpop.f32.mrf.mxu1  ;;  %v1307_v34 = vadd.f32 %v1306_v22, %v1305_v20 }
 0x10a   : > { %v1308_v24 = vpop.f32.mrf.mxu0  ;;  %v1347_v35 = vadd.f32 %v1346_v23, %v1345_v21 }
 0x10b   : > { %v1348_v25 = vpop.f32.mrf.mxu1 }
 0x10c   : > { %v1309_v26 = vpop.f32.mrf.mxu0  ;;  %v851_v51 = vadd.f32 %v1347_v35, %v1307_v34 }
 0x10d   : > { %v1349_v29 = vpop.f32.mrf.mxu1  ;;  %v1310_v36 = vadd.f32 %v1309_v26, %v1308_v24 }
 0x10e   : > { %v1350_v37 = vadd.f32 %v1349_v29, %v1348_v25 }
 0x10f   : > { %v1381_v38 = vpop.f32.mrf.mxu0 }
 0x110   : > { %v1385_v41 = vpop.f32.mrf.mxu1  ;;  %v854_v53 = vadd.f32 %v1350_v37, %v1310_v36  ;;  %v900_v54 = vadd.f32 %v1381_v38, %v835_v47 }
 0x111   : > { %v891_v46 = vpop.f32.mrf.mxu0  ;;  %v916_v59 = vadd.f32 %v1385_v41, %v851_v51 }
 0x112   : > { %v907_v49 = vpop.f32.mrf.mxu1  ;;  %v892_v55 = vadd.f32 %v891_v46, %v827_v48  ;;  %v972_v11 = vmul.f32 %v900_v54, %v900_v54 }
 0x113   : > { %v1382_v52 = vpop.f32.mrf.mxu0  ;;  %v908_v3 = vadd.f32 %v907_v49, %v843_v60  ;;  %v976_v23 = vmul.f32 %v916_v59, %v916_v59 }
 0x114   : > { %v903_v56 = vadd.f32 %v1382_v52, %v838_v50  ;;  %v1386_v57 = vpop.f32.mrf.mxu1  ;;  %v970_v6 = vmul.f32 %v892_v55, %v892_v55 }
 0x115   : > { %v919_v61 = vadd.f32 %v1386_v57, %v854_v53  ;;  %v894_v62 = vpop.f32.mrf.mxu0  ;;  %v974_v17 = vmul.f32 %v908_v3, %v908_v3 }
 0x116   : > { %v1256_v0 = vpack.c.bf16 %v903_v56, %v900_v54  ;;  %v895_v1 = vadd.f32 %v894_v62, %v830_v58  ;;  %v910_v2 = vpop.f32.mrf.mxu1  ;;  %v973_v14 = vmul.f32 %v903_v56, %v903_v56 }
 0x117   : > { %v1266_v4 = vpack.c.bf16 %v919_v61, %v916_v59  ;;  %v911_v5 = vadd.f32 %v910_v2, %v846_v63  ;;  %v977_v26 = vmul.f32 %v919_v61, %v919_v61 }
 0x118   : > { %1268 = vst [vmem:[%s262_s21 + $0x8] sm:$0xff] %v1256_v0   ;;  %v1251_v7 = vpack.c.bf16 %v895_v1, %v892_v55  ;;  %v962_v8 = vadd.f32 %v895_v1, %v892_v55  ;;  %v971_v9 = vmul.f32 %v895_v1, %v895_v1 }
 0x119   : > { %1270 = vst [vmem:[%s262_s21 + $0x18] sm:$0xff] %v1266_v4   ;;  %v1261_v10 = vpack.c.bf16 %v911_v5, %v908_v3  ;;  %v975_v21 = vmul.f32 %v911_v5, %v911_v5 }
 0x11a   : > { %1252 = vst [vmem:[%s262_s21] sm:$0xff] %v1251_v7   ;;  %v963_v12 = vadd.f32 %v962_v8, %v900_v54  ;;  %v978_v13 = vadd.f32 %v971_v9, %v970_v6 }
 0x11b   : > { %1269 = vst [vmem:[%s262_s21 + $0x10] sm:$0xff] %v1261_v10  }
 0x11c   : > { %v979_v15 = vadd.f32 %v978_v13, %v972_v11  ;;  %v964_v16 = vadd.f32 %v963_v12, %v903_v56 }
 0x11e   : > { %v965_v18 = vadd.f32 %v964_v16, %v908_v3  ;;  %v980_v19 = vadd.f32 %v979_v15, %v973_v14 }
 0x120   : > { %v966_v20 = vadd.f32 %v965_v18, %v911_v5  ;;  %v981_v22 = vadd.f32 %v980_v19, %v974_v17 }
 0x122   : > { %v967_v24 = vadd.f32 %v966_v20, %v916_v59  ;;  %v982_v25 = vadd.f32 %v981_v22, %v975_v21 }
 0x124   : > { %v968_v27 = vadd.f32 %v967_v24, %v919_v61  ;;  %v983_v28 = vadd.f32 %v982_v25, %v976_v23 }
 0x126   : > { %969 = vst [vmem:[%s270_s24] sm:$0xff] %v968_v27  ;;  %v984_v29 = vadd.f32 %v983_v28, %v977_v26 }
 0x128   : > { %985 = vst [vmem:[%s277_s28] sm:$0xff] %v984_v29 }
 0x129 PF: > { %s15_s17 = sadd.s32 1, %s1518_s17   ;;  %s1740_s15 = smov %s1514_s16 }
 0x12a   : > { %p12_p6 = scmp.ge.s32.totalorder %s15_s17, 4   ;;  %s1741_s16 = smov %s1743_s18 }
 0x12c   :  { %14 = sbr.rel (!%p12_p6) target bundleno = 2 (0x2), region = 85 }

// kernel: tile.48
= control target key start
LH: loop header
LB: loop body
LE: loop exit
PB: predicated region body
PF: predicated region fallthrough
CT: control target
= control target key end

     0   :  { %s22_s0 = inlined_call_operand.vmem [shape: f32[16], index: 0, kind: input, shape index: {}]   ;;  %s23_s1 = inlined_call_operand.vmem [shape: f32[4,16], index: 1, kind: output, shape index: {}]  }
   0x1   :  { %v4_v0 = vld [vmem:[%s22_s0] ss:$0 sm:$0xff] }
   0x2   :  { %5 = vst [vmem:[%s23_s1] sm:$0xf] %v4_v0 }

// kernel: tile.49
= control target key start
LH: loop header
LB: loop body
LE: loop exit
PB: predicated region body
PF: predicated region fallthrough
CT: control target
= control target key end

     0   :  { %vm8_vm0 = vcmask 130048   ;;  %s40_s8 = smov 16   ;;  %s41_s9 = smov 32   ;;  %vm14_vm1 = vcmask 523648   ;;  %vm20_vm2 = vcmask 392448   ;;  %vm26_vm3 = vcmask 261248   ;;  %s58_s0 = inlined_call_operand.vmem [shape: f32[4,16], index: 0, kind: input, shape index: {}]   ;;  %s59_s1 = inlined_call_operand.vmem [shape: f32[64], index: 1, kind: output, shape index: {}]  }
   0x1   :  { %v5_v0 = vld [vmem:[%s58_s0] sm:$0xf]  ;;  %s39_s0 = smov 48  }
   0x2   :  { %6 = vst [vmem:[#allocation1] sm:$0xf] %v5_v0 }
   0x9   :  { %v11_v1 = vld [vmem:[#allocation1 + $0x3] sm:$0x1]   ;;  %v23_v2 = vld [vmem:[#allocation1 + $0x1] sm:$0x1]   ;;  %v7_v3 = vld [vmem:[#allocation1] sm:$0x1]  }
   0xa   :  { %12 = vrot.lane.b32.xlu0 %v11_v1, %s39_s0  ;;  %24 = vrot.lane.b32.xlu1 %v23_v2, %s40_s8  ;;  %v17_v4 = vld [vmem:[#allocation1 + $0x2] sm:$0x1]   ;;  %9 = vst.msk [vmem:[#allocation0] sm:$0x1] %vm8_vm0, %v7_v3  }
   0xe   :  { %18 = vrot.lane.b32.xlu0 %v17_v4, %s41_s9 }
  0x7c   :  { %v13_v5 = vpop.permute.xlu0 %12   ;;  %v25_v6 = vpop.permute.xlu1 %24  }
  0x7d   :  { %15 = vst.msk [vmem:[#allocation0] sm:$0x1] %vm14_vm1, %v13_v5  }
  0x80   :  { %v19_v7 = vpop.permute.xlu0 %18  }
  0x81   :  { %21 = vst.msk [vmem:[#allocation0] sm:$0x1] %vm20_vm2, %v19_v7  }
  0x82   :  { %27 = vst.msk [vmem:[#allocation0] sm:$0x1] %vm26_vm3, %v25_v6  }
  0x89   :  { %v32_v8 = vld [vmem:[#allocation0] sm:$0x1] }
  0x8a   :  { %35 = vst [vmem:[%s59_s1] sm:$0x1] %v32_v8 }

// kernel: _lambda_.13
= control target key start
LH: loop header
LB: loop body
LE: loop exit
PB: predicated region body
PF: predicated region fallthrough
CT: control target
= control target key end

     0   :  { %s1196_s15 = smov 0   ;;  %s1198_s16 = smov 0   ;;  %s1336_s0 = inlined_call_operand.vmem [shape: bf16[128,384], index: 0, kind: input, shape index: {}]   ;;  %s1337_s1 = inlined_call_operand.vmem [shape: bf16[384,128], index: 1, kind: input, shape index: {}]   ;;  %s1338_s2 = inlined_call_operand.vmem [shape: bf16[128,128], index: 2, kind: output, shape index: {0}]   ;;  %s1339_s3 = inlined_call_operand.vmem [shape: f32[16,128], index: 3, kind: output, shape index: {1}]   ;;  %s1340_s4 = inlined_call_operand.vmem [shape: f32[16,128], index: 4, kind: output, shape index: {2}]  }
   0x1   :  { %s1200_s17 = smov 0  }
   0x2 LB: > { %s27_s18 = sadd.s32 1, %s1165_s16  ;;  %p922_p0 = scmp.ge.s32.totalorder %s1169_s17, 1  ;;  %s1169_s17 = sphi %s1200_s17, %s15_s17   ;;  %s1165_s16 = sphi %s1198_s16, %s1342_s16   ;;  %s1161_s15 = sphi %s1196_s15, %s1341_s15  }
   0x3   : > { %p29_p1 = scmp.ge.s32.totalorder %s27_s18, 2  ;;  %p196_p2 = scmp.lt.s32.totalorder %s1169_s17, 3 }
   0x5   : > { %s1344_s18 = smov (%p29_p1, %s27_s18), 0  ;;  %p197_p3 = pnand %p922_p0, %p196_p2 }
   0x6   : > { %s923_s9 = sshll.u32 (!%p197_p3), %s1161_s15, 3  ;;  %p264_p5 = scmp.lt.s32.totalorder (!%p197_p3), %s1161_s15, 1 }
   0x7   : > { %200 = sbr.rel (%p197_p3) target bundleno = 277 (0x115), region = 28  ;;  %p245_p4 = scmp.lt.s32.totalorder (!%p197_p3), %s923_s9, 15 }
   0xc   : > { %v1107_v0 = vld [vmem:[%s1337_s1 + $0x78] sm:$0xff]   ;;  %v1110_v3 = vld [vmem:[%s1337_s1 + $0x70] sm:$0xff]   ;;  %v1113_v6 = vld [vmem:[%s1337_s1 + $0x68] sm:$0xff]   ;;  %s1346_s9 = smov (!%p245_p4, %s923_s9), 15  ;;  %s1348_s15 = smov (!%p264_p5, %s1161_s15), 1 }
   0xd   : > { %v1108_v1 = vld [vmem:[%s1337_s1 + $0x38] sm:$0xff]   ;;  %1006 = vmatprep.subr.bf16.mxu0 %v1107_v0  ;;  %v1111_v4 = vld [vmem:[%s1337_s1 + $0x30] sm:$0xff]   ;;  %v1114_v7 = vld [vmem:[%s1337_s1 + $0x28] sm:$0xff]   ;;  %s1082_s6 = smul.u32 12, %s1346_s9  ;;  %s926_s29 = sshll.u32 %s1346_s9, 2 }
   0xe   : > { %v1109_v2 = vld [vmem:[%s1337_s1 + $0xb8] sm:$0xff]   ;;  %1007 = vmatpush3.bf16.msra.mxu0 %v1108_v1  ;;  %v1112_v5 = vld [vmem:[%s1337_s1 + $0xb0] sm:$0xff]   ;;  %v1115_v8 = vld [vmem:[%s1337_s1 + $0xa8] sm:$0xff]   ;;  %s927_s9 = sshll.u32 %s1348_s15, 3 }
   0xf   : > { %1058 = vmatprep.subr.bf16.mxu1 %v1109_v2  ;;  %1008 = vmatprep.subr.bf16.mxu0 %v1110_v3  ;;  %v1116_v9 = vld [vmem:[%s1337_s1 + $0x60] sm:$0xff]   ;;  %v1119_v12 = vld [vmem:[%s1337_s1 + $0x58] sm:$0xff]   ;;  %v1122_v15 = vld [vmem:[%s1337_s1 + $0x50] sm:$0xff]   ;;  %s1286_s22 = scalar_lea.vmem %s1336_s0, %s1082_s6  ;;  %s1313_s6 = scalar_lea.vmem %s1338_s2, %s926_s29 }
  0x10   : > { %1059 = vmatpush3.bf16.msra.mxu1 %v1109_v2  ;;  %v1117_v10 = vld [vmem:[%s1337_s1 + $0x20] sm:$0xff]   ;;  %v1121_v13 = vld [vmem:[%s1337_s1 + $0x98] sm:$0xff]   ;;  %v1124_v16 = vld [vmem:[%s1337_s1 + $0x90] sm:$0xff]   ;;  %s270_s10 = scalar_lea.vmem %s1339_s3, %s927_s9  ;;  %s277_s13 = scalar_lea.vmem %s1340_s4, %s927_s9 }
  0x11   : > { %1060 = vmatprep.subr.bf16.mxu1 %v1112_v5  ;;  %v1118_v11 = vld [vmem:[%s1337_s1 + $0xa0] sm:$0xff]   ;;  %v1120_v14 = vld [vmem:[%s1337_s1 + $0x18] sm:$0xff]   ;;  %v1123_v17 = vld [vmem:[%s1337_s1 + $0x10] sm:$0xff]  }
  0x12   : > { %1009 = vmatpush3.bf16.msra.mxu0 %v1111_v4  ;;  %v1125_v18 = vld [vmem:[%s1337_s1 + $0x48] sm:$0xff]   ;;  %v1128_v21 = vld [vmem:[%s1337_s1 + $0x40] sm:$0xff]   ;;  %v1143_v32 = vld [vmem:[%s1286_s22 + $0x50] ss:$12 sps:$4 sm:$0xff]  }
  0x13   : > { %1010 = vmatprep.subr.bf16.mxu0 %v1113_v6  ;;  %v1126_v19 = vld [vmem:[%s1337_s1 + $0x8] sm:$0xff]   ;;  %v1130_v22 = vld [vmem:[%s1337_s1 + $0x80] sm:$0xff]   ;;  %v1142_v33 = vld [vmem:[%s1286_s22 + $0x30] ss:$12 sps:$4 sm:$0xff]  }
  0x14   : > { %1061 = vmatpush3.bf16.msra.mxu1 %v1112_v5  ;;  %v1127_v20 = vld [vmem:[%s1337_s1 + $0x88] sm:$0xff]   ;;  %v1133_v23 = vld [vmem:[%s1286_s22 + $0x4] ss:$12 sps:$4 sm:$0xff]   ;;  %v1139_v31 = vld [vmem:[%s1286_s22 + $0x34] ss:$12 sps:$4 sm:$0xff]  }
  0x15   : > { %1062 = vmatprep.subr.bf16.mxu1 %v1115_v8  ;;  %v1134_v24 = vld [vmem:[%s1286_s22 + $0x8] ss:$12 sps:$4 sm:$0xff]   ;;  %v1129_v25 = vld [vmem:[%s1337_s1] sm:$0xff]   ;;  %583 = vmatprep.mubr.bf16.mxu0 %v1133_v23  ;;  %v1144_v34 = vld [vmem:[%s1286_s22 + $0x4c] ss:$12 sps:$4 sm:$0xff]  }
  0x16   : > { %1011 = vmatpush3.bf16.msra.mxu0 %v1114_v7  ;;  %1074 = vmatprep.mubr.bf16.mxu1 %v1134_v24  ;;  %v1131_v26 = vld [vmem:[%s1286_s22] ss:$12 sps:$4 sm:$0xff]   ;;  %v1136_v27 = vld [vmem:[%s1286_s22 + $0x1c] ss:$12 sps:$4 sm:$0xff]   ;;  %v1141_v29 = vld [vmem:[%s1286_s22 + $0x38] ss:$12 sps:$4 sm:$0xff]  }
  0x17   : > { %1012 = vmatprep.subr.bf16.mxu0 %v1116_v9  ;;  %v1135_v28 = vld [vmem:[%s1286_s22 + $0x20] ss:$12 sps:$4 sm:$0xff]   ;;  %v1138_v30 = vld [vmem:[%s1286_s22 + $0x18] ss:$12 sps:$4 sm:$0xff]   ;;  %v1146_v35 = vld [vmem:[%s1286_s22 + $0x48] ss:$12 sps:$4 sm:$0xff]  }
  0x18   : > { %1063 = vmatpush3.bf16.msra.mxu1 %v1115_v8 }
  0x19   : > { %1064 = vmatprep.subr.bf16.mxu1 %v1118_v11 }
  0x1a   : > { %1013 = vmatpush3.bf16.msra.mxu0 %v1117_v10 }
  0x1b   : > { %1014 = vmatprep.subr.bf16.mxu0 %v1119_v12 }
  0x1c   : > { %1065 = vmatpush3.bf16.msra.mxu1 %v1118_v11 }
  0x1d   : > { %1066 = vmatprep.subr.bf16.mxu1 %v1121_v13 }
  0x1e   : > { %1015 = vmatpush3.bf16.msra.mxu0 %v1120_v14 }
  0x1f   : > { %1016 = vmatprep.subr.bf16.mxu0 %v1122_v15 }
  0x20   : > { %1067 = vmatpush3.bf16.msra.mxu1 %v1121_v13 }
  0x21   : > { %1068 = vmatprep.subr.bf16.mxu1 %v1124_v16 }
  0x22   : > { %1017 = vmatpush3.bf16.msra.mxu0 %v1123_v17 }
  0x23   : > { %1018 = vmatprep.subr.bf16.mxu0 %v1125_v18 }
  0x24   : > { %1069 = vmatpush3.bf16.msra.mxu1 %v1124_v16 }
  0x25   : > { %1070 = vmatprep.subr.bf16.mxu1 %v1127_v20 }
  0x26   : > { %1019 = vmatpush3.bf16.msra.mxu0 %v1126_v19 }
  0x27   : > { %1020 = vmatprep.subr.bf16.mxu0 %v1128_v21 }
  0x28   : > { %1071 = vmatpush3.bf16.msra.mxu1 %v1127_v20 }
  0x29   : > { %1072 = vmatprep.subr.bf16.mxu1 %v1130_v22 }
  0x2a   : > { %1021 = vmatpush3.bf16.msra.mxu0 %v1129_v25 }
  0x2c   : > { %1073 = vmatpush3.bf16.msra.mxu1 %v1130_v22 }
  0x2d   : > { %584 = vmatmul.mubr.bf16.vlgmr.msra.gmra.mxu0 %v1131_v26 }
  0x2e   : > { %591 = vmatprep.mubr.bf16.mxu0 %v1136_v27 }
  0x2f   : > { %1075 = vmatmul.mubr.bf16.vlgmr.msra.gmra.mxu1 %v1135_v28 }
  0x30   : > { %1078 = vmatprep.mubr.bf16.mxu1 %v1141_v29 }
  0x35   : > { %592 = vmatmul.mubr.bf16.gmra.mxu0 %v1138_v30 }
  0x36   : > { %599 = vmatprep.mubr.bf16.mxu0 %v1139_v31 }
  0x37   : > { %1079 = vmatmul.mubr.bf16.gmra.mxu1 %v1143_v32 }
  0x3d   : > { %600 = vmatmul.mubr.bf16.gmra.mxu0 %v1142_v33 }
  0x3e   : > { %607 = vmatprep.mubr.bf16.mxu0 %v1144_v34 }
  0x45   : > { %608 = vmatmul.mubr.bf16.gmra.mxu0 %v1146_v35 }
  0xed   : > { %v1022_v36 = vpop.f32.mrf.mxu0 }
  0xef   : > { %v1023_v37 = vpop.f32.mrf.mxu0  ;;  %v1076_v38 = vpop.f32.mrf.mxu1 }
  0xf0   : > { %v1024_v41 = vadd.f32 %v1023_v37, %v1022_v36 }
  0xf1   : > { %v1025_v39 = vpop.f32.mrf.mxu0  ;;  %v650_v40 = vpop.f32.mrf.mxu1 }
  0xf2   : > { %v651_v47 = vadd.f32 %v1024_v41, %v650_v40 }
  0xf3   : > { %v1026_v42 = vpop.f32.mrf.mxu0  ;;  %v1077_v43 = vpop.f32.mrf.mxu1 }
  0xf4   : > { %v1027_v44 = vadd.f32 %v1026_v42, %v1025_v39  ;;  %v729_v2 = vmul.f32 %v651_v47, %v651_v47 }
  0xf5   : > { %v1028_v45 = vpop.f32.mrf.mxu0  ;;  %v653_v46 = vpop.f32.mrf.mxu1 }
  0xf6   : > { %v654_v48 = vadd.f32 %v1027_v44, %v653_v46 }
  0xf7   : > { %v1029_v49 = vpop.f32.mrf.mxu0  ;;  %v1080_v52 = vpop.f32.mrf.mxu1 }
  0xf8   : > { %v986_v50 = vpack.c.bf16 %v654_v48, %v651_v47  ;;  %v1030_v53 = vadd.f32 %v1029_v49, %v1028_v45  ;;  %v730_v63 = vmul.f32 %v654_v48, %v654_v48  ;;  %v721_v5 = vadd.f32 %v654_v48, %v651_v47 }
  0xf9   : > { %v1031_v51 = vpop.f32.mrf.mxu0  ;;  %v666_v57 = vpop.f32.mrf.mxu1 }
  0xfa   : > { %987 = vst [vmem:[%s1313_s6] sm:$0xff] %v986_v50   ;;  %v659_v58 = vadd.f32 %v1076_v38, %v1030_v53  ;;  %v737_v8 = vadd.f32 %v730_v63, %v729_v2 }
  0xfb   : > { %v1032_v54 = vpop.f32.mrf.mxu0  ;;  %v1081_v1 = vpop.f32.mrf.mxu1 }
  0xfc   : > { %v1033_v55 = vadd.f32 %v1032_v54, %v1031_v51  ;;  %v731_v3 = vmul.f32 %v659_v58, %v659_v58  ;;  %v722_v11 = vadd.f32 %v721_v5, %v659_v58 }
  0xfd   : > { %v1034_v56 = vpop.f32.mrf.mxu0  ;;  %v669_v9 = vpop.f32.mrf.mxu1 }
  0xfe   : > { %v662_v59 = vadd.f32 %v1077_v43, %v1033_v55  ;;  %v738_v14 = vadd.f32 %v737_v8, %v731_v3 }
  0xff   : > { %v1035_v60 = vpop.f32.mrf.mxu0 }
 0x100   : > { %v991_v61 = vpack.c.bf16 %v662_v59, %v659_v58  ;;  %v1036_v62 = vadd.f32 %v1035_v60, %v1034_v56  ;;  %v732_v12 = vmul.f32 %v662_v59, %v662_v59  ;;  %v723_v16 = vadd.f32 %v722_v11, %v662_v59 }
 0x101   : > { %v1037_v0 = vpop.f32.mrf.mxu0 }
 0x102   : > { %1003 = vst [vmem:[%s1313_s6 + $0x8] sm:$0xff] %v991_v61   ;;  %v667_v6 = vadd.f32 %v1036_v62, %v666_v57  ;;  %v739_v22 = vadd.f32 %v738_v14, %v732_v12 }
 0x103   : > { %v1038_v4 = vpop.f32.mrf.mxu0 }
 0x104   : > { %v1039_v7 = vadd.f32 %v1038_v4, %v1037_v0  ;;  %v733_v17 = vmul.f32 %v667_v6, %v667_v6  ;;  %v724_v21 = vadd.f32 %v723_v16, %v667_v6 }
 0x105   : > { %v1040_v10 = vpop.f32.mrf.mxu0 }
 0x106   : > { %v670_v13 = vadd.f32 %v1039_v7, %v669_v9  ;;  %v740_v26 = vadd.f32 %v739_v22, %v733_v17 }
 0x107   : > { %v1041_v15 = vpop.f32.mrf.mxu0 }
 0x108   : > { %v996_v18 = vpack.c.bf16 %v670_v13, %v667_v6  ;;  %v1042_v19 = vadd.f32 %v1041_v15, %v1040_v10  ;;  %v734_v23 = vmul.f32 %v670_v13, %v670_v13  ;;  %v725_v27 = vadd.f32 %v724_v21, %v670_v13 }
 0x109   : > { %v1043_v20 = vpop.f32.mrf.mxu0 }
 0x10a   : > { %1004 = vst [vmem:[%s1313_s6 + $0x10] sm:$0xff] %v996_v18   ;;  %v675_v24 = vadd.f32 %v1080_v52, %v1042_v19  ;;  %v741_v30 = vadd.f32 %v740_v26, %v734_v23 }
 0x10b   : > { %v1044_v25 = vpop.f32.mrf.mxu0 }
 0x10c   : > { %v735_v28 = vmul.f32 %v675_v24, %v675_v24  ;;  %v1045_v29 = vadd.f32 %v1044_v25, %v1043_v20  ;;  %v726_v31 = vadd.f32 %v725_v27, %v675_v24 }
 0x10e   : > { %v678_v32 = vadd.f32 %v1081_v1, %v1045_v29  ;;  %v742_v33 = vadd.f32 %v741_v30, %v735_v28 }
 0x110   : > { %v1001_v34 = vpack.c.bf16 %v678_v32, %v675_v24  ;;  %v727_v35 = vadd.f32 %v726_v31, %v678_v32  ;;  %v736_v36 = vmul.f32 %v678_v32, %v678_v32 }
 0x112   : > { %1005 = vst [vmem:[%s1313_s6 + $0x18] sm:$0xff] %v1001_v34   ;;  %728 = vst [vmem:[%s270_s10] sm:$0xff] %v727_v35  ;;  %v743_v37 = vadd.f32 %v742_v33, %v736_v36 }
 0x114   : > { %744 = vst [vmem:[%s277_s13] sm:$0xff] %v743_v37 }
 0x115 PF: > { %s15_s17 = sadd.s32 1, %s1169_s17   ;;  %s1341_s15 = smov %s1165_s16 }
 0x116   : > { %p12_p6 = scmp.ge.s32.totalorder %s15_s17, 4   ;;  %s1342_s16 = smov %s1344_s18 }
 0x118   :  { %14 = sbr.rel (!%p12_p6) target bundleno = 2 (0x2), region = 85 }

// kernel: tile.58
= control target key start
LH: loop header
LB: loop body
LE: loop exit
PB: predicated region body
PF: predicated region fallthrough
CT: control target
= control target key end

     0   :  { %s22_s0 = inlined_call_operand.vmem [shape: f32[8], index: 0, kind: input, shape index: {}]   ;;  %s23_s1 = inlined_call_operand.vmem [shape: f32[4,8], index: 1, kind: output, shape index: {}]  }
   0x1   :  { %v4_v0 = vld [vmem:[%s22_s0] ss:$0 sm:$0xff] }
   0x2   :  { %5 = vst [vmem:[%s23_s1] sm:$0xf] %v4_v0 }

// kernel: tile.59
= control target key start
LH: loop header
LB: loop body
LE: loop exit
PB: predicated region body
PF: predicated region fallthrough
CT: control target
= control target key end

     0   :  { %vm8_vm0 = vcmask 64512   ;;  %s40_s8 = smov 8   ;;  %s41_s9 = smov 16   ;;  %vm14_vm1 = vcmask 261312   ;;  %vm20_vm2 = vcmask 195712   ;;  %vm26_vm3 = vcmask 130112   ;;  %s58_s0 = inlined_call_operand.vmem [shape: f32[4,8], index: 0, kind: input, shape index: {}]   ;;  %s59_s1 = inlined_call_operand.vmem [shape: f32[32], index: 1, kind: output, shape index: {}]  }
   0x1   :  { %v5_v0 = vld [vmem:[%s58_s0] sm:$0xf]  ;;  %s39_s0 = smov 24  }
   0x2   :  { %6 = vst [vmem:[#allocation1] sm:$0xf] %v5_v0 }
   0x9   :  { %v11_v1 = vld [vmem:[#allocation1 + $0x3] sm:$0x1]   ;;  %v23_v2 = vld [vmem:[#allocation1 + $0x1] sm:$0x1]   ;;  %v7_v3 = vld [vmem:[#allocation1] sm:$0x1]  }
   0xa   :  { %12 = vrot.lane.b32.xlu0 %v11_v1, %s39_s0  ;;  %24 = vrot.lane.b32.xlu1 %v23_v2, %s40_s8  ;;  %v17_v4 = vld [vmem:[#allocation1 + $0x2] sm:$0x1]   ;;  %9 = vst.msk [vmem:[#allocation0] sm:$0x1] %vm8_vm0, %v7_v3  }
   0xe   :  { %18 = vrot.lane.b32.xlu0 %v17_v4, %s41_s9 }
  0x7c   :  { %v13_v5 = vpop.permute.xlu0 %12   ;;  %v25_v6 = vpop.permute.xlu1 %24  }
  0x7d   :  { %15 = vst.msk [vmem:[#allocation0] sm:$0x1] %vm14_vm1, %v13_v5  }
  0x80   :  { %v19_v7 = vpop.permute.xlu0 %18  }
  0x81   :  { %21 = vst.msk [vmem:[#allocation0] sm:$0x1] %vm20_vm2, %v19_v7  }
  0x82   :  { %27 = vst.msk [vmem:[#allocation0] sm:$0x1] %vm26_vm3, %v25_v6  }
  0x89   :  { %v32_v8 = vld [vmem:[#allocation0] sm:$0x1] }
  0x8a   :  { %35 = vst [vmem:[%s59_s1] sm:$0x1] %v32_v8 }

// kernel: _lambda_.15
= control target key start
LH: loop header
LB: loop body
LE: loop exit
PB: predicated region body
PF: predicated region fallthrough
CT: control target
= control target key end

     0   :  { %s1676_s15 = smov 0   ;;  %s1678_s16 = smov 0   ;;  %s1920_s0 = inlined_call_operand.vmem [shape: bf16[512,256], index: 0, kind: input, shape index: {}]   ;;  %s1921_s1 = inlined_call_operand.vmem [shape: bf16[256,128], index: 1, kind: input, shape index: {}]   ;;  %s1922_s2 = inlined_call_operand.vmem [shape: bf16[512,128], index: 2, kind: output, shape index: {0}]   ;;  %s1923_s3 = inlined_call_operand.vmem [shape: f32[16,128], index: 3, kind: output, shape index: {1}]   ;;  %s1924_s4 = inlined_call_operand.vmem [shape: f32[16,128], index: 4, kind: output, shape index: {2}]  }
   0x1   :  { %s1680_s17 = smov 0  }
   0x2 LB: > { %s27_s18 = sadd.s32 1, %s1645_s16  ;;  %p1193_p0 = scmp.ge.s32.totalorder %s1649_s17, 1  ;;  %s1649_s17 = sphi %s1680_s17, %s15_s17   ;;  %s1645_s16 = sphi %s1678_s16, %s1926_s16   ;;  %s1641_s15 = sphi %s1676_s15, %s1925_s15  }
   0x3   : > { %p29_p1 = scmp.ge.s32.totalorder %s27_s18, 2  ;;  %p196_p2 = scmp.lt.s32.totalorder %s1649_s17, 3 }
   0x5   : > { %s1928_s18 = smov (%p29_p1, %s27_s18), 0  ;;  %p197_p3 = pnand %p1193_p0, %p196_p2 }
   0x6   : > { %s1194_s21 = sshll.u32 (!%p197_p3), %s1641_s15, 5  ;;  %p264_p5 = scmp.lt.s32.totalorder (!%p197_p3), %s1641_s15, 1 }
   0x7   : > { %200 = sbr.rel (%p197_p3) target bundleno = 339 (0x153), region = 28  ;;  %p245_p4 = scmp.lt.s32.totalorder (!%p197_p3), %s1194_s21, 63 }
   0xc   : > { %v1563_v0 = vld [vmem:[%s1921_s1 + $0x78] sm:$0xff]   ;;  %v1565_v2 = vld [vmem:[%s1921_s1 + $0x70] sm:$0xff]   ;;  %v1567_v4 = vld [vmem:[%s1921_s1 + $0x68] sm:$0xff]   ;;  %s1930_s21 = smov (!%p245_p4, %s1194_s21), 63  ;;  %s1932_s15 = smov (!%p264_p5, %s1641_s15), 1 }
   0xd   : > { %v1564_v1 = vld [vmem:[%s1921_s1 + $0x38] sm:$0xff]   ;;  %1411 = vmatprep.subr.bf16.mxu0 %v1563_v0  ;;  %1523 = vmatprep.subr.bf16.mxu1 %v1563_v0  ;;  %v1566_v3 = vld [vmem:[%s1921_s1 + $0x30] sm:$0xff]   ;;  %v1568_v5 = vld [vmem:[%s1921_s1 + $0x28] sm:$0xff]   ;;  %s1283_s10 = sshll.u32 %s1930_s21, 3  ;;  %s1198_s9 = sshll.u32 %s1930_s21, 2 }
   0xe   : > { %1412 = vmatpush3.bf16.msra.mxu0 %v1564_v1  ;;  %1531 = vmatpush3.bf16.msra.mxu1 %v1564_v1  ;;  %v1569_v6 = vld [vmem:[%s1921_s1 + $0x60] sm:$0xff]   ;;  %v1571_v8 = vld [vmem:[%s1921_s1 + $0x58] sm:$0xff]   ;;  %s1730_s19 = scalar_lea.vmem %s1920_s0, %s1283_s10  ;;  %v1573_v10 = vld [vmem:[%s1921_s1 + $0x50] sm:$0xff]   ;;  %s1795_s12 = scalar_lea.vmem %s1922_s2, %s1198_s9 }
   0xf   : > { %1413 = vmatprep.subr.bf16.mxu0 %v1565_v2  ;;  %1524 = vmatprep.subr.bf16.mxu1 %v1565_v2  ;;  %v1570_v7 = vld [vmem:[%s1921_s1 + $0x20] sm:$0xff]   ;;  %v1572_v9 = vld [vmem:[%s1921_s1 + $0x18] sm:$0xff]   ;;  %v1574_v12 = vld [vmem:[%s1921_s1 + $0x10] sm:$0xff]   ;;  %s1199_s21 = sshll.u32 %s1932_s15, 3 }
  0x10   : > { %v1581_v11 = vld [vmem:[%s1730_s19 + $0x4] ss:$8 sps:$4 sm:$0xff]   ;;  %v1579_v18 = vld [vmem:[%s1730_s19] ss:$8 sps:$4 sm:$0xff]   ;;  %v1582_v19 = vld [vmem:[%s1730_s19 + $0x14] ss:$8 sps:$4 sm:$0xff]   ;;  %s277_s23 = scalar_lea.vmem %s1924_s4, %s1199_s21 }
  0x11   : > { %631 = vmatprep.mubr.bf16.mxu0 %v1581_v11  ;;  %v1575_v13 = vld [vmem:[%s1921_s1 + $0x48] sm:$0xff]   ;;  %v1577_v16 = vld [vmem:[%s1921_s1 + $0x40] sm:$0xff]   ;;  %v1597_v21 = vld [vmem:[%s1730_s19 + $0x94] ss:$8 sps:$4 sm:$0xff]  }
  0x12   : > { %1414 = vmatpush3.bf16.msra.mxu0 %v1566_v3  ;;  %1532 = vmatpush3.bf16.msra.mxu1 %v1566_v3  ;;  %v1593_v14 = vld [vmem:[%s1730_s19 + $0x84] ss:$8 sps:$4 sm:$0xff]   ;;  %v1591_v20 = vld [vmem:[%s1730_s19 + $0x80] ss:$8 sps:$4 sm:$0xff]   ;;  %v1584_v22 = vld [vmem:[%s1730_s19 + $0x10] ss:$8 sps:$4 sm:$0xff]  }
  0x13   : > { %1415 = vmatprep.subr.bf16.mxu0 %v1567_v4  ;;  %1525 = vmatprep.subr.bf16.mxu1 %v1567_v4  ;;  %v1576_v15 = vld [vmem:[%s1921_s1 + $0x8] sm:$0xff]   ;;  %v1578_v17 = vld [vmem:[%s1921_s1] sm:$0xff]   ;;  %v1599_v24 = vld [vmem:[%s1730_s19 + $0x90] ss:$8 sps:$4 sm:$0xff]  }
  0x14   : > { %695 = vmatprep.mubr.bf16.mxu1 %v1593_v14  ;;  %v1585_v23 = vld [vmem:[%s1730_s19 + $0x24] ss:$8 sps:$4 sm:$0xff]   ;;  %v1587_v26 = vld [vmem:[%s1730_s19 + $0x20] ss:$8 sps:$4 sm:$0xff]   ;;  %v1588_v27 = vld [vmem:[%s1730_s19 + $0x34] ss:$8 sps:$4 sm:$0xff]  }
  0x15   : > { %v1603_v25 = vld [vmem:[%s1730_s19 + $0xa4] ss:$8 sps:$4 sm:$0xff]   ;;  %v1605_v28 = vld [vmem:[%s1730_s19 + $0xa0] ss:$8 sps:$4 sm:$0xff]   ;;  %v1609_v29 = vld [vmem:[%s1730_s19 + $0xb4] ss:$8 sps:$4 sm:$0xff]  }
  0x16   : > { %1416 = vmatpush3.bf16.msra.mxu0 %v1568_v5  ;;  %1533 = vmatpush3.bf16.msra.mxu1 %v1568_v5  ;;  %v1590_v30 = vld [vmem:[%s1730_s19 + $0x30] ss:$8 sps:$4 sm:$0xff]   ;;  %v1594_v31 = vld [vmem:[%s1730_s19 + $0x44] ss:$8 sps:$4 sm:$0xff]   ;;  %v1596_v34 = vld [vmem:[%s1730_s19 + $0x40] ss:$8 sps:$4 sm:$0xff]  }
  0x17   : > { %1417 = vmatprep.subr.bf16.mxu0 %v1569_v6  ;;  %1526 = vmatprep.subr.bf16.mxu1 %v1569_v6  ;;  %v1611_v32 = vld [vmem:[%s1730_s19 + $0xb0] ss:$8 sps:$4 sm:$0xff]   ;;  %v1615_v33 = vld [vmem:[%s1730_s19 + $0xc4] ss:$8 sps:$4 sm:$0xff]   ;;  %v1600_v35 = vld [vmem:[%s1730_s19 + $0x54] ss:$8 sps:$4 sm:$0xff]  }
  0x18   : > { %v1617_v36 = vld [vmem:[%s1730_s19 + $0xc0] ss:$8 sps:$4 sm:$0xff]   ;;  %v1618_v37 = vld [vmem:[%s1730_s19 + $0xd4] ss:$8 sps:$4 sm:$0xff]   ;;  %v1602_v38 = vld [vmem:[%s1730_s19 + $0x50] ss:$8 sps:$4 sm:$0xff]  }
  0x19   : > { %v1606_v39 = vld [vmem:[%s1730_s19 + $0x64] ss:$8 sps:$4 sm:$0xff]   ;;  %v1620_v40 = vld [vmem:[%s1730_s19 + $0xd0] ss:$8 sps:$4 sm:$0xff]   ;;  %v1608_v42 = vld [vmem:[%s1730_s19 + $0x60] ss:$8 sps:$4 sm:$0xff]  }
  0x1a   : > { %1418 = vmatpush3.bf16.msra.mxu0 %v1570_v7  ;;  %1534 = vmatpush3.bf16.msra.mxu1 %v1570_v7  ;;  %v1621_v41 = vld [vmem:[%s1730_s19 + $0xe4] ss:$8 sps:$4 sm:$0xff]   ;;  %v1612_v43 = vld [vmem:[%s1730_s19 + $0x74] ss:$8 sps:$4 sm:$0xff]   ;;  %v1623_v44 = vld [vmem:[%s1730_s19 + $0xe0] ss:$8 sps:$4 sm:$0xff]  }
  0x1b   : > { %1419 = vmatprep.subr.bf16.mxu0 %v1571_v8  ;;  %1527 = vmatprep.subr.bf16.mxu1 %v1571_v8  ;;  %v1624_v45 = vld [vmem:[%s1730_s19 + $0xf4] ss:$8 sps:$4 sm:$0xff]   ;;  %v1614_v46 = vld [vmem:[%s1730_s19 + $0x70] ss:$8 sps:$4 sm:$0xff]  }
  0x1c   : > { %v1626_v47 = vld [vmem:[%s1730_s19 + $0xf0] ss:$8 sps:$4 sm:$0xff]   ;;  %s270_s19 = scalar_lea.vmem %s1923_s3, %s1199_s21 }
  0x1e   : > { %1420 = vmatpush3.bf16.msra.mxu0 %v1572_v9  ;;  %1535 = vmatpush3.bf16.msra.mxu1 %v1572_v9 }
  0x1f   : > { %1421 = vmatprep.subr.bf16.mxu0 %v1573_v10  ;;  %1528 = vmatprep.subr.bf16.mxu1 %v1573_v10 }
  0x22   : > { %1422 = vmatpush3.bf16.msra.mxu0 %v1574_v12  ;;  %1536 = vmatpush3.bf16.msra.mxu1 %v1574_v12 }
  0x23   : > { %1423 = vmatprep.subr.bf16.mxu0 %v1575_v13  ;;  %1529 = vmatprep.subr.bf16.mxu1 %v1575_v13 }
  0x26   : > { %1424 = vmatpush3.bf16.msra.mxu0 %v1576_v15  ;;  %1537 = vmatpush3.bf16.msra.mxu1 %v1576_v15 }
  0x27   : > { %1425 = vmatprep.subr.bf16.mxu0 %v1577_v16  ;;  %1530 = vmatprep.subr.bf16.mxu1 %v1577_v16 }
  0x2a   : > { %1426 = vmatpush3.bf16.msra.mxu0 %v1578_v17  ;;  %1538 = vmatpush3.bf16.msra.mxu1 %v1578_v17 }
  0x2d   : > { %632 = vmatmul.mubr.bf16.vlgmr.msra.gmra.mxu0 %v1579_v18  ;;  %696 = vmatmul.mubr.bf16.vlgmr.msra.gmra.mxu1 %v1591_v20 }
  0x2e   : > { %639 = vmatprep.mubr.bf16.mxu0 %v1582_v19  ;;  %703 = vmatprep.mubr.bf16.mxu1 %v1597_v21 }
  0x35   : > { %640 = vmatmul.mubr.bf16.gmra.mxu0 %v1584_v22  ;;  %704 = vmatmul.mubr.bf16.gmra.mxu1 %v1599_v24 }
  0x36   : > { %647 = vmatprep.mubr.bf16.mxu0 %v1585_v23  ;;  %711 = vmatprep.mubr.bf16.mxu1 %v1603_v25 }
  0x3d   : > { %648 = vmatmul.mubr.bf16.gmra.mxu0 %v1587_v26  ;;  %712 = vmatmul.mubr.bf16.gmra.mxu1 %v1605_v28 }
  0x3e   : > { %655 = vmatprep.mubr.bf16.mxu0 %v1588_v27  ;;  %719 = vmatprep.mubr.bf16.mxu1 %v1609_v29 }
  0x45   : > { %656 = vmatmul.mubr.bf16.gmra.mxu0 %v1590_v30  ;;  %720 = vmatmul.mubr.bf16.gmra.mxu1 %v1611_v32 }
  0x46   : > { %663 = vmatprep.mubr.bf16.mxu0 %v1594_v31  ;;  %727 = vmatprep.mubr.bf16.mxu1 %v1615_v33 }
  0x4d   : > { %664 = vmatmul.mubr.bf16.gmra.mxu0 %v1596_v34  ;;  %728 = vmatmul.mubr.bf16.gmra.mxu1 %v1617_v36 }
  0x4e   : > { %671 = vmatprep.mubr.bf16.mxu0 %v1600_v35  ;;  %735 = vmatprep.mubr.bf16.mxu1 %v1618_v37 }
  0x55   : > { %672 = vmatmul.mubr.bf16.gmra.mxu0 %v1602_v38  ;;  %736 = vmatmul.mubr.bf16.gmra.mxu1 %v1620_v40 }
  0x56   : > { %679 = vmatprep.mubr.bf16.mxu0 %v1606_v39  ;;  %743 = vmatprep.mubr.bf16.mxu1 %v1621_v41 }
  0x5d   : > { %680 = vmatmul.mubr.bf16.gmra.mxu0 %v1608_v42  ;;  %744 = vmatmul.mubr.bf16.gmra.mxu1 %v1623_v44 }
  0x5e   : > { %687 = vmatprep.mubr.bf16.mxu0 %v1612_v43  ;;  %751 = vmatprep.mubr.bf16.mxu1 %v1624_v45 }
  0x65   : > { %688 = vmatmul.mubr.bf16.gmra.mxu0 %v1614_v46  ;;  %752 = vmatmul.mubr.bf16.gmra.mxu1 %v1626_v47 }
  0xed   : > { %v1427_v48 = vpop.f32.mrf.mxu0  ;;  %v1475_v49 = vpop.f32.mrf.mxu1 }
  0xef   : > { %v1428_v50 = vpop.f32.mrf.mxu0  ;;  %v1476_v51 = vpop.f32.mrf.mxu1 }
  0xf0   : > { %v1786_v55 = vadd.f32 %v1476_v51, %v1475_v49  ;;  %v1788_v56 = vadd.f32 %v1428_v50, %v1427_v48 }
  0xf1   : > { %v1430_v52 = vpop.f32.mrf.mxu0  ;;  %v1478_v53 = vpop.f32.mrf.mxu1 }
  0xf2   : > { %v952_v45 = vmul.f32 %v1788_v56, %v1788_v56 }
  0xf3   : > { %v1431_v54 = vpop.f32.mrf.mxu0  ;;  %v1479_v58 = vpop.f32.mrf.mxu1 }
  0xf4   : > { %v1790_v57 = vadd.f32 %v1431_v54, %v1430_v52  ;;  %v1797_v60 = vadd.f32 %v1479_v58, %v1478_v53 }
  0xf5   : > { %v1433_v59 = vpop.f32.mrf.mxu0  ;;  %v1481_v62 = vpop.f32.mrf.mxu1 }
  0xf6   : > { %v1319_v61 = vpack.c.bf16 %v1790_v57, %v1788_v56  ;;  %v1359_v0 = vpack.c.bf16 %v1797_v60, %v1786_v55  ;;  %v953_v41 = vmul.f32 %v1790_v57, %v1790_v57  ;;  %v920_v48 = vadd.f32 %v1790_v57, %v1788_v56 }
  0xf7   : > { %v1434_v63 = vpop.f32.mrf.mxu0  ;;  %v1482_v1 = vpop.f32.mrf.mxu1 }
  0xf8   : > { %1320 = vst [vmem:[%s1795_s12] sm:$0xff] %v1319_v61   ;;  %1403 = vst [vmem:[%s1795_s12 + $0x40] sm:$0xff] %v1359_v0   ;;  %v1805_v5 = vadd.f32 %v1482_v1, %v1481_v62  ;;  %v1435_v6 = vadd.f32 %v1434_v63, %v1433_v59  ;;  %v984_v50 = vadd.f32 %v953_v41, %v952_v45 }
  0xf9   : > { %v1436_v2 = vpop.f32.mrf.mxu0  ;;  %v1484_v3 = vpop.f32.mrf.mxu1 }
  0xfa   : > { %v954_v46 = vmul.f32 %v1435_v6, %v1435_v6  ;;  %v921_v54 = vadd.f32 %v1435_v6, %v920_v48 }
  0xfb   : > { %v1437_v4 = vpop.f32.mrf.mxu0  ;;  %v1485_v8 = vpop.f32.mrf.mxu1 }
  0xfc   : > { %v1438_v7 = vadd.f32 %v1437_v4, %v1436_v2  ;;  %v1807_v10 = vadd.f32 %v1485_v8, %v1484_v3  ;;  %v985_v62 = vadd.f32 %v984_v50, %v954_v46 }
  0xfd   : > { %v1439_v9 = vpop.f32.mrf.mxu0  ;;  %v1487_v12 = vpop.f32.mrf.mxu1 }
  0xfe   : > { %v1324_v11 = vpack.c.bf16 %v1438_v7, %v1435_v6  ;;  %v1364_v14 = vpack.c.bf16 %v1807_v10, %v1805_v5  ;;  %v955_v51 = vmul.f32 %v1438_v7, %v1438_v7  ;;  %v922_v2 = vadd.f32 %v1438_v7, %v921_v54 }
  0xff   : > { %v1440_v13 = vpop.f32.mrf.mxu0  ;;  %v1488_v15 = vpop.f32.mrf.mxu1 }
 0x100   : > { %1396 = vst [vmem:[%s1795_s12 + $0x8] sm:$0xff] %v1324_v11   ;;  %1404 = vst [vmem:[%s1795_s12 + $0x48] sm:$0xff] %v1364_v14   ;;  %v1813_v19 = vadd.f32 %v1488_v15, %v1487_v12  ;;  %v1441_v20 = vadd.f32 %v1440_v13, %v1439_v9  ;;  %v986_v57 = vadd.f32 %v985_v62, %v955_v51 }
 0x101   : > { %v1442_v16 = vpop.f32.mrf.mxu0  ;;  %v1490_v17 = vpop.f32.mrf.mxu1 }
 0x102   : > { %v956_v63 = vmul.f32 %v1441_v20, %v1441_v20  ;;  %v923_v6 = vadd.f32 %v1441_v20, %v922_v2 }
 0x103   : > { %v1443_v18 = vpop.f32.mrf.mxu0  ;;  %v1491_v22 = vpop.f32.mrf.mxu1 }
 0x104   : > { %v1444_v21 = vadd.f32 %v1443_v18, %v1442_v16  ;;  %v1815_v24 = vadd.f32 %v1491_v22, %v1490_v17  ;;  %v987_v12 = vadd.f32 %v986_v57, %v956_v63 }
 0x105   : > { %v1445_v23 = vpop.f32.mrf.mxu0  ;;  %v1493_v26 = vpop.f32.mrf.mxu1 }
 0x106   : > { %v1329_v25 = vpack.c.bf16 %v1444_v21, %v1441_v20  ;;  %v1369_v28 = vpack.c.bf16 %v1815_v24, %v1813_v19  ;;  %v957_v4 = vmul.f32 %v1444_v21, %v1444_v21  ;;  %v924_v14 = vadd.f32 %v1444_v21, %v923_v6 }
 0x107   : > { %v1446_v27 = vpop.f32.mrf.mxu0  ;;  %v1494_v29 = vpop.f32.mrf.mxu1 }
 0x108   : > { %1397 = vst [vmem:[%s1795_s12 + $0x10] sm:$0xff] %v1329_v25   ;;  %1405 = vst [vmem:[%s1795_s12 + $0x50] sm:$0xff] %v1369_v28   ;;  %v1821_v33 = vadd.f32 %v1494_v29, %v1493_v26  ;;  %v1447_v34 = vadd.f32 %v1446_v27, %v1445_v23  ;;  %v988_v17 = vadd.f32 %v987_v12, %v957_v4 }
 0x109   : > { %v1448_v30 = vpop.f32.mrf.mxu0  ;;  %v1496_v31 = vpop.f32.mrf.mxu1 }
 0x10a   : > { %v958_v15 = vmul.f32 %v1447_v34, %v1447_v34  ;;  %v925_v22 = vadd.f32 %v1447_v34, %v924_v14 }
 0x10b   : > { %v1449_v32 = vpop.f32.mrf.mxu0  ;;  %v1497_v36 = vpop.f32.mrf.mxu1 }
 0x10c   : > { %v1450_v35 = vadd.f32 %v1449_v32, %v1448_v30  ;;  %v1823_v38 = vadd.f32 %v1497_v36, %v1496_v31  ;;  %v989_v29 = vadd.f32 %v988_v17, %v958_v15 }
 0x10d   : > { %v1451_v37 = vpop.f32.mrf.mxu0  ;;  %v1499_v40 = vpop.f32.mrf.mxu1 }
 0x10e   : > { %v1334_v39 = vpack.c.bf16 %v1450_v35, %v1447_v34  ;;  %v1374_v43 = vpack.c.bf16 %v1823_v38, %v1821_v33  ;;  %v959_v23 = vmul.f32 %v1450_v35, %v1450_v35  ;;  %v926_v30 = vadd.f32 %v1450_v35, %v925_v22 }
 0x10f   : > { %v1452_v42 = vpop.f32.mrf.mxu0  ;;  %v1500_v44 = vpop.f32.mrf.mxu1 }
 0x110   : > { %1398 = vst [vmem:[%s1795_s12 + $0x18] sm:$0xff] %v1334_v39   ;;  %1406 = vst [vmem:[%s1795_s12 + $0x58] sm:$0xff] %v1374_v43   ;;  %v1835_v53 = vadd.f32 %v1500_v44, %v1499_v40  ;;  %v1453_v58 = vadd.f32 %v1452_v42, %v1451_v37  ;;  %v990_v39 = vadd.f32 %v989_v29, %v959_v23 }
 0x111   : > { %v1454_v47 = vpop.f32.mrf.mxu0  ;;  %v1502_v49 = vpop.f32.mrf.mxu1 }
 0x112   : > { %v960_v31 = vmul.f32 %v1453_v58, %v1453_v58  ;;  %v927_v34 = vadd.f32 %v1453_v58, %v926_v30 }
 0x113   : > { %v1455_v52 = vpop.f32.mrf.mxu0  ;;  %v1503_v61 = vpop.f32.mrf.mxu1 }
 0x114   : > { %v1456_v59 = vadd.f32 %v1455_v52, %v1454_v47  ;;  %v1837_v1 = vadd.f32 %v1503_v61, %v1502_v49  ;;  %v991_v43 = vadd.f32 %v990_v39, %v960_v31 }
 0x115   : > { %v1457_v0 = vpop.f32.mrf.mxu0  ;;  %v1505_v56 = vpop.f32.mrf.mxu1 }
 0x116   : > { %v1339_v3 = vpack.c.bf16 %v1456_v59, %v1453_v58  ;;  %v1379_v9 = vpack.c.bf16 %v1837_v1, %v1835_v53  ;;  %v961_v40 = vmul.f32 %v1456_v59, %v1456_v59  ;;  %v928_v44 = vadd.f32 %v1456_v59, %v927_v34 }
 0x117   : > { %v1458_v8 = vpop.f32.mrf.mxu0  ;;  %v1506_v11 = vpop.f32.mrf.mxu1 }
 0x118   : > { %1399 = vst [vmem:[%s1795_s12 + $0x20] sm:$0xff] %v1339_v3   ;;  %1407 = vst [vmem:[%s1795_s12 + $0x60] sm:$0xff] %v1379_v9   ;;  %v1843_v7 = vadd.f32 %v1506_v11, %v1505_v56  ;;  %v1459_v25 = vadd.f32 %v1458_v8, %v1457_v0  ;;  %v992_v49 = vadd.f32 %v991_v43, %v961_v40 }
 0x119   : > { %v1460_v13 = vpop.f32.mrf.mxu0  ;;  %v1508_v16 = vpop.f32.mrf.mxu1  ;;  %v970_v40 = vmul.f32 %v1805_v5, %v1805_v5  ;;  %v971_v43 = vmul.f32 %v1807_v10, %v1807_v10 }
 0x11a   : > { %v962_v45 = vmul.f32 %v1459_v25, %v1459_v25  ;;  %v929_v50 = vadd.f32 %v1459_v25, %v928_v44 }
 0x11b   : > { %v1461_v18 = vpop.f32.mrf.mxu0  ;;  %v1509_v27 = vpop.f32.mrf.mxu1 }
 0x11c   : > { %v1462_v26 = vadd.f32 %v1461_v18, %v1460_v13  ;;  %v1845_v28 = vadd.f32 %v1509_v27, %v1508_v16  ;;  %v993_v62 = vadd.f32 %v992_v49, %v962_v45  ;;  %v972_v45 = vmul.f32 %v1813_v19, %v1813_v19 }
 0x11d   : > { %v1463_v20 = vpop.f32.mrf.mxu0  ;;  %v1511_v32 = vpop.f32.mrf.mxu1  ;;  %v974_v49 = vmul.f32 %v1821_v33, %v1821_v33 }
 0x11e   : > { %v1344_v21 = vpack.c.bf16 %v1462_v26, %v1459_v25  ;;  %v1384_v37 = vpack.c.bf16 %v1845_v28, %v1843_v7  ;;  %v963_v51 = vmul.f32 %v1462_v26, %v1462_v26  ;;  %v930_v63 = vadd.f32 %v1462_v26, %v929_v50 }
 0x11f   : > { %v1464_v36 = vpop.f32.mrf.mxu0  ;;  %v1512_v41 = vpop.f32.mrf.mxu1 }
 0x120   : > { %1400 = vst [vmem:[%s1795_s12 + $0x28] sm:$0xff] %v1344_v21   ;;  %1408 = vst [vmem:[%s1795_s12 + $0x68] sm:$0xff] %v1384_v37   ;;  %v1465_v46 = vadd.f32 %v1464_v36, %v1463_v20  ;;  %v1851_v48 = vadd.f32 %v1512_v41, %v1511_v32  ;;  %v994_v57 = vadd.f32 %v993_v62, %v963_v51 }
 0x121   : > { %v1466_v42 = vpop.f32.mrf.mxu0  ;;  %v1514_v47 = vpop.f32.mrf.mxu1  ;;  %v968_v21 = vmul.f32 %v1786_v55, %v1786_v55  ;;  %v969_v37 = vmul.f32 %v1797_v60, %v1797_v60  ;;  %v975_v51 = vmul.f32 %v1823_v38, %v1823_v38 }
 0x122   : > { %v964_v0 = vmul.f32 %v1465_v46, %v1465_v46  ;;  %v931_v4 = vadd.f32 %v1465_v46, %v930_v63  ;;  %v977_v63 = vmul.f32 %v1837_v1, %v1837_v1 }
 0x123   : > { %v1467_v35 = vpop.f32.mrf.mxu0  ;;  %v1515_v54 = vpop.f32.mrf.mxu1 }
 0x124   : > { %v1468_v52 = vadd.f32 %v1467_v35, %v1466_v42  ;;  %v1853_v61 = vadd.f32 %v1515_v54, %v1514_v47  ;;  %v995_v12 = vadd.f32 %v994_v57, %v964_v0  ;;  %v976_v54 = vmul.f32 %v1835_v53, %v1835_v53 }
 0x125   : > { %v1469_v58 = vpop.f32.mrf.mxu0  ;;  %v1517_v2 = vpop.f32.mrf.mxu1 }
 0x126   : > { %v1349_v59 = vpack.c.bf16 %v1468_v52, %v1465_v46  ;;  %v1389_v56 = vpack.c.bf16 %v1853_v61, %v1851_v48  ;;  %v965_v8 = vmul.f32 %v1468_v52, %v1468_v52  ;;  %v932_v13 = vadd.f32 %v1468_v52, %v931_v4 }
 0x127   : > { %v1470_v3 = vpop.f32.mrf.mxu0  ;;  %v1518_v6 = vpop.f32.mrf.mxu1 }
 0x128   : > { %1401 = vst [vmem:[%s1795_s12 + $0x30] sm:$0xff] %v1349_v59   ;;  %v1471_v9 = vadd.f32 %v1470_v3, %v1469_v58  ;;  %1409 = vst [vmem:[%s1795_s12 + $0x70] sm:$0xff] %v1389_v56   ;;  %v1519_v17 = vadd.f32 %v1518_v6, %v1517_v2  ;;  %v996_v18 = vadd.f32 %v995_v12, %v965_v8 }
 0x129   : > { %v1472_v11 = vpop.f32.mrf.mxu0  ;;  %v1520_v15 = vpop.f32.mrf.mxu1 }
 0x12a   : > { %v966_v14 = vmul.f32 %v1471_v9, %v1471_v9  ;;  %v933_v22 = vadd.f32 %v1471_v9, %v932_v13 }
 0x12b   : > { %v1473_v16 = vpop.f32.mrf.mxu0  ;;  %v1521_v25 = vpop.f32.mrf.mxu1 }
 0x12c   : > { %v1474_v23 = vadd.f32 %v1473_v16, %v1472_v11  ;;  %v1522_v26 = vadd.f32 %v1521_v25, %v1520_v15  ;;  %v997_v27 = vadd.f32 %v996_v18, %v966_v14  ;;  %v982_v11 = vmul.f32 %v1519_v17, %v1519_v17 }
 0x12e   : > { %v1354_v20 = vpack.c.bf16 %v1474_v23, %v1471_v9  ;;  %v934_v29 = vadd.f32 %v1474_v23, %v933_v22  ;;  %v967_v30 = vmul.f32 %v1474_v23, %v1474_v23  ;;  %v1394_v31 = vpack.c.bf16 %v1522_v26, %v1519_v17 }
 0x12f   : > { %v981_v9 = vmul.f32 %v1853_v61, %v1853_v61  ;;  %v983_v13 = vmul.f32 %v1522_v26, %v1522_v26 }
 0x130   : > { %1402 = vst [vmem:[%s1795_s12 + $0x38] sm:$0xff] %v1354_v20   ;;  %v935_v32 = vadd.f32 %v1786_v55, %v934_v29  ;;  %v998_v36 = vadd.f32 %v997_v27, %v967_v30  ;;  %1410 = vst [vmem:[%s1795_s12 + $0x78] sm:$0xff] %v1394_v31  }
 0x132   : > { %v936_v39 = vadd.f32 %v1797_v60, %v935_v32  ;;  %v999_v34 = vadd.f32 %v998_v36, %v968_v21  ;;  %v973_v60 = vmul.f32 %v1815_v24, %v1815_v24 }
 0x134   : > { %v937_v41 = vadd.f32 %v1805_v5, %v936_v39  ;;  %v1000_v42 = vadd.f32 %v999_v34, %v969_v37 }
 0x136   : > { %v938_v44 = vadd.f32 %v1807_v10, %v937_v41  ;;  %v1001_v55 = vadd.f32 %v1000_v42, %v970_v40 }
 0x138   : > { %v1002_v46 = vadd.f32 %v1001_v55, %v971_v43  ;;  %v939_v47 = vadd.f32 %v1813_v19, %v938_v44 }
 0x13a   : > { %v940_v35 = vadd.f32 %v1815_v24, %v939_v47  ;;  %v1003_v5 = vadd.f32 %v1002_v46, %v972_v45 }
 0x13c   : > { %v941_v50 = vadd.f32 %v1821_v33, %v940_v35  ;;  %v1004_v10 = vadd.f32 %v1003_v5, %v973_v60 }
 0x13e   : > { %v942_v52 = vadd.f32 %v1823_v38, %v941_v50  ;;  %v1005_v19 = vadd.f32 %v1004_v10, %v974_v49  ;;  %v978_v38 = vmul.f32 %v1843_v7, %v1843_v7 }
 0x140   : > { %v943_v58 = vadd.f32 %v1835_v53, %v942_v52  ;;  %v1006_v24 = vadd.f32 %v1005_v19, %v975_v51  ;;  %v979_v53 = vmul.f32 %v1845_v28, %v1845_v28 }
 0x142   : > { %v944_v62 = vadd.f32 %v1837_v1, %v943_v58  ;;  %v1007_v33 = vadd.f32 %v1006_v24, %v976_v54  ;;  %v980_v1 = vmul.f32 %v1851_v48, %v1851_v48 }
 0x144   : > { %v1008_v0 = vadd.f32 %v1007_v33, %v977_v63  ;;  %v945_v59 = vadd.f32 %v1843_v7, %v944_v62 }
 0x146   : > { %v1009_v2 = vadd.f32 %v1008_v0, %v978_v38  ;;  %v946_v3 = vadd.f32 %v1845_v28, %v945_v59 }
 0x148   : > { %v1010_v56 = vadd.f32 %v1009_v2, %v979_v53  ;;  %v947_v57 = vadd.f32 %v1851_v48, %v946_v3 }
 0x14a   : > { %v1011_v4 = vadd.f32 %v1010_v56, %v980_v1  ;;  %v948_v8 = vadd.f32 %v1853_v61, %v947_v57 }
 0x14c   : > { %v1012_v7 = vadd.f32 %v1011_v4, %v981_v9  ;;  %v949_v6 = vadd.f32 %v1519_v17, %v948_v8 }
 0x14e   : > { %v1013_v28 = vadd.f32 %v1012_v7, %v982_v11  ;;  %v950_v12 = vadd.f32 %v1522_v26, %v949_v6 }
 0x150   : > { %951 = vst [vmem:[%s270_s19] sm:$0xff] %v950_v12  ;;  %v1014_v48 = vadd.f32 %v1013_v28, %v983_v13 }
 0x152   : > { %1015 = vst [vmem:[%s277_s23] sm:$0xff] %v1014_v48 }
 0x153 PF: > { %s15_s17 = sadd.s32 1, %s1649_s17   ;;  %s1925_s15 = smov %s1645_s16 }
 0x154   : > { %p12_p6 = scmp.ge.s32.totalorder %s15_s17, 4   ;;  %s1926_s16 = smov %s1928_s18 }
 0x156   :  { %14 = sbr.rel (!%p12_p6) target bundleno = 2 (0x2), region = 85 }

// kernel: _lambda_.16
= control target key start
LH: loop header
LB: loop body
LE: loop exit
PB: predicated region body
PF: predicated region fallthrough
CT: control target
= control target key end

     0   :  { %s851_s12 = smov 0   ;;  %s985_s0 = inlined_call_operand.vmem [shape: bf16[512,128], index: 0, kind: input, shape index: {}]   ;;  %s986_s1 = inlined_call_operand.vmem [shape: f32[1,128], index: 1, kind: input, shape index: {}]   ;;  %s987_s2 = inlined_call_operand.vmem [shape: f32[1,128], index: 2, kind: input, shape index: {}]   ;;  %s988_s3 = inlined_call_operand.vmem [shape: bf16[512,128], index: 3, kind: output, shape index: {}]  }
   0x1 LB: > { %s564_s13 = sadd.s32 4294967295, %s829_s12   ;;  %p568_p0 = scmp.ge.s32.totalorder %s829_s12, 1  ;;  %s829_s12 = sphi %s851_s12, %s13_s12  }
   0x2   : > { %p138_p1 = scmp.lt.s32.totalorder %s829_s12, 3 }
   0x4   : > { %p139_p2 = pnand %p568_p0, %p138_p1 }
   0x5   : > { %s569_s14 = sshll.u32 (!%p139_p2), %s564_s13, 5 }
   0x6   : > { %142 = sbr.rel (%p139_p2) target bundleno = 57 (0x39), region = 32  ;;  %p163_p3 = scmp.lt.s32.totalorder (!%p139_p2), %s569_s14, 63 }
   0xb   : > { %s990_s14 = smov (!%p163_p3, %s569_s14), 63  ;;  %v872_v0 = vld [vmem:[%s986_s1] ss:$0 sm:$0xff] }
   0xc   : > { %s570_s15 = sshll.u32 %s990_s14, 2  ;;  %v881_v9 = vld [vmem:[%s987_s2] ss:$0 sm:$0xff] }
   0xd   : > { %s867_s18 = scalar_lea.vmem %s985_s0, %s570_s15  ;;  %s906_s25 = scalar_lea.vmem %s988_s3, %s570_s15 }
   0xe   : > { %v642_v1 = vld [vmem:[%s867_s18] sm:$0xff]   ;;  %v785_v2 = vld [vmem:[%s867_s18 + $0x8] sm:$0xff]   ;;  %v786_v3 = vld [vmem:[%s867_s18 + $0x10] sm:$0xff]  }
   0xf   : > { %v643_v4 = vunpack.c.l.bf16 %v642_v1  ;;  %v644_v5 = vunpack.c.h.bf16 %v642_v1  ;;  %v647_v6 = vunpack.c.l.bf16 %v785_v2  ;;  %v648_v7 = vunpack.c.h.bf16 %v785_v2  ;;  %v787_v8 = vld [vmem:[%s867_s18 + $0x18] sm:$0xff]   ;;  %v788_v30 = vld [vmem:[%s867_s18 + $0x20] sm:$0xff]   ;;  %v789_v35 = vld [vmem:[%s867_s18 + $0x28] sm:$0xff]  }
  0x10   : > { %v651_v10 = vunpack.c.l.bf16 %v786_v3  ;;  %v652_v11 = vunpack.c.h.bf16 %v786_v3  ;;  %v655_v12 = vunpack.c.l.bf16 %v787_v8  ;;  %v656_v13 = vunpack.c.h.bf16 %v787_v8  ;;  %v790_v40 = vld [vmem:[%s867_s18 + $0x30] sm:$0xff]   ;;  %v791_v45 = vld [vmem:[%s867_s18 + $0x38] sm:$0xff]   ;;  %v792_v3 = vld [vmem:[%s867_s18 + $0x40] sm:$0xff]  }
  0x11   : > { %v245_v14 = vmul.f32 %v643_v4, %v872_v0  ;;  %v246_v15 = vmul.f32 %v644_v5, %v872_v0  ;;  %v247_v16 = vmul.f32 %v647_v6, %v872_v0  ;;  %v248_v17 = vmul.f32 %v648_v7, %v872_v0 }
  0x12   : > { %v249_v18 = vmul.f32 %v651_v10, %v872_v0  ;;  %v250_v19 = vmul.f32 %v652_v11, %v872_v0  ;;  %v251_v20 = vmul.f32 %v655_v12, %v872_v0  ;;  %v252_v21 = vmul.f32 %v656_v13, %v872_v0  ;;  %v793_v13 = vld [vmem:[%s867_s18 + $0x48] sm:$0xff]  }
  0x13   : > { %v284_v22 = vadd.f32 %v881_v9, %v245_v14  ;;  %v285_v23 = vadd.f32 %v881_v9, %v246_v15  ;;  %v286_v24 = vadd.f32 %v881_v9, %v247_v16  ;;  %v287_v25 = vadd.f32 %v881_v9, %v248_v17 }
  0x14   : > { %v288_v26 = vadd.f32 %v881_v9, %v249_v18  ;;  %v289_v27 = vadd.f32 %v881_v9, %v250_v19  ;;  %v290_v28 = vadd.f32 %v881_v9, %v251_v20  ;;  %v291_v29 = vadd.f32 %v881_v9, %v252_v21  ;;  %v794_v18 = vld [vmem:[%s867_s18 + $0x50] sm:$0xff]  }
  0x15   : > { %v316_v31 = vmax.f32 %v284_v22, 0.0  ;;  %v317_v32 = vmax.f32 %v285_v23, 0.0  ;;  %v318_v33 = vmax.f32 %v286_v24, 0.0  ;;  %v319_v34 = vmax.f32 %v287_v25, 0.0  ;;  %v795_v23 = vld [vmem:[%s867_s18 + $0x58] sm:$0xff]  }
  0x16   : > { %v320_v36 = vmax.f32 %v288_v26, 0.0  ;;  %v321_v37 = vmax.f32 %v289_v27, 0.0  ;;  %v322_v38 = vmax.f32 %v290_v28, 0.0  ;;  %v323_v39 = vmax.f32 %v291_v29, 0.0 }
  0x17   : > { %v708_v41 = vpack.c.bf16 %v317_v32, %v316_v31  ;;  %v713_v42 = vpack.c.bf16 %v319_v34, %v318_v33  ;;  %v659_v43 = vunpack.c.l.bf16 %v788_v30  ;;  %v660_v44 = vunpack.c.h.bf16 %v788_v30 }
  0x18   : > { %v718_v46 = vpack.c.bf16 %v321_v37, %v320_v36  ;;  %v723_v47 = vpack.c.bf16 %v323_v39, %v322_v38  ;;  %v663_v48 = vunpack.c.l.bf16 %v789_v35  ;;  %v664_v49 = vunpack.c.h.bf16 %v789_v35 }
  0x19   : > { %709 = vst [vmem:[%s906_s25] sm:$0xff] %v708_v41   ;;  %800 = vst [vmem:[%s906_s25 + $0x8] sm:$0xff] %v713_v42   ;;  %v253_v50 = vmul.f32 %v659_v43, %v872_v0  ;;  %v254_v51 = vmul.f32 %v660_v44, %v872_v0  ;;  %v667_v52 = vunpack.c.l.bf16 %v790_v40  ;;  %v668_v53 = vunpack.c.h.bf16 %v790_v40  ;;  %v796_v40 = vld [vmem:[%s867_s18 + $0x60] sm:$0xff]  }
  0x1a   : > { %801 = vst [vmem:[%s906_s25 + $0x10] sm:$0xff] %v718_v46   ;;  %802 = vst [vmem:[%s906_s25 + $0x18] sm:$0xff] %v723_v47   ;;  %v255_v54 = vmul.f32 %v663_v48, %v872_v0  ;;  %v256_v55 = vmul.f32 %v664_v49, %v872_v0  ;;  %v671_v56 = vunpack.c.l.bf16 %v791_v45  ;;  %v672_v57 = vunpack.c.h.bf16 %v791_v45 }
  0x1b   : > { %v292_v58 = vadd.f32 %v881_v9, %v253_v50  ;;  %v293_v59 = vadd.f32 %v881_v9, %v254_v51  ;;  %v257_v60 = vmul.f32 %v667_v52, %v872_v0  ;;  %v258_v61 = vmul.f32 %v668_v53, %v872_v0  ;;  %v797_v53 = vld [vmem:[%s867_s18 + $0x68] sm:$0xff]  }
  0x1c   : > { %v294_v62 = vadd.f32 %v881_v9, %v255_v54  ;;  %v295_v63 = vadd.f32 %v881_v9, %v256_v55  ;;  %v259_v1 = vmul.f32 %v671_v56, %v872_v0  ;;  %v260_v2 = vmul.f32 %v672_v57, %v872_v0 }
  0x1d   : > { %v324_v4 = vmax.f32 %v292_v58, 0.0  ;;  %v325_v5 = vmax.f32 %v293_v59, 0.0  ;;  %v296_v6 = vadd.f32 %v881_v9, %v257_v60  ;;  %v297_v7 = vadd.f32 %v881_v9, %v258_v61  ;;  %v798_v58 = vld [vmem:[%s867_s18 + $0x70] sm:$0xff]  }
  0x1e   : > { %v326_v8 = vmax.f32 %v294_v62, 0.0  ;;  %v327_v10 = vmax.f32 %v295_v63, 0.0  ;;  %v298_v11 = vadd.f32 %v881_v9, %v259_v1  ;;  %v299_v12 = vadd.f32 %v881_v9, %v260_v2  ;;  %v799_v63 = vld [vmem:[%s867_s18 + $0x78] sm:$0xff]  }
  0x1f   : > { %v728_v14 = vpack.c.bf16 %v325_v5, %v324_v4  ;;  %v328_v15 = vmax.f32 %v296_v6, 0.0  ;;  %v329_v16 = vmax.f32 %v297_v7, 0.0  ;;  %v675_v17 = vunpack.c.l.bf16 %v792_v3 }
  0x20   : > { %v733_v19 = vpack.c.bf16 %v327_v10, %v326_v8  ;;  %v330_v20 = vmax.f32 %v298_v11, 0.0  ;;  %v331_v21 = vmax.f32 %v299_v12, 0.0  ;;  %v676_v22 = vunpack.c.h.bf16 %v792_v3 }
  0x21   : > { %803 = vst [vmem:[%s906_s25 + $0x20] sm:$0xff] %v728_v14   ;;  %v738_v24 = vpack.c.bf16 %v329_v16, %v328_v15  ;;  %v261_v25 = vmul.f32 %v675_v17, %v872_v0  ;;  %v679_v26 = vunpack.c.l.bf16 %v793_v13  ;;  %v680_v27 = vunpack.c.h.bf16 %v793_v13 }
  0x22   : > { %804 = vst [vmem:[%s906_s25 + $0x28] sm:$0xff] %v733_v19   ;;  %v743_v28 = vpack.c.bf16 %v331_v21, %v330_v20  ;;  %v262_v29 = vmul.f32 %v676_v22, %v872_v0  ;;  %v683_v30 = vunpack.c.l.bf16 %v794_v18  ;;  %v684_v31 = vunpack.c.h.bf16 %v794_v18 }
  0x23   : > { %805 = vst [vmem:[%s906_s25 + $0x30] sm:$0xff] %v738_v24   ;;  %v300_v32 = vadd.f32 %v881_v9, %v261_v25  ;;  %v263_v33 = vmul.f32 %v679_v26, %v872_v0  ;;  %v264_v34 = vmul.f32 %v680_v27, %v872_v0  ;;  %v687_v35 = vunpack.c.l.bf16 %v795_v23 }
  0x24   : > { %806 = vst [vmem:[%s906_s25 + $0x38] sm:$0xff] %v743_v28   ;;  %v301_v36 = vadd.f32 %v881_v9, %v262_v29  ;;  %v265_v37 = vmul.f32 %v683_v30, %v872_v0  ;;  %v266_v38 = vmul.f32 %v684_v31, %v872_v0  ;;  %v688_v39 = vunpack.c.h.bf16 %v795_v23 }
  0x25   : > { %v332_v41 = vmax.f32 %v300_v32, 0.0  ;;  %v302_v42 = vadd.f32 %v881_v9, %v263_v33  ;;  %v303_v43 = vadd.f32 %v881_v9, %v264_v34  ;;  %v267_v44 = vmul.f32 %v687_v35, %v872_v0 }
  0x26   : > { %v333_v45 = vmax.f32 %v301_v36, 0.0  ;;  %v304_v46 = vadd.f32 %v881_v9, %v265_v37  ;;  %v305_v47 = vadd.f32 %v881_v9, %v266_v38  ;;  %v268_v48 = vmul.f32 %v688_v39, %v872_v0 }
  0x27   : > { %v334_v49 = vmax.f32 %v302_v42, 0.0  ;;  %v335_v50 = vmax.f32 %v303_v43, 0.0  ;;  %v306_v51 = vadd.f32 %v881_v9, %v267_v44  ;;  %v691_v52 = vunpack.c.l.bf16 %v796_v40 }
  0x28   : > { %v748_v54 = vpack.c.bf16 %v333_v45, %v332_v41  ;;  %v336_v55 = vmax.f32 %v304_v46, 0.0  ;;  %v337_v56 = vmax.f32 %v305_v47, 0.0  ;;  %v307_v57 = vadd.f32 %v881_v9, %v268_v48 }
  0x29   : > { %v753_v59 = vpack.c.bf16 %v335_v50, %v334_v49  ;;  %v338_v60 = vmax.f32 %v306_v51, 0.0  ;;  %v692_v61 = vunpack.c.h.bf16 %v796_v40  ;;  %v269_v62 = vmul.f32 %v691_v52, %v872_v0 }
  0x2a   : > { %807 = vst [vmem:[%s906_s25 + $0x40] sm:$0xff] %v748_v54   ;;  %v758_v1 = vpack.c.bf16 %v337_v56, %v336_v55  ;;  %v339_v2 = vmax.f32 %v307_v57, 0.0  ;;  %v695_v3 = vunpack.c.l.bf16 %v797_v53  ;;  %v696_v4 = vunpack.c.h.bf16 %v797_v53 }
  0x2b   : > { %808 = vst [vmem:[%s906_s25 + $0x48] sm:$0xff] %v753_v59   ;;  %v270_v5 = vmul.f32 %v692_v61, %v872_v0  ;;  %v308_v6 = vadd.f32 %v881_v9, %v269_v62  ;;  %v699_v7 = vunpack.c.l.bf16 %v798_v58  ;;  %v700_v8 = vunpack.c.h.bf16 %v798_v58 }
  0x2c   : > { %809 = vst [vmem:[%s906_s25 + $0x50] sm:$0xff] %v758_v1   ;;  %v763_v10 = vpack.c.bf16 %v339_v2, %v338_v60  ;;  %v271_v11 = vmul.f32 %v695_v3, %v872_v0  ;;  %v272_v12 = vmul.f32 %v696_v4, %v872_v0  ;;  %v703_v13 = vunpack.c.l.bf16 %v799_v63 }
  0x2d   : > { %v309_v14 = vadd.f32 %v881_v9, %v270_v5  ;;  %v340_v15 = vmax.f32 %v308_v6, 0.0  ;;  %v273_v16 = vmul.f32 %v699_v7, %v872_v0  ;;  %v274_v17 = vmul.f32 %v700_v8, %v872_v0 }
  0x2e   : > { %810 = vst [vmem:[%s906_s25 + $0x58] sm:$0xff] %v763_v10   ;;  %v310_v18 = vadd.f32 %v881_v9, %v271_v11  ;;  %v311_v19 = vadd.f32 %v881_v9, %v272_v12  ;;  %v704_v20 = vunpack.c.h.bf16 %v799_v63  ;;  %v275_v21 = vmul.f32 %v703_v13, %v872_v0 }
  0x2f   : > { %v341_v22 = vmax.f32 %v309_v14, 0.0  ;;  %v312_v23 = vadd.f32 %v881_v9, %v273_v16  ;;  %v313_v24 = vadd.f32 %v881_v9, %v274_v17 }
  0x30   : > { %v342_v25 = vmax.f32 %v310_v18, 0.0  ;;  %v343_v26 = vmax.f32 %v311_v19, 0.0  ;;  %v276_v27 = vmul.f32 %v704_v20, %v872_v0  ;;  %v314_v28 = vadd.f32 %v881_v9, %v275_v21 }
  0x31   : > { %v768_v29 = vpack.c.bf16 %v341_v22, %v340_v15  ;;  %v344_v30 = vmax.f32 %v312_v23, 0.0  ;;  %v345_v31 = vmax.f32 %v313_v24, 0.0 }
  0x32   : > { %v773_v32 = vpack.c.bf16 %v343_v26, %v342_v25  ;;  %v315_v33 = vadd.f32 %v881_v9, %v276_v27  ;;  %v346_v34 = vmax.f32 %v314_v28, 0.0 }
  0x33   : > { %811 = vst [vmem:[%s906_s25 + $0x60] sm:$0xff] %v768_v29   ;;  %v778_v35 = vpack.c.bf16 %v345_v31, %v344_v30 }
  0x34   : > { %812 = vst [vmem:[%s906_s25 + $0x68] sm:$0xff] %v773_v32   ;;  %v347_v36 = vmax.f32 %v315_v33, 0.0 }
  0x35   : > { %813 = vst [vmem:[%s906_s25 + $0x70] sm:$0xff] %v778_v35  }
  0x36   : > { %v783_v37 = vpack.c.bf16 %v347_v36, %v346_v34 }
  0x38   : > { %814 = vst [vmem:[%s906_s25 + $0x78] sm:$0xff] %v783_v37  }
  0x39 PF: > { %s13_s12 = sadd.s32 1, %s829_s12  }
  0x3a   : > { %p10_p4 = scmp.ge.s32.totalorder %s13_s12, 4  }
  0x3c   :  { %12 = sbr.rel (!%p10_p4) target bundleno = 1 (0x1), region = 62 }

// kernel: _lambda_.17
= control target key start
LH: loop header
LB: loop body
LE: loop exit
PB: predicated region body
PF: predicated region fallthrough
CT: control target
= control target key end

     0   :  { %s2006_s9 = smov 0   ;;  %s2008_s10 = smov 0   ;;  %s2138_s0 = inlined_call_operand.vmem [shape: bf16[2048,128], index: 0, kind: input, shape index: {}]   ;;  %s2139_s1 = inlined_call_operand.vmem [shape: bf16[128,128], index: 1, kind: input, shape index: {}]   ;;  %s2140_s2 = inlined_call_operand.vmem [shape: bf16[2048,128], index: 2, kind: output, shape index: {}]  }
   0x1   :  { %s2010_s11 = smov 0  }
   0x2 LB: > { %s24_s12 = sadd.s32 1, %s1985_s10  ;;  %p1273_p0 = scmp.ge.s32.totalorder %s1989_s11, 1  ;;  %s1989_s11 = sphi %s2010_s11, %s12_s11   ;;  %s1985_s10 = sphi %s2008_s10, %s2142_s10   ;;  %s1981_s9 = sphi %s2006_s9, %s2141_s9  }
   0x3   : > { %p26_p1 = scmp.ge.s32.totalorder %s24_s12, 4  ;;  %p136_p2 = scmp.lt.s32.totalorder %s1989_s11, 5 }
   0x5   : > { %s2144_s12 = smov (%p26_p1, %s24_s12), 0  ;;  %p137_p3 = pnand %p1273_p0, %p136_p2 }
   0x6   : > { %s1274_s15 = sshll.u32 (!%p137_p3), %s1981_s9, 6 }
   0x7   : > { %140 = sbr.rel (%p137_p3) target bundleno = 318 (0x13e), region = 28  ;;  %p166_p4 = scmp.lt.s32.totalorder (!%p137_p3), %s1274_s15, 255 }
   0xc   : > { %v1799_v0 = vld [vmem:[%s2139_s1 + $0x38] sm:$0xff]   ;;  %v1800_v1 = vld [vmem:[%s2139_s1 + $0x30] sm:$0xff]   ;;  %s2146_s15 = smov (!%p166_p4, %s1274_s15), 255  ;;  %v1801_v2 = vld [vmem:[%s2139_s1 + $0x28] sm:$0xff]  }
   0xd   : > { %1679 = vmatprep.subr.bf16.mxu0 %v1799_v0  ;;  %1759 = vmatprep.subr.bf16.mxu1 %v1799_v0  ;;  %s1275_s20 = sshll.u32 %s2146_s15, 2  ;;  %v1802_v3 = vld [vmem:[%s2139_s1 + $0x20] sm:$0xff]   ;;  %v1803_v6 = vld [vmem:[%s2139_s1 + $0x18] sm:$0xff]   ;;  %v1804_v7 = vld [vmem:[%s2139_s1 + $0x10] sm:$0xff]  }
   0xe   : > { %1680 = vmatpush3.bf16.msra.mxu0 %v1799_v0  ;;  %1767 = vmatpush3.bf16.msra.mxu1 %v1799_v0  ;;  %s2041_s23 = scalar_lea.vmem %s2138_s0, %s1275_s20  ;;  %v1805_v8 = vld [vmem:[%s2139_s1 + $0x8] sm:$0xff]   ;;  %v1806_v9 = vld [vmem:[%s2139_s1] sm:$0xff]   ;;  %s2095_s8 = scalar_lea.vmem %s2140_s2, %s1275_s20 }
   0xf   : > { %1681 = vmatprep.subr.bf16.mxu0 %v1800_v1  ;;  %1760 = vmatprep.subr.bf16.mxu1 %v1800_v1  ;;  %v1807_v4 = vld [vmem:[%s2041_s23] sm:$0xff]   ;;  %v1809_v10 = vld [vmem:[%s2041_s23 + $0x8] sm:$0xff]   ;;  %v1811_v12 = vld [vmem:[%s2041_s23 + $0x10] sm:$0xff]  }
  0x10   : > { %v1808_v5 = vld [vmem:[%s2041_s23 + $0x80] sm:$0xff]   ;;  %1695 = vmatprep.mubr.bf16.mxu0 %v1807_v4  ;;  %v1810_v11 = vld [vmem:[%s2041_s23 + $0x88] sm:$0xff]   ;;  %v1812_v13 = vld [vmem:[%s2041_s23 + $0x90] sm:$0xff]  }
  0x11   : > { %1727 = vmatprep.mubr.bf16.mxu1 %v1808_v5  ;;  %v1813_v14 = vld [vmem:[%s2041_s23 + $0x18] sm:$0xff]   ;;  %v1815_v16 = vld [vmem:[%s2041_s23 + $0x20] sm:$0xff]   ;;  %v1817_v18 = vld [vmem:[%s2041_s23 + $0x28] sm:$0xff]  }
  0x12   : > { %1682 = vmatpush3.bf16.msra.mxu0 %v1800_v1  ;;  %1768 = vmatpush3.bf16.msra.mxu1 %v1800_v1  ;;  %v1814_v15 = vld [vmem:[%s2041_s23 + $0x98] sm:$0xff]   ;;  %v1816_v17 = vld [vmem:[%s2041_s23 + $0xa0] sm:$0xff]   ;;  %v1818_v19 = vld [vmem:[%s2041_s23 + $0xa8] sm:$0xff]  }
  0x13   : > { %1683 = vmatprep.subr.bf16.mxu0 %v1801_v2  ;;  %1761 = vmatprep.subr.bf16.mxu1 %v1801_v2  ;;  %v1819_v20 = vld [vmem:[%s2041_s23 + $0x30] sm:$0xff]   ;;  %v1821_v22 = vld [vmem:[%s2041_s23 + $0x38] sm:$0xff]   ;;  %v1823_v24 = vld [vmem:[%s2041_s23 + $0x40] sm:$0xff]  }
  0x14   : > { %v1820_v21 = vld [vmem:[%s2041_s23 + $0xb0] sm:$0xff]   ;;  %v1822_v23 = vld [vmem:[%s2041_s23 + $0xb8] sm:$0xff]   ;;  %v1824_v25 = vld [vmem:[%s2041_s23 + $0xc0] sm:$0xff]  }
  0x15   : > { %v1825_v26 = vld [vmem:[%s2041_s23 + $0x48] sm:$0xff]   ;;  %v1827_v28 = vld [vmem:[%s2041_s23 + $0x50] sm:$0xff]   ;;  %v1829_v30 = vld [vmem:[%s2041_s23 + $0x58] sm:$0xff]  }
  0x16   : > { %1684 = vmatpush3.bf16.msra.mxu0 %v1801_v2  ;;  %1769 = vmatpush3.bf16.msra.mxu1 %v1801_v2  ;;  %v1826_v27 = vld [vmem:[%s2041_s23 + $0xc8] sm:$0xff]   ;;  %v1828_v29 = vld [vmem:[%s2041_s23 + $0xd0] sm:$0xff]   ;;  %v1830_v31 = vld [vmem:[%s2041_s23 + $0xd8] sm:$0xff]  }
  0x17   : > { %1685 = vmatprep.subr.bf16.mxu0 %v1802_v3  ;;  %1762 = vmatprep.subr.bf16.mxu1 %v1802_v3  ;;  %v1831_v32 = vld [vmem:[%s2041_s23 + $0x60] sm:$0xff]   ;;  %v1833_v34 = vld [vmem:[%s2041_s23 + $0x68] sm:$0xff]   ;;  %v1835_v36 = vld [vmem:[%s2041_s23 + $0x70] sm:$0xff]  }
  0x18   : > { %v1832_v33 = vld [vmem:[%s2041_s23 + $0xe0] sm:$0xff]   ;;  %v1834_v35 = vld [vmem:[%s2041_s23 + $0xe8] sm:$0xff]   ;;  %v1836_v37 = vld [vmem:[%s2041_s23 + $0xf0] sm:$0xff]  }
  0x19   : > { %v1837_v38 = vld [vmem:[%s2041_s23 + $0x78] sm:$0xff]  }
  0x1a   : > { %1686 = vmatpush3.bf16.msra.mxu0 %v1802_v3  ;;  %1770 = vmatpush3.bf16.msra.mxu1 %v1802_v3  ;;  %v1838_v39 = vld [vmem:[%s2041_s23 + $0xf8] sm:$0xff]  }
  0x1b   : > { %1687 = vmatprep.subr.bf16.mxu0 %v1803_v6  ;;  %1763 = vmatprep.subr.bf16.mxu1 %v1803_v6 }
  0x1e   : > { %1688 = vmatpush3.bf16.msra.mxu0 %v1803_v6  ;;  %1771 = vmatpush3.bf16.msra.mxu1 %v1803_v6 }
  0x1f   : > { %1689 = vmatprep.subr.bf16.mxu0 %v1804_v7  ;;  %1764 = vmatprep.subr.bf16.mxu1 %v1804_v7 }
  0x22   : > { %1690 = vmatpush3.bf16.msra.mxu0 %v1804_v7  ;;  %1772 = vmatpush3.bf16.msra.mxu1 %v1804_v7 }
  0x23   : > { %1691 = vmatprep.subr.bf16.mxu0 %v1805_v8  ;;  %1765 = vmatprep.subr.bf16.mxu1 %v1805_v8 }
  0x26   : > { %1692 = vmatpush3.bf16.msra.mxu0 %v1805_v8  ;;  %1773 = vmatpush3.bf16.msra.mxu1 %v1805_v8 }
  0x27   : > { %1693 = vmatprep.subr.bf16.mxu0 %v1806_v9  ;;  %1766 = vmatprep.subr.bf16.mxu1 %v1806_v9 }
  0x2a   : > { %1694 = vmatpush3.bf16.msra.mxu0 %v1806_v9  ;;  %1774 = vmatpush3.bf16.msra.mxu1 %v1806_v9 }
  0x2d   : > { %1696 = vmatmul.mubr.bf16.vlgmr.msra.gmra.mxu0 %v1809_v10  ;;  %1728 = vmatmul.mubr.bf16.vlgmr.msra.gmra.mxu1 %v1810_v11 }
  0x2e   : > { %1699 = vmatprep.mubr.bf16.mxu0 %v1811_v12  ;;  %1731 = vmatprep.mubr.bf16.mxu1 %v1812_v13 }
  0x35   : > { %1700 = vmatmul.mubr.bf16.gmra.mxu0 %v1813_v14  ;;  %1732 = vmatmul.mubr.bf16.gmra.mxu1 %v1814_v15 }
  0x36   : > { %1703 = vmatprep.mubr.bf16.mxu0 %v1815_v16  ;;  %1735 = vmatprep.mubr.bf16.mxu1 %v1816_v17 }
  0x3d   : > { %1704 = vmatmul.mubr.bf16.gmra.mxu0 %v1817_v18  ;;  %1736 = vmatmul.mubr.bf16.gmra.mxu1 %v1818_v19 }
  0x3e   : > { %1707 = vmatprep.mubr.bf16.mxu0 %v1819_v20  ;;  %1739 = vmatprep.mubr.bf16.mxu1 %v1820_v21 }
  0x45   : > { %1708 = vmatmul.mubr.bf16.gmra.mxu0 %v1821_v22  ;;  %1740 = vmatmul.mubr.bf16.gmra.mxu1 %v1822_v23 }
  0x46   : > { %1711 = vmatprep.mubr.bf16.mxu0 %v1823_v24  ;;  %1743 = vmatprep.mubr.bf16.mxu1 %v1824_v25 }
  0x4d   : > { %1712 = vmatmul.mubr.bf16.gmra.mxu0 %v1825_v26  ;;  %1744 = vmatmul.mubr.bf16.gmra.mxu1 %v1826_v27 }
  0x4e   : > { %1715 = vmatprep.mubr.bf16.mxu0 %v1827_v28  ;;  %1747 = vmatprep.mubr.bf16.mxu1 %v1828_v29 }
  0x55   : > { %1716 = vmatmul.mubr.bf16.gmra.mxu0 %v1829_v30  ;;  %1748 = vmatmul.mubr.bf16.gmra.mxu1 %v1830_v31 }
  0x56   : > { %1719 = vmatprep.mubr.bf16.mxu0 %v1831_v32  ;;  %1751 = vmatprep.mubr.bf16.mxu1 %v1832_v33 }
  0x5d   : > { %1720 = vmatmul.mubr.bf16.gmra.mxu0 %v1833_v34  ;;  %1752 = vmatmul.mubr.bf16.gmra.mxu1 %v1834_v35 }
  0x5e   : > { %1723 = vmatprep.mubr.bf16.mxu0 %v1835_v36  ;;  %1755 = vmatprep.mubr.bf16.mxu1 %v1836_v37 }
  0x65   : > { %1724 = vmatmul.mubr.bf16.gmra.mxu0 %v1837_v38  ;;  %1756 = vmatmul.mubr.bf16.gmra.mxu1 %v1838_v39 }
  0xed   : > { %v1697_v40 = vpop.f32.mrf.mxu0  ;;  %v1729_v41 = vpop.f32.mrf.mxu1 }
  0xee   : > { %1839 = vtanh.f32 %v1697_v40 }
  0xef   : > { %1841 = vtanh.f32 %v1729_v41  ;;  %v539_v42 = vpop.f32.mrf.mxu0  ;;  %v667_v43 = vpop.f32.mrf.mxu1 }
  0xf0   : > { %1843 = vtanh.f32 %v539_v42 }
  0xf1   : > { %1845 = vtanh.f32 %v667_v43  ;;  %v1698_v44 = vpop.f32.mrf.mxu0  ;;  %v1730_v45 = vpop.f32.mrf.mxu1 }
  0xf2   : > { %1847 = vtanh.f32 %v1698_v44 }
  0xf3   : > { %1849 = vtanh.f32 %v1730_v45  ;;  %v542_v46 = vpop.f32.mrf.mxu0  ;;  %v670_v47 = vpop.f32.mrf.mxu1 }
  0xf4   : > { %1851 = vtanh.f32 %v542_v46 }
  0xf5   : > { %1853 = vtanh.f32 %v670_v47  ;;  %v1701_v48 = vpop.f32.mrf.mxu0  ;;  %v1733_v49 = vpop.f32.mrf.mxu1 }
  0xf6   : > { %1855 = vtanh.f32 %v1701_v48 }
  0xf7   : > { %1857 = vtanh.f32 %v1733_v49  ;;  %v555_v50 = vpop.f32.mrf.mxu0  ;;  %v683_v51 = vpop.f32.mrf.mxu1 }
  0xf8   : > { %1859 = vtanh.f32 %v555_v50 }
  0xf9   : > { %1861 = vtanh.f32 %v683_v51  ;;  %v1702_v52 = vpop.f32.mrf.mxu0  ;;  %v1734_v53 = vpop.f32.mrf.mxu1 }
  0xfa   : > { %1863 = vtanh.f32 %v1702_v52 }
  0xfb   : > { %v1840_v54 = vpop.eup %1839  ;;  %1865 = vtanh.f32 %v1734_v53  ;;  %v558_v55 = vpop.f32.mrf.mxu0 }
  0xfc   : > { %v686_v56 = vpop.f32.mrf.mxu1  ;;  %v1842_v57 = vpop.eup %1841  ;;  %1867 = vtanh.f32 %v558_v55 }
  0xfd   : > { %v1844_v58 = vpop.eup %1843  ;;  %1869 = vtanh.f32 %v686_v56  ;;  %v1705_v59 = vpop.f32.mrf.mxu0 }
  0xfe   : > { %v1737_v60 = vpop.f32.mrf.mxu1  ;;  %v1846_v61 = vpop.eup %1845  ;;  %1871 = vtanh.f32 %v1705_v59 }
  0xff   : > { %v1848_v62 = vpop.eup %1847  ;;  %1873 = vtanh.f32 %v1737_v60  ;;  %v571_v63 = vpop.f32.mrf.mxu0 }
 0x100   : > { %v699_v0 = vpop.f32.mrf.mxu1  ;;  %v1850_v1 = vpop.eup %1849  ;;  %v1456_v2 = vpack.c.bf16 %v1848_v62, %v1840_v54  ;;  %1875 = vtanh.f32 %v571_v63 }
 0x101   : > { %v1852_v3 = vpop.eup %1851  ;;  %v1536_v4 = vpack.c.bf16 %v1850_v1, %v1842_v57  ;;  %1877 = vtanh.f32 %v699_v0  ;;  %v1706_v5 = vpop.f32.mrf.mxu0 }
 0x102   : > { %v1738_v6 = vpop.f32.mrf.mxu1  ;;  %v1854_v7 = vpop.eup %1853  ;;  %1608 = vst [vmem:[%s2095_s8 + $0x8] sm:$0xff] %v1456_v2   ;;  %v1451_v8 = vpack.c.bf16 %v1852_v3, %v1844_v58  ;;  %1879 = vtanh.f32 %v1706_v5 }
 0x103   : > { %v1856_v9 = vpop.eup %1855  ;;  %1624 = vst [vmem:[%s2095_s8 + $0x88] sm:$0xff] %v1536_v4   ;;  %v1531_v10 = vpack.c.bf16 %v1854_v7, %v1846_v61  ;;  %1881 = vtanh.f32 %v1738_v6  ;;  %v574_v11 = vpop.f32.mrf.mxu0 }
 0x104   : > { %v702_v12 = vpop.f32.mrf.mxu1  ;;  %v1858_v13 = vpop.eup %1857  ;;  %1452 = vst [vmem:[%s2095_s8] sm:$0xff] %v1451_v8   ;;  %1883 = vtanh.f32 %v574_v11 }
 0x105   : > { %v1860_v14 = vpop.eup %1859  ;;  %1623 = vst [vmem:[%s2095_s8 + $0x80] sm:$0xff] %v1531_v10   ;;  %1885 = vtanh.f32 %v702_v12  ;;  %v1709_v15 = vpop.f32.mrf.mxu0 }
 0x106   : > { %v1741_v16 = vpop.f32.mrf.mxu1  ;;  %v1862_v17 = vpop.eup %1861  ;;  %1887 = vtanh.f32 %v1709_v15 }
 0x107   : > { %v1864_v18 = vpop.eup %1863  ;;  %1889 = vtanh.f32 %v1741_v16  ;;  %v587_v19 = vpop.f32.mrf.mxu0 }
 0x108   : > { %v715_v20 = vpop.f32.mrf.mxu1  ;;  %v1866_v21 = vpop.eup %1865  ;;  %v1466_v22 = vpack.c.bf16 %v1864_v18, %v1856_v9  ;;  %1891 = vtanh.f32 %v587_v19 }
 0x109   : > { %v1868_v23 = vpop.eup %1867  ;;  %v1546_v24 = vpack.c.bf16 %v1866_v21, %v1858_v13  ;;  %1893 = vtanh.f32 %v715_v20  ;;  %v1710_v25 = vpop.f32.mrf.mxu0 }
 0x10a   : > { %v1742_v26 = vpop.f32.mrf.mxu1  ;;  %v1870_v27 = vpop.eup %1869  ;;  %1610 = vst [vmem:[%s2095_s8 + $0x18] sm:$0xff] %v1466_v22   ;;  %v1461_v28 = vpack.c.bf16 %v1868_v23, %v1860_v14  ;;  %1895 = vtanh.f32 %v1710_v25 }
 0x10b   : > { %v1872_v29 = vpop.eup %1871  ;;  %1626 = vst [vmem:[%s2095_s8 + $0x98] sm:$0xff] %v1546_v24   ;;  %v1541_v30 = vpack.c.bf16 %v1870_v27, %v1862_v17  ;;  %1897 = vtanh.f32 %v1742_v26  ;;  %v590_v31 = vpop.f32.mrf.mxu0 }
 0x10c   : > { %v718_v32 = vpop.f32.mrf.mxu1  ;;  %v1874_v33 = vpop.eup %1873  ;;  %1609 = vst [vmem:[%s2095_s8 + $0x10] sm:$0xff] %v1461_v28   ;;  %1899 = vtanh.f32 %v590_v31 }
 0x10d   : > { %v1876_v34 = vpop.eup %1875  ;;  %1625 = vst [vmem:[%s2095_s8 + $0x90] sm:$0xff] %v1541_v30   ;;  %1901 = vtanh.f32 %v718_v32  ;;  %v1713_v35 = vpop.f32.mrf.mxu0 }
 0x10e   : > { %v1745_v36 = vpop.f32.mrf.mxu1  ;;  %v1878_v37 = vpop.eup %1877  ;;  %1903 = vtanh.f32 %v1713_v35 }
 0x10f   : > { %v1880_v38 = vpop.eup %1879  ;;  %1905 = vtanh.f32 %v1745_v36  ;;  %v603_v39 = vpop.f32.mrf.mxu0 }
 0x110   : > { %v731_v40 = vpop.f32.mrf.mxu1  ;;  %v1882_v41 = vpop.eup %1881  ;;  %v1476_v42 = vpack.c.bf16 %v1880_v38, %v1872_v29  ;;  %1907 = vtanh.f32 %v603_v39 }
 0x111   : > { %v1884_v43 = vpop.eup %1883  ;;  %v1556_v44 = vpack.c.bf16 %v1882_v41, %v1874_v33  ;;  %1909 = vtanh.f32 %v731_v40  ;;  %v1714_v45 = vpop.f32.mrf.mxu0 }
 0x112   : > { %v1746_v46 = vpop.f32.mrf.mxu1  ;;  %v1886_v47 = vpop.eup %1885  ;;  %1612 = vst [vmem:[%s2095_s8 + $0x28] sm:$0xff] %v1476_v42   ;;  %v1471_v48 = vpack.c.bf16 %v1884_v43, %v1876_v34  ;;  %1911 = vtanh.f32 %v1714_v45 }
 0x113   : > { %v1888_v49 = vpop.eup %1887  ;;  %1628 = vst [vmem:[%s2095_s8 + $0xa8] sm:$0xff] %v1556_v44   ;;  %v1551_v50 = vpack.c.bf16 %v1886_v47, %v1878_v37  ;;  %1913 = vtanh.f32 %v1746_v46  ;;  %v606_v51 = vpop.f32.mrf.mxu0 }
 0x114   : > { %v734_v52 = vpop.f32.mrf.mxu1  ;;  %v1890_v53 = vpop.eup %1889  ;;  %1611 = vst [vmem:[%s2095_s8 + $0x20] sm:$0xff] %v1471_v48   ;;  %1915 = vtanh.f32 %v606_v51 }
 0x115   : > { %v1892_v54 = vpop.eup %1891  ;;  %1627 = vst [vmem:[%s2095_s8 + $0xa0] sm:$0xff] %v1551_v50   ;;  %1917 = vtanh.f32 %v734_v52  ;;  %v1717_v55 = vpop.f32.mrf.mxu0 }
 0x116   : > { %v1749_v56 = vpop.f32.mrf.mxu1  ;;  %v1894_v57 = vpop.eup %1893  ;;  %1919 = vtanh.f32 %v1717_v55 }
 0x117   : > { %v1896_v58 = vpop.eup %1895  ;;  %1921 = vtanh.f32 %v1749_v56  ;;  %v619_v59 = vpop.f32.mrf.mxu0 }
 0x118   : > { %v747_v60 = vpop.f32.mrf.mxu1  ;;  %v1898_v61 = vpop.eup %1897  ;;  %v1486_v62 = vpack.c.bf16 %v1896_v58, %v1888_v49  ;;  %1923 = vtanh.f32 %v619_v59 }
 0x119   : > { %v1900_v63 = vpop.eup %1899  ;;  %v1566_v0 = vpack.c.bf16 %v1898_v61, %v1890_v53  ;;  %1925 = vtanh.f32 %v747_v60  ;;  %v1718_v1 = vpop.f32.mrf.mxu0 }
 0x11a   : > { %v1750_v2 = vpop.f32.mrf.mxu1  ;;  %v1902_v3 = vpop.eup %1901  ;;  %1614 = vst [vmem:[%s2095_s8 + $0x38] sm:$0xff] %v1486_v62   ;;  %v1481_v4 = vpack.c.bf16 %v1900_v63, %v1892_v54  ;;  %1927 = vtanh.f32 %v1718_v1 }
 0x11b   : > { %v1904_v5 = vpop.eup %1903  ;;  %1630 = vst [vmem:[%s2095_s8 + $0xb8] sm:$0xff] %v1566_v0   ;;  %v1561_v6 = vpack.c.bf16 %v1902_v3, %v1894_v57  ;;  %1929 = vtanh.f32 %v1750_v2  ;;  %v622_v7 = vpop.f32.mrf.mxu0 }
 0x11c   : > { %v750_v8 = vpop.f32.mrf.mxu1  ;;  %v1906_v9 = vpop.eup %1905  ;;  %1613 = vst [vmem:[%s2095_s8 + $0x30] sm:$0xff] %v1481_v4   ;;  %1931 = vtanh.f32 %v622_v7 }
 0x11d   : > { %v1908_v10 = vpop.eup %1907  ;;  %1629 = vst [vmem:[%s2095_s8 + $0xb0] sm:$0xff] %v1561_v6   ;;  %1933 = vtanh.f32 %v750_v8  ;;  %v1721_v11 = vpop.f32.mrf.mxu0 }
 0x11e   : > { %v1753_v12 = vpop.f32.mrf.mxu1  ;;  %v1910_v13 = vpop.eup %1909  ;;  %1935 = vtanh.f32 %v1721_v11 }
 0x11f   : > { %v1912_v14 = vpop.eup %1911  ;;  %1937 = vtanh.f32 %v1753_v12  ;;  %v635_v15 = vpop.f32.mrf.mxu0 }
 0x120   : > { %v763_v16 = vpop.f32.mrf.mxu1  ;;  %v1914_v17 = vpop.eup %1913  ;;  %v1496_v18 = vpack.c.bf16 %v1912_v14, %v1904_v5  ;;  %1939 = vtanh.f32 %v635_v15 }
 0x121   : > { %v1916_v19 = vpop.eup %1915  ;;  %v1576_v20 = vpack.c.bf16 %v1914_v17, %v1906_v9  ;;  %1941 = vtanh.f32 %v763_v16  ;;  %v1722_v21 = vpop.f32.mrf.mxu0 }
 0x122   : > { %v1754_v22 = vpop.f32.mrf.mxu1  ;;  %v1918_v23 = vpop.eup %1917  ;;  %1616 = vst [vmem:[%s2095_s8 + $0x48] sm:$0xff] %v1496_v18   ;;  %v1491_v24 = vpack.c.bf16 %v1916_v19, %v1908_v10  ;;  %1943 = vtanh.f32 %v1722_v21 }
 0x123   : > { %v1920_v25 = vpop.eup %1919  ;;  %1632 = vst [vmem:[%s2095_s8 + $0xc8] sm:$0xff] %v1576_v20   ;;  %v1571_v26 = vpack.c.bf16 %v1918_v23, %v1910_v13  ;;  %1945 = vtanh.f32 %v1754_v22  ;;  %v638_v27 = vpop.f32.mrf.mxu0 }
 0x124   : > { %v766_v28 = vpop.f32.mrf.mxu1  ;;  %v1922_v29 = vpop.eup %1921  ;;  %1615 = vst [vmem:[%s2095_s8 + $0x40] sm:$0xff] %v1491_v24   ;;  %1947 = vtanh.f32 %v638_v27 }
 0x125   : > { %v1924_v30 = vpop.eup %1923  ;;  %1631 = vst [vmem:[%s2095_s8 + $0xc0] sm:$0xff] %v1571_v26   ;;  %1949 = vtanh.f32 %v766_v28  ;;  %v1725_v31 = vpop.f32.mrf.mxu0 }
 0x126   : > { %v1757_v32 = vpop.f32.mrf.mxu1  ;;  %v1926_v33 = vpop.eup %1925  ;;  %1951 = vtanh.f32 %v1725_v31 }
 0x127   : > { %v1928_v34 = vpop.eup %1927  ;;  %1953 = vtanh.f32 %v1757_v32  ;;  %v651_v35 = vpop.f32.mrf.mxu0 }
 0x128   : > { %v779_v36 = vpop.f32.mrf.mxu1  ;;  %v1930_v37 = vpop.eup %1929  ;;  %v1506_v38 = vpack.c.bf16 %v1928_v34, %v1920_v25  ;;  %1955 = vtanh.f32 %v651_v35 }
 0x129   : > { %v1932_v39 = vpop.eup %1931  ;;  %v1586_v40 = vpack.c.bf16 %v1930_v37, %v1922_v29  ;;  %1957 = vtanh.f32 %v779_v36  ;;  %v1726_v41 = vpop.f32.mrf.mxu0 }
 0x12a   : > { %v1758_v42 = vpop.f32.mrf.mxu1  ;;  %v1934_v43 = vpop.eup %1933  ;;  %1618 = vst [vmem:[%s2095_s8 + $0x58] sm:$0xff] %v1506_v38   ;;  %v1501_v44 = vpack.c.bf16 %v1932_v39, %v1924_v30  ;;  %1959 = vtanh.f32 %v1726_v41 }
 0x12b   : > { %v1936_v45 = vpop.eup %1935  ;;  %1634 = vst [vmem:[%s2095_s8 + $0xd8] sm:$0xff] %v1586_v40   ;;  %v1581_v46 = vpack.c.bf16 %v1934_v43, %v1926_v33  ;;  %1961 = vtanh.f32 %v1758_v42  ;;  %v654_v47 = vpop.f32.mrf.mxu0 }
 0x12c   : > { %v782_v48 = vpop.f32.mrf.mxu1  ;;  %v1938_v49 = vpop.eup %1937  ;;  %1617 = vst [vmem:[%s2095_s8 + $0x50] sm:$0xff] %v1501_v44   ;;  %1963 = vtanh.f32 %v654_v47 }
 0x12d   : > { %v1940_v50 = vpop.eup %1939  ;;  %1633 = vst [vmem:[%s2095_s8 + $0xd0] sm:$0xff] %v1581_v46   ;;  %1965 = vtanh.f32 %v782_v48 }
 0x12e   : > { %v1942_v51 = vpop.eup %1941 }
 0x12f   : > { %v1944_v52 = vpop.eup %1943 }
 0x130   : > { %v1946_v53 = vpop.eup %1945  ;;  %v1516_v54 = vpack.c.bf16 %v1944_v52, %v1936_v45 }
 0x131   : > { %v1948_v55 = vpop.eup %1947  ;;  %v1596_v56 = vpack.c.bf16 %v1946_v53, %v1938_v49 }
 0x132   : > { %v1950_v57 = vpop.eup %1949  ;;  %1620 = vst [vmem:[%s2095_s8 + $0x68] sm:$0xff] %v1516_v54   ;;  %v1511_v58 = vpack.c.bf16 %v1948_v55, %v1940_v50 }
 0x133   : > { %v1952_v59 = vpop.eup %1951  ;;  %1636 = vst [vmem:[%s2095_s8 + $0xe8] sm:$0xff] %v1596_v56   ;;  %v1591_v60 = vpack.c.bf16 %v1950_v57, %v1942_v51 }
 0x134   : > { %v1954_v61 = vpop.eup %1953  ;;  %1619 = vst [vmem:[%s2095_s8 + $0x60] sm:$0xff] %v1511_v58  }
 0x135   : > { %v1956_v62 = vpop.eup %1955  ;;  %1635 = vst [vmem:[%s2095_s8 + $0xe0] sm:$0xff] %v1591_v60  }
 0x136   : > { %v1958_v63 = vpop.eup %1957 }
 0x137   : > { %v1960_v0 = vpop.eup %1959 }
 0x138   : > { %v1962_v1 = vpop.eup %1961  ;;  %v1526_v2 = vpack.c.bf16 %v1960_v0, %v1952_v59 }
 0x139   : > { %v1964_v3 = vpop.eup %1963  ;;  %v1606_v4 = vpack.c.bf16 %v1962_v1, %v1954_v61 }
 0x13a   : > { %v1966_v5 = vpop.eup %1965  ;;  %1622 = vst [vmem:[%s2095_s8 + $0x78] sm:$0xff] %v1526_v2   ;;  %v1521_v6 = vpack.c.bf16 %v1964_v3, %v1956_v62 }
 0x13b   : > { %1638 = vst [vmem:[%s2095_s8 + $0xf8] sm:$0xff] %v1606_v4   ;;  %v1601_v7 = vpack.c.bf16 %v1966_v5, %v1958_v63 }
 0x13c   : > { %1621 = vst [vmem:[%s2095_s8 + $0x70] sm:$0xff] %v1521_v6  }
 0x13d   : > { %1637 = vst [vmem:[%s2095_s8 + $0xf0] sm:$0xff] %v1601_v7  }
 0x13e PF: > { %s12_s11 = sadd.s32 1, %s1989_s11   ;;  %s2141_s9 = smov %s1985_s10 }
 0x13f   : > { %p9_p5 = scmp.ge.s32.totalorder %s12_s11, 6   ;;  %s2142_s10 = smov %s2144_s12 }
 0x141   :  { %11 = sbr.rel (!%p9_p5) target bundleno = 2 (0x2), region = 61 }

</bundles_post_ra>
